<compile_context>
chip_gen: v7x
topology: tpu7x:2x2x1
jax: 0.10.0
libtpu: 0.0.40
codegen_flags: <defaults>
</compile_context>

<pallas_src>
import functools

import jax
import jax.numpy as jnp
from jax.experimental import pallas as pl
from jax.experimental.pallas import tpu as pltpu

KERNEL_SIZE = 17          # ConvModule depthwise kernel size (odd, SAME padding)
LN_EPS = 1e-5             # nn.LayerNorm default eps


def ffconvm_kernel(x_ref, gamma_ref, beta_ref, w_ref, b_ref, cw_ref, o_ref):
    # Refs per grid step:
    #   x_ref : (bt, T, Din)   gamma/beta : (1, Din)
    #   w_ref : (Din, Dout)    b_ref      : (1, Dout)
    #   cw_ref: (K, Dout)      o_ref      : (bt, T, Dout)
    bt, t_len, din = x_ref.shape
    dout = o_ref.shape[-1]
    n = bt * t_len

    # Flatten (bt, T) -> rows so the matmul sees a tall M dimension.
    x = x_ref[...].reshape(n, din).astype(jnp.float32)

    # ---- LayerNorm over channels (biased variance, PyTorch semantics) ----
    mean = jnp.mean(x, axis=-1, keepdims=True)
    xc = x - mean
    var = jnp.mean(xc * xc, axis=-1, keepdims=True)
    y = xc * jax.lax.rsqrt(var + LN_EPS)
    y = y * gamma_ref[0].astype(jnp.float32) + beta_ref[0].astype(jnp.float32)

    # ---- Linear(dim_in -> dim_out) on the MXU ----
    # Feed the MXU in the weight's dtype (bf16-native on v6e/v7x if the model
    # is bf16); accumulate in f32.
    w = w_ref[...]
    h = jnp.dot(y.astype(w.dtype), w, preferred_element_type=jnp.float32)
    h = h + b_ref[0].astype(jnp.float32)                      # (n, Dout) f32

    # ---- SiLU (EUP) ----
    h = h * jax.nn.sigmoid(h)

    # ---- ConvModule: residual + depthwise conv1d along T (SAME zero pad) ----
    # Done on the flattened (n, Dout) slab with static sublane rolls.  A per-row
    # "position within its batch element" index masks both the zero-padded
    # region and any cross-batch / wrap-around rows introduced by the roll.
    k_taps = cw_ref.shape[0]
    pad = (k_taps - 1) // 2
    cw = cw_ref[...].astype(jnp.float32)                      # (K, Dout)
    t_idx = jax.lax.broadcasted_iota(jnp.int32, (n, 1), 0) % t_len  # hoisted

    acc = h * cw[pad]                                         # centre tap, no mask
    for k in range(k_taps):                                   # static unroll
        d = k - pad
        if d == 0:
            continue
        rolled = pltpu.roll(h, shift=(-d) % n, axis=0)        # rolled[r] = h[r + d]
        if d < 0:
            mask = t_idx >= -d
        else:
            mask = t_idx < t_len - d
        acc = acc + jnp.where(mask, rolled, 0.0) * cw[k]

    out = h + acc                                             # residual add

    # ---- Dropout(p=0.1): identity at inference ----
    o_ref[...] = out.reshape(bt, t_len, dout).astype(o_ref.dtype)


def _pick_batch_tile(batch, seq, target_rows):
    """Smallest divisor of `batch` whose tile gives >= target_rows matmul rows."""
    for bt in range(1, batch + 1):
        if batch % bt == 0 and bt * seq >= target_rows:
            return bt
    return batch


@functools.partial(jax.jit, static_argnames=("batch_tile", "target_rows"))
def ffconvm(x, gamma, beta, w, b, conv_w, *, batch_tile=None, target_rows=256):
    """x: (B, T, dim_in) -> (B, T, dim_out)."""
    B, T, din = x.shape
    dout = w.shape[1]
    K = conv_w.shape[0]

    bt = batch_tile if batch_tile is not None else _pick_batch_tile(B, T, target_rows)
    assert B % bt == 0, "batch tile must divide batch"

    grid_spec = pltpu.PrefetchScalarGridSpec(
        num_scalar_prefetch=0,
        grid=(B // bt,),
        in_specs=[
            pl.BlockSpec((bt, T, din), lambda i: (i, 0, 0)),
            pl.BlockSpec((1, din), lambda i: (0, 0)),
            pl.BlockSpec((1, din), lambda i: (0, 0)),
            pl.BlockSpec((din, dout), lambda i: (0, 0)),
            pl.BlockSpec((1, dout), lambda i: (0, 0)),
            pl.BlockSpec((K, dout), lambda i: (0, 0)),
        ],
        out_specs=pl.BlockSpec((bt, T, dout), lambda i: (i, 0, 0)),
    )
    return pl.pallas_call(
        ffconvm_kernel,
        out_shape=jax.ShapeDtypeStruct((B, T, dout), x.dtype),
        grid_spec=grid_spec,
        compiler_params=pltpu.CompilerParams(
            dimension_semantics=("parallel",),
            vmem_limit_bytes=32 * 1024 * 1024,
        ),
    )(x, gamma, beta, w, b, conv_w)


def ffconvm_ref(x, gamma, beta, w, b, conv_w):
    """Pure-JAX reference matching the PyTorch forward (eval mode)."""
    xf = x.astype(jnp.float32)
    mean = jnp.mean(xf, axis=-1, keepdims=True)
    var = jnp.mean((xf - mean) ** 2, axis=-1, keepdims=True)
    y = (xf - mean) * jax.lax.rsqrt(var + LN_EPS) * gamma + beta
    h = jnp.einsum("btd,de->bte", y, w.astype(jnp.float32)) + b
    h = h * jax.nn.sigmoid(h)
    K = conv_w.shape[0]
    pad = (K - 1) // 2
    hp = jnp.pad(h, ((0, 0), (pad, pad), (0, 0)))
    T = h.shape[1]
    acc = jnp.zeros_like(h)
    for k in range(K):
        acc = acc + hp[:, k:k + T, :] * conv_w[k][None, None, :]
    return (h + acc).astype(x.dtype)


if __name__ == "__main__":
    # Small but TPU-friendly shapes: T multiple of 8 (sublane), Dout = 128 lanes.
    B, T, DIM_IN, DIM_OUT = 8, 64, 64, 128

    key = jax.random.PRNGKey(0)
    kx, kw, kb, kc, kg, kbe = jax.random.split(key, 6)

    x = jax.random.normal(kx, (B, T, DIM_IN), dtype=jnp.float32)

    # Deterministic synthetic parameters (not a checkpoint).
    gamma = 1.0 + 0.1 * jax.random.normal(kg, (1, DIM_IN), jnp.float32)   # LayerNorm weight
    beta = 0.01 * jax.random.normal(kbe, (1, DIM_IN), jnp.float32)        # LayerNorm bias
    w = jax.random.normal(kw, (DIM_IN, DIM_OUT), jnp.float32) * 0.1       # Linear weight (in, out)
    b = jax.random.normal(kb, (1, DIM_OUT), jnp.float32) * 0.01           # Linear bias
    conv_w = jax.random.normal(kc, (KERNEL_SIZE, DIM_OUT), jnp.float32) * 0.1  # depthwise (K, C)

    out = ffconvm(x, gamma, beta, w, b, conv_w)
    out = jax.block_until_ready(out)

    ref = ffconvm_ref(x, gamma, beta, w, b, conv_w)
    assert out.shape == (B, T, DIM_OUT)
    assert jnp.allclose(out, ref, atol=1e-4, rtol=1e-4), "mismatch vs reference"

    print("KERNEL_OK")
</pallas_src>

<mosaic_0001>
module attributes {stable_mosaic.version = 11 : i64} {
  func.func @ffconvm_kernel(%arg0: i32, %arg1: memref<4x64x64xf32, #tpu.memory_space<vmem>>, %arg2: memref<1x64xf32, #tpu.memory_space<vmem>>, %arg3: memref<1x64xf32, #tpu.memory_space<vmem>>, %arg4: memref<64x128xf32, #tpu.memory_space<vmem>>, %arg5: memref<1x128xf32, #tpu.memory_space<vmem>>, %arg6: memref<17x128xf32, #tpu.memory_space<vmem>>, %arg7: memref<4x64x128xf32, #tpu.memory_space<vmem>>) attributes {dimension_semantics = [#tpu.dimension_semantics<parallel>], iteration_bounds = array<i64: 2>, scalar_prefetch = 0 : i64, scratch_operands = 0 : i64, tpu.core_type = #tpu.core_type<tc>, window_params = [{transform_indices = @transform_0, window_bounds = array<i64: 4, 64, 64>}, {pipeline_mode = #tpu.pipeline_mode<synchronous>, transform_indices = @transform_1, window_bounds = array<i64: 1, 64>}, {pipeline_mode = #tpu.pipeline_mode<synchronous>, transform_indices = @transform_2, window_bounds = array<i64: 1, 64>}, {pipeline_mode = #tpu.pipeline_mode<synchronous>, transform_indices = @transform_3, window_bounds = array<i64: 64, 128>}, {pipeline_mode = #tpu.pipeline_mode<synchronous>, transform_indices = @transform_4, window_bounds = array<i64: 1, 128>}, {pipeline_mode = #tpu.pipeline_mode<synchronous>, transform_indices = @transform_5, window_bounds = array<i64: 17, 128>}, {transform_indices = @transform_6, window_bounds = array<i64: 4, 64, 128>}]} {
    %c0 = arith.constant 0 : index
    %c0_0 = arith.constant 0 : index
    %c0_1 = arith.constant 0 : index
    %0 = vector.load %arg1[%c0, %c0_0, %c0_1] : memref<4x64x64xf32, #tpu.memory_space<vmem>>, vector<4x64x64xf32>
    %1 = vector.shape_cast %0 : vector<4x64x64xf32> to vector<256x64xf32>
    %cst = arith.constant dense<0.000000e+00> : vector<256xf32>
    %2 = vector.multi_reduction <add>, %1, %cst [1] : vector<256x64xf32> to vector<256xf32>
    %3 = vector.shape_cast %2 : vector<256xf32> to vector<256x1xf32>
    %cst_2 = arith.constant 6.400000e+01 : f32
    %4 = vector.broadcast %cst_2 : f32 to vector<256x1xf32>
    %5 = arith.divf %3, %4 : vector<256x1xf32>
    %6 = vector.broadcast %5 : vector<256x1xf32> to vector<256x64xf32>
    %7 = arith.subf %1, %6 : vector<256x64xf32>
    %8 = arith.mulf %7, %7 : vector<256x64xf32>
    %cst_3 = arith.constant dense<0.000000e+00> : vector<256xf32>
    %9 = vector.multi_reduction <add>, %8, %cst_3 [1] : vector<256x64xf32> to vector<256xf32>
    %10 = vector.shape_cast %9 : vector<256xf32> to vector<256x1xf32>
    %cst_4 = arith.constant 6.400000e+01 : f32
    %11 = vector.broadcast %cst_4 : f32 to vector<256x1xf32>
    %12 = arith.divf %10, %11 : vector<256x1xf32>
    %cst_5 = arith.constant 9.99999974E-6 : f32
    %13 = vector.broadcast %cst_5 : f32 to vector<256x1xf32>
    %14 = arith.addf %12, %13 : vector<256x1xf32>
    %15 = math.rsqrt %14 : vector<256x1xf32>
    %16 = vector.broadcast %15 : vector<256x1xf32> to vector<256x64xf32>
    %17 = arith.mulf %7, %16 : vector<256x64xf32>
    %c0_6 = arith.constant 0 : index
    %c0_7 = arith.constant 0 : index
    %18 = vector.load %arg2[%c0_6, %c0_7] : memref<1x64xf32, #tpu.memory_space<vmem>>, vector<1x64xf32>
    %19 = vector.shape_cast %18 : vector<1x64xf32> to vector<64xf32>
    %20 = vector.shape_cast %19 : vector<64xf32> to vector<1x64xf32>
    %21 = vector.broadcast %20 : vector<1x64xf32> to vector<256x64xf32>
    %22 = arith.mulf %17, %21 : vector<256x64xf32>
    %c0_8 = arith.constant 0 : index
    %c0_9 = arith.constant 0 : index
    %23 = vector.load %arg3[%c0_8, %c0_9] : memref<1x64xf32, #tpu.memory_space<vmem>>, vector<1x64xf32>
    %24 = vector.shape_cast %23 : vector<1x64xf32> to vector<64xf32>
    %25 = vector.shape_cast %24 : vector<64xf32> to vector<1x64xf32>
    %26 = vector.broadcast %25 : vector<1x64xf32> to vector<256x64xf32>
    %27 = arith.addf %22, %26 : vector<256x64xf32>
    %c0_10 = arith.constant 0 : index
    %c0_11 = arith.constant 0 : index
    %28 = vector.load %arg4[%c0_10, %c0_11] : memref<64x128xf32, #tpu.memory_space<vmem>>, vector<64x128xf32>
    %cst_12 = arith.constant dense<0.000000e+00> : vector<256x128xf32>
    %29 = tpu.matmul %27, %28, %cst_12 {dimension_numbers = #tpu.dot_dimension_numbers<[1], [0], [0], [1], [0, 0, 1, 1], [], []>} : vector<256x64xf32>, vector<64x128xf32>, vector<256x128xf32> -> vector<256x128xf32>
    %c0_13 = arith.constant 0 : index
    %c0_14 = arith.constant 0 : index
    %30 = vector.load %arg5[%c0_13, %c0_14] : memref<1x128xf32, #tpu.memory_space<vmem>>, vector<1x128xf32>
    %31 = vector.shape_cast %30 : vector<1x128xf32> to vector<128xf32>
    %32 = vector.shape_cast %31 : vector<128xf32> to vector<1x128xf32>
    %33 = vector.broadcast %32 : vector<1x128xf32> to vector<256x128xf32>
    %34 = arith.addf %29, %33 : vector<256x128xf32>
    %35 = arith.negf %34 : vector<256x128xf32>
    %36 = math.exp %35 : vector<256x128xf32>
    %cst_15 = arith.constant 1.000000e+00 : f32
    %37 = vector.broadcast %cst_15 : f32 to vector<256x128xf32>
    %38 = arith.addf %37, %36 : vector<256x128xf32>
    %39 = arith.divf %37, %38 : vector<256x128xf32>
    %40 = arith.mulf %34, %39 : vector<256x128xf32>
    %c0_16 = arith.constant 0 : index
    %c0_17 = arith.constant 0 : index
    %41 = vector.load %arg6[%c0_16, %c0_17] : memref<17x128xf32, #tpu.memory_space<vmem>>, vector<17x128xf32>
    %42 = tpu.iota {dimensions = array<i32: 0>} : vector<256x1xi32>
    %c64_i32 = arith.constant 64 : i32
    %c0_i32 = arith.constant 0 : i32
    %43 = arith.cmpi eq, %c64_i32, %c0_i32 : i32
    %c1_i32 = arith.constant 1 : i32
    %44 = arith.select %43, %c1_i32, %c64_i32 : i32
    %45 = vector.broadcast %44 : i32 to vector<256x1xi32>
    %46 = arith.remsi %42, %45 : vector<256x1xi32>
    %c0_i32_18 = arith.constant 0 : i32
    %47 = vector.broadcast %c0_i32_18 : i32 to vector<256x1xi32>
    %48 = arith.cmpi ne, %46, %47 : vector<256x1xi32>
    %c0_i32_19 = arith.constant 0 : i32
    %49 = vector.broadcast %c0_i32_19 : i32 to vector<256x1xi32>
    %50 = arith.cmpi slt, %46, %49 : vector<256x1xi32>
    %c0_i32_20 = arith.constant 0 : i32
    %51 = arith.cmpi slt, %44, %c0_i32_20 : i32
    %52 = vector.broadcast %51 : i1 to vector<256x1xi1>
    %53 = vector.broadcast %52 : vector<256x1xi1> to vector<256x1xi1>
    %54 = arith.xori %50, %53 : vector<256x1xi1>
    %55 = arith.andi %54, %48 : vector<256x1xi1>
    %56 = vector.broadcast %44 : i32 to vector<256x1xi32>
    %57 = arith.addi %46, %56 : vector<256x1xi32>
    %58 = arith.select %55, %57, %46 : vector<256x1xi1>, vector<256x1xi32>
    %59 = vector.extract_strided_slice %41 {offsets = [8, 0], sizes = [1, 128], strides = [1, 1]} : vector<17x128xf32> to vector<1x128xf32>
    %60 = vector.shape_cast %59 : vector<1x128xf32> to vector<128xf32>
    %61 = vector.shape_cast %60 : vector<128xf32> to vector<1x128xf32>
    %62 = vector.broadcast %61 : vector<1x128xf32> to vector<256x128xf32>
    %63 = arith.mulf %40, %62 : vector<256x128xf32>
    %c8_i32 = arith.constant 8 : i32
    %64 = tpu.dynamic_rotate %40 by %c8_i32 dim 0 : vector<256x128xf32>, i32 -> vector<256x128xf32>
    %c8_i32_21 = arith.constant 8 : i32
    %65 = vector.broadcast %c8_i32_21 : i32 to vector<256x1xi32>
    %66 = arith.cmpi sge, %58, %65 : vector<256x1xi32>
    %cst_22 = arith.constant 0.000000e+00 : f32
    %67 = vector.shape_cast %66 : vector<256x1xi1> to vector<256x1xi1>
    %68 = vector.broadcast %67 : vector<256x1xi1> to vector<256x128xi1>
    %69 = vector.broadcast %cst_22 : f32 to vector<256x128xf32>
    %70 = arith.select %68, %64, %69 : vector<256x128xi1>, vector<256x128xf32>
    %71 = vector.extract_strided_slice %41 {offsets = [0, 0], sizes = [1, 128], strides = [1, 1]} : vector<17x128xf32> to vector<1x128xf32>
    %72 = vector.shape_cast %71 : vector<1x128xf32> to vector<128xf32>
    %73 = vector.shape_cast %72 : vector<128xf32> to vector<1x128xf32>
    %74 = vector.broadcast %73 : vector<1x128xf32> to vector<256x128xf32>
    %75 = arith.mulf %70, %74 : vector<256x128xf32>
    %76 = arith.addf %63, %75 : vector<256x128xf32>
    %c7_i32 = arith.constant 7 : i32
    %77 = tpu.dynamic_rotate %40 by %c7_i32 dim 0 : vector<256x128xf32>, i32 -> vector<256x128xf32>
    %c7_i32_23 = arith.constant 7 : i32
    %78 = vector.broadcast %c7_i32_23 : i32 to vector<256x1xi32>
    %79 = arith.cmpi sge, %58, %78 : vector<256x1xi32>
    %cst_24 = arith.constant 0.000000e+00 : f32
    %80 = vector.shape_cast %79 : vector<256x1xi1> to vector<256x1xi1>
    %81 = vector.broadcast %80 : vector<256x1xi1> to vector<256x128xi1>
    %82 = vector.broadcast %cst_24 : f32 to vector<256x128xf32>
    %83 = arith.select %81, %77, %82 : vector<256x128xi1>, vector<256x128xf32>
    %84 = vector.extract_strided_slice %41 {offsets = [1, 0], sizes = [1, 128], strides = [1, 1]} : vector<17x128xf32> to vector<1x128xf32>
    %85 = vector.shape_cast %84 : vector<1x128xf32> to vector<128xf32>
    %86 = vector.shape_cast %85 : vector<128xf32> to vector<1x128xf32>
    %87 = vector.broadcast %86 : vector<1x128xf32> to vector<256x128xf32>
    %88 = arith.mulf %83, %87 : vector<256x128xf32>
    %89 = arith.addf %76, %88 : vector<256x128xf32>
    %c6_i32 = arith.constant 6 : i32
    %90 = tpu.dynamic_rotate %40 by %c6_i32 dim 0 : vector<256x128xf32>, i32 -> vector<256x128xf32>
    %c6_i32_25 = arith.constant 6 : i32
    %91 = vector.broadcast %c6_i32_25 : i32 to vector<256x1xi32>
    %92 = arith.cmpi sge, %58, %91 : vector<256x1xi32>
    %cst_26 = arith.constant 0.000000e+00 : f32
    %93 = vector.shape_cast %92 : vector<256x1xi1> to vector<256x1xi1>
    %94 = vector.broadcast %93 : vector<256x1xi1> to vector<256x128xi1>
    %95 = vector.broadcast %cst_26 : f32 to vector<256x128xf32>
    %96 = arith.select %94, %90, %95 : vector<256x128xi1>, vector<256x128xf32>
    %97 = vector.extract_strided_slice %41 {offsets = [2, 0], sizes = [1, 128], strides = [1, 1]} : vector<17x128xf32> to vector<1x128xf32>
    %98 = vector.shape_cast %97 : vector<1x128xf32> to vector<128xf32>
    %99 = vector.shape_cast %98 : vector<128xf32> to vector<1x128xf32>
    %100 = vector.broadcast %99 : vector<1x128xf32> to vector<256x128xf32>
    %101 = arith.mulf %96, %100 : vector<256x128xf32>
    %102 = arith.addf %89, %101 : vector<256x128xf32>
    %c5_i32 = arith.constant 5 : i32
    %103 = tpu.dynamic_rotate %40 by %c5_i32 dim 0 : vector<256x128xf32>, i32 -> vector<256x128xf32>
    %c5_i32_27 = arith.constant 5 : i32
    %104 = vector.broadcast %c5_i32_27 : i32 to vector<256x1xi32>
    %105 = arith.cmpi sge, %58, %104 : vector<256x1xi32>
    %cst_28 = arith.constant 0.000000e+00 : f32
    %106 = vector.shape_cast %105 : vector<256x1xi1> to vector<256x1xi1>
    %107 = vector.broadcast %106 : vector<256x1xi1> to vector<256x128xi1>
    %108 = vector.broadcast %cst_28 : f32 to vector<256x128xf32>
    %109 = arith.select %107, %103, %108 : vector<256x128xi1>, vector<256x128xf32>
    %110 = vector.extract_strided_slice %41 {offsets = [3, 0], sizes = [1, 128], strides = [1, 1]} : vector<17x128xf32> to vector<1x128xf32>
    %111 = vector.shape_cast %110 : vector<1x128xf32> to vector<128xf32>
    %112 = vector.shape_cast %111 : vector<128xf32> to vector<1x128xf32>
    %113 = vector.broadcast %112 : vector<1x128xf32> to vector<256x128xf32>
    %114 = arith.mulf %109, %113 : vector<256x128xf32>
    %115 = arith.addf %102, %114 : vector<256x128xf32>
    %c4_i32 = arith.constant 4 : i32
    %116 = tpu.dynamic_rotate %40 by %c4_i32 dim 0 : vector<256x128xf32>, i32 -> vector<256x128xf32>
    %c4_i32_29 = arith.constant 4 : i32
    %117 = vector.broadcast %c4_i32_29 : i32 to vector<256x1xi32>
    %118 = arith.cmpi sge, %58, %117 : vector<256x1xi32>
    %cst_30 = arith.constant 0.000000e+00 : f32
    %119 = vector.shape_cast %118 : vector<256x1xi1> to vector<256x1xi1>
    %120 = vector.broadcast %119 : vector<256x1xi1> to vector<256x128xi1>
    %121 = vector.broadcast %cst_30 : f32 to vector<256x128xf32>
    %122 = arith.select %120, %116, %121 : vector<256x128xi1>, vector<256x128xf32>
    %123 = vector.extract_strided_slice %41 {offsets = [4, 0], sizes = [1, 128], strides = [1, 1]} : vector<17x128xf32> to vector<1x128xf32>
    %124 = vector.shape_cast %123 : vector<1x128xf32> to vector<128xf32>
    %125 = vector.shape_cast %124 : vector<128xf32> to vector<1x128xf32>
    %126 = vector.broadcast %125 : vector<1x128xf32> to vector<256x128xf32>
    %127 = arith.mulf %122, %126 : vector<256x128xf32>
    %128 = arith.addf %115, %127 : vector<256x128xf32>
    %c3_i32 = arith.constant 3 : i32
    %129 = tpu.dynamic_rotate %40 by %c3_i32 dim 0 : vector<256x128xf32>, i32 -> vector<256x128xf32>
    %c3_i32_31 = arith.constant 3 : i32
    %130 = vector.broadcast %c3_i32_31 : i32 to vector<256x1xi32>
    %131 = arith.cmpi sge, %58, %130 : vector<256x1xi32>
    %cst_32 = arith.constant 0.000000e+00 : f32
    %132 = vector.shape_cast %131 : vector<256x1xi1> to vector<256x1xi1>
    %133 = vector.broadcast %132 : vector<256x1xi1> to vector<256x128xi1>
    %134 = vector.broadcast %cst_32 : f32 to vector<256x128xf32>
    %135 = arith.select %133, %129, %134 : vector<256x128xi1>, vector<256x128xf32>
    %136 = vector.extract_strided_slice %41 {offsets = [5, 0], sizes = [1, 128], strides = [1, 1]} : vector<17x128xf32> to vector<1x128xf32>
    %137 = vector.shape_cast %136 : vector<1x128xf32> to vector<128xf32>
    %138 = vector.shape_cast %137 : vector<128xf32> to vector<1x128xf32>
    %139 = vector.broadcast %138 : vector<1x128xf32> to vector<256x128xf32>
    %140 = arith.mulf %135, %139 : vector<256x128xf32>
    %141 = arith.addf %128, %140 : vector<256x128xf32>
    %c2_i32 = arith.constant 2 : i32
    %142 = tpu.dynamic_rotate %40 by %c2_i32 dim 0 : vector<256x128xf32>, i32 -> vector<256x128xf32>
    %c2_i32_33 = arith.constant 2 : i32
    %143 = vector.broadcast %c2_i32_33 : i32 to vector<256x1xi32>
    %144 = arith.cmpi sge, %58, %143 : vector<256x1xi32>
    %cst_34 = arith.constant 0.000000e+00 : f32
    %145 = vector.shape_cast %144 : vector<256x1xi1> to vector<256x1xi1>
    %146 = vector.broadcast %145 : vector<256x1xi1> to vector<256x128xi1>
    %147 = vector.broadcast %cst_34 : f32 to vector<256x128xf32>
    %148 = arith.select %146, %142, %147 : vector<256x128xi1>, vector<256x128xf32>
    %149 = vector.extract_strided_slice %41 {offsets = [6, 0], sizes = [1, 128], strides = [1, 1]} : vector<17x128xf32> to vector<1x128xf32>
    %150 = vector.shape_cast %149 : vector<1x128xf32> to vector<128xf32>
    %151 = vector.shape_cast %150 : vector<128xf32> to vector<1x128xf32>
    %152 = vector.broadcast %151 : vector<1x128xf32> to vector<256x128xf32>
    %153 = arith.mulf %148, %152 : vector<256x128xf32>
    %154 = arith.addf %141, %153 : vector<256x128xf32>
    %c1_i32_35 = arith.constant 1 : i32
    %155 = tpu.dynamic_rotate %40 by %c1_i32_35 dim 0 : vector<256x128xf32>, i32 -> vector<256x128xf32>
    %c1_i32_36 = arith.constant 1 : i32
    %156 = vector.broadcast %c1_i32_36 : i32 to vector<256x1xi32>
    %157 = arith.cmpi sge, %58, %156 : vector<256x1xi32>
    %cst_37 = arith.constant 0.000000e+00 : f32
    %158 = vector.shape_cast %157 : vector<256x1xi1> to vector<256x1xi1>
    %159 = vector.broadcast %158 : vector<256x1xi1> to vector<256x128xi1>
    %160 = vector.broadcast %cst_37 : f32 to vector<256x128xf32>
    %161 = arith.select %159, %155, %160 : vector<256x128xi1>, vector<256x128xf32>
    %162 = vector.extract_strided_slice %41 {offsets = [7, 0], sizes = [1, 128], strides = [1, 1]} : vector<17x128xf32> to vector<1x128xf32>
    %163 = vector.shape_cast %162 : vector<1x128xf32> to vector<128xf32>
    %164 = vector.shape_cast %163 : vector<128xf32> to vector<1x128xf32>
    %165 = vector.broadcast %164 : vector<1x128xf32> to vector<256x128xf32>
    %166 = arith.mulf %161, %165 : vector<256x128xf32>
    %167 = arith.addf %154, %166 : vector<256x128xf32>
    %c255_i32 = arith.constant 255 : i32
    %168 = tpu.dynamic_rotate %40 by %c255_i32 dim 0 : vector<256x128xf32>, i32 -> vector<256x128xf32>
    %c63_i32 = arith.constant 63 : i32
    %169 = vector.broadcast %c63_i32 : i32 to vector<256x1xi32>
    %170 = arith.cmpi slt, %58, %169 : vector<256x1xi32>
    %cst_38 = arith.constant 0.000000e+00 : f32
    %171 = vector.shape_cast %170 : vector<256x1xi1> to vector<256x1xi1>
    %172 = vector.broadcast %171 : vector<256x1xi1> to vector<256x128xi1>
    %173 = vector.broadcast %cst_38 : f32 to vector<256x128xf32>
    %174 = arith.select %172, %168, %173 : vector<256x128xi1>, vector<256x128xf32>
    %175 = vector.extract_strided_slice %41 {offsets = [9, 0], sizes = [1, 128], strides = [1, 1]} : vector<17x128xf32> to vector<1x128xf32>
    %176 = vector.shape_cast %175 : vector<1x128xf32> to vector<128xf32>
    %177 = vector.shape_cast %176 : vector<128xf32> to vector<1x128xf32>
    %178 = vector.broadcast %177 : vector<1x128xf32> to vector<256x128xf32>
    %179 = arith.mulf %174, %178 : vector<256x128xf32>
    %180 = arith.addf %167, %179 : vector<256x128xf32>
    %c254_i32 = arith.constant 254 : i32
    %181 = tpu.dynamic_rotate %40 by %c254_i32 dim 0 : vector<256x128xf32>, i32 -> vector<256x128xf32>
    %c62_i32 = arith.constant 62 : i32
    %182 = vector.broadcast %c62_i32 : i32 to vector<256x1xi32>
    %183 = arith.cmpi slt, %58, %182 : vector<256x1xi32>
    %cst_39 = arith.constant 0.000000e+00 : f32
    %184 = vector.shape_cast %183 : vector<256x1xi1> to vector<256x1xi1>
    %185 = vector.broadcast %184 : vector<256x1xi1> to vector<256x128xi1>
    %186 = vector.broadcast %cst_39 : f32 to vector<256x128xf32>
    %187 = arith.select %185, %181, %186 : vector<256x128xi1>, vector<256x128xf32>
    %188 = vector.extract_strided_slice %41 {offsets = [10, 0], sizes = [1, 128], strides = [1, 1]} : vector<17x128xf32> to vector<1x128xf32>
    %189 = vector.shape_cast %188 : vector<1x128xf32> to vector<128xf32>
    %190 = vector.shape_cast %189 : vector<128xf32> to vector<1x128xf32>
    %191 = vector.broadcast %190 : vector<1x128xf32> to vector<256x128xf32>
    %192 = arith.mulf %187, %191 : vector<256x128xf32>
    %193 = arith.addf %180, %192 : vector<256x128xf32>
    %c253_i32 = arith.constant 253 : i32
    %194 = tpu.dynamic_rotate %40 by %c253_i32 dim 0 : vector<256x128xf32>, i32 -> vector<256x128xf32>
    %c61_i32 = arith.constant 61 : i32
    %195 = vector.broadcast %c61_i32 : i32 to vector<256x1xi32>
    %196 = arith.cmpi slt, %58, %195 : vector<256x1xi32>
    %cst_40 = arith.constant 0.000000e+00 : f32
    %197 = vector.shape_cast %196 : vector<256x1xi1> to vector<256x1xi1>
    %198 = vector.broadcast %197 : vector<256x1xi1> to vector<256x128xi1>
    %199 = vector.broadcast %cst_40 : f32 to vector<256x128xf32>
    %200 = arith.select %198, %194, %199 : vector<256x128xi1>, vector<256x128xf32>
    %201 = vector.extract_strided_slice %41 {offsets = [11, 0], sizes = [1, 128], strides = [1, 1]} : vector<17x128xf32> to vector<1x128xf32>
    %202 = vector.shape_cast %201 : vector<1x128xf32> to vector<128xf32>
    %203 = vector.shape_cast %202 : vector<128xf32> to vector<1x128xf32>
    %204 = vector.broadcast %203 : vector<1x128xf32> to vector<256x128xf32>
    %205 = arith.mulf %200, %204 : vector<256x128xf32>
    %206 = arith.addf %193, %205 : vector<256x128xf32>
    %c252_i32 = arith.constant 252 : i32
    %207 = tpu.dynamic_rotate %40 by %c252_i32 dim 0 : vector<256x128xf32>, i32 -> vector<256x128xf32>
    %c60_i32 = arith.constant 60 : i32
    %208 = vector.broadcast %c60_i32 : i32 to vector<256x1xi32>
    %209 = arith.cmpi slt, %58, %208 : vector<256x1xi32>
    %cst_41 = arith.constant 0.000000e+00 : f32
    %210 = vector.shape_cast %209 : vector<256x1xi1> to vector<256x1xi1>
    %211 = vector.broadcast %210 : vector<256x1xi1> to vector<256x128xi1>
    %212 = vector.broadcast %cst_41 : f32 to vector<256x128xf32>
    %213 = arith.select %211, %207, %212 : vector<256x128xi1>, vector<256x128xf32>
    %214 = vector.extract_strided_slice %41 {offsets = [12, 0], sizes = [1, 128], strides = [1, 1]} : vector<17x128xf32> to vector<1x128xf32>
    %215 = vector.shape_cast %214 : vector<1x128xf32> to vector<128xf32>
    %216 = vector.shape_cast %215 : vector<128xf32> to vector<1x128xf32>
    %217 = vector.broadcast %216 : vector<1x128xf32> to vector<256x128xf32>
    %218 = arith.mulf %213, %217 : vector<256x128xf32>
    %219 = arith.addf %206, %218 : vector<256x128xf32>
    %c251_i32 = arith.constant 251 : i32
    %220 = tpu.dynamic_rotate %40 by %c251_i32 dim 0 : vector<256x128xf32>, i32 -> vector<256x128xf32>
    %c59_i32 = arith.constant 59 : i32
    %221 = vector.broadcast %c59_i32 : i32 to vector<256x1xi32>
    %222 = arith.cmpi slt, %58, %221 : vector<256x1xi32>
    %cst_42 = arith.constant 0.000000e+00 : f32
    %223 = vector.shape_cast %222 : vector<256x1xi1> to vector<256x1xi1>
    %224 = vector.broadcast %223 : vector<256x1xi1> to vector<256x128xi1>
    %225 = vector.broadcast %cst_42 : f32 to vector<256x128xf32>
    %226 = arith.select %224, %220, %225 : vector<256x128xi1>, vector<256x128xf32>
    %227 = vector.extract_strided_slice %41 {offsets = [13, 0], sizes = [1, 128], strides = [1, 1]} : vector<17x128xf32> to vector<1x128xf32>
    %228 = vector.shape_cast %227 : vector<1x128xf32> to vector<128xf32>
    %229 = vector.shape_cast %228 : vector<128xf32> to vector<1x128xf32>
    %230 = vector.broadcast %229 : vector<1x128xf32> to vector<256x128xf32>
    %231 = arith.mulf %226, %230 : vector<256x128xf32>
    %232 = arith.addf %219, %231 : vector<256x128xf32>
    %c250_i32 = arith.constant 250 : i32
    %233 = tpu.dynamic_rotate %40 by %c250_i32 dim 0 : vector<256x128xf32>, i32 -> vector<256x128xf32>
    %c58_i32 = arith.constant 58 : i32
    %234 = vector.broadcast %c58_i32 : i32 to vector<256x1xi32>
    %235 = arith.cmpi slt, %58, %234 : vector<256x1xi32>
    %cst_43 = arith.constant 0.000000e+00 : f32
    %236 = vector.shape_cast %235 : vector<256x1xi1> to vector<256x1xi1>
    %237 = vector.broadcast %236 : vector<256x1xi1> to vector<256x128xi1>
    %238 = vector.broadcast %cst_43 : f32 to vector<256x128xf32>
    %239 = arith.select %237, %233, %238 : vector<256x128xi1>, vector<256x128xf32>
    %240 = vector.extract_strided_slice %41 {offsets = [14, 0], sizes = [1, 128], strides = [1, 1]} : vector<17x128xf32> to vector<1x128xf32>
    %241 = vector.shape_cast %240 : vector<1x128xf32> to vector<128xf32>
    %242 = vector.shape_cast %241 : vector<128xf32> to vector<1x128xf32>
    %243 = vector.broadcast %242 : vector<1x128xf32> to vector<256x128xf32>
    %244 = arith.mulf %239, %243 : vector<256x128xf32>
    %245 = arith.addf %232, %244 : vector<256x128xf32>
    %c249_i32 = arith.constant 249 : i32
    %246 = tpu.dynamic_rotate %40 by %c249_i32 dim 0 : vector<256x128xf32>, i32 -> vector<256x128xf32>
    %c57_i32 = arith.constant 57 : i32
    %247 = vector.broadcast %c57_i32 : i32 to vector<256x1xi32>
    %248 = arith.cmpi slt, %58, %247 : vector<256x1xi32>
    %cst_44 = arith.constant 0.000000e+00 : f32
    %249 = vector.shape_cast %248 : vector<256x1xi1> to vector<256x1xi1>
    %250 = vector.broadcast %249 : vector<256x1xi1> to vector<256x128xi1>
    %251 = vector.broadcast %cst_44 : f32 to vector<256x128xf32>
    %252 = arith.select %250, %246, %251 : vector<256x128xi1>, vector<256x128xf32>
    %253 = vector.extract_strided_slice %41 {offsets = [15, 0], sizes = [1, 128], strides = [1, 1]} : vector<17x128xf32> to vector<1x128xf32>
    %254 = vector.shape_cast %253 : vector<1x128xf32> to vector<128xf32>
    %255 = vector.shape_cast %254 : vector<128xf32> to vector<1x128xf32>
    %256 = vector.broadcast %255 : vector<1x128xf32> to vector<256x128xf32>
    %257 = arith.mulf %252, %256 : vector<256x128xf32>
    %258 = arith.addf %245, %257 : vector<256x128xf32>
    %c248_i32 = arith.constant 248 : i32
    %259 = tpu.dynamic_rotate %40 by %c248_i32 dim 0 : vector<256x128xf32>, i32 -> vector<256x128xf32>
    %c56_i32 = arith.constant 56 : i32
    %260 = vector.broadcast %c56_i32 : i32 to vector<256x1xi32>
    %261 = arith.cmpi slt, %58, %260 : vector<256x1xi32>
    %cst_45 = arith.constant 0.000000e+00 : f32
    %262 = vector.shape_cast %261 : vector<256x1xi1> to vector<256x1xi1>
    %263 = vector.broadcast %262 : vector<256x1xi1> to vector<256x128xi1>
    %264 = vector.broadcast %cst_45 : f32 to vector<256x128xf32>
    %265 = arith.select %263, %259, %264 : vector<256x128xi1>, vector<256x128xf32>
    %266 = vector.extract_strided_slice %41 {offsets = [16, 0], sizes = [1, 128], strides = [1, 1]} : vector<17x128xf32> to vector<1x128xf32>
    %267 = vector.shape_cast %266 : vector<1x128xf32> to vector<128xf32>
    %268 = vector.shape_cast %267 : vector<128xf32> to vector<1x128xf32>
    %269 = vector.broadcast %268 : vector<1x128xf32> to vector<256x128xf32>
    %270 = arith.mulf %265, %269 : vector<256x128xf32>
    %271 = arith.addf %258, %270 : vector<256x128xf32>
    %272 = arith.addf %40, %271 : vector<256x128xf32>
    %273 = vector.shape_cast %272 : vector<256x128xf32> to vector<4x64x128xf32>
    %c0_46 = arith.constant 0 : index
    %c0_47 = arith.constant 0 : index
    %c0_48 = arith.constant 0 : index
    %274 = vector.load %arg7[%c0_46, %c0_47, %c0_48] : memref<4x64x128xf32, #tpu.memory_space<vmem>>, vector<4x64x128xf32>
    tpu.vector_store %arg7[%c0_46, %c0_47, %c0_48], %273 {strides = array<i32>} : memref<4x64x128xf32, #tpu.memory_space<vmem>>, vector<4x64x128xf32>,
    return
  }
  func.func @transform_0(%arg0: i32) -> (i32, i32, i32) {
    %c0_i32 = arith.constant 0 : i32
    %c0_i32_0 = arith.constant 0 : i32
    %c0_i32_1 = arith.constant 0 : i32
    return %arg0, %c0_i32, %c0_i32_0 : i32, i32, i32
  }
  func.func @transform_1(%arg0: i32) -> (i32, i32) {
    %c0_i32 = arith.constant 0 : i32
    %c0_i32_0 = arith.constant 0 : i32
    %c0_i32_1 = arith.constant 0 : i32
    return %c0_i32, %c0_i32_0 : i32, i32
  }
  func.func @transform_2(%arg0: i32) -> (i32, i32) {
    %c0_i32 = arith.constant 0 : i32
    %c0_i32_0 = arith.constant 0 : i32
    %c0_i32_1 = arith.constant 0 : i32
    return %c0_i32, %c0_i32_0 : i32, i32
  }
  func.func @transform_3(%arg0: i32) -> (i32, i32) {
    %c0_i32 = arith.constant 0 : i32
    %c0_i32_0 = arith.constant 0 : i32
    %c0_i32_1 = arith.constant 0 : i32
    return %c0_i32, %c0_i32_0 : i32, i32
  }
  func.func @transform_4(%arg0: i32) -> (i32, i32) {
    %c0_i32 = arith.constant 0 : i32
    %c0_i32_0 = arith.constant 0 : i32
    %c0_i32_1 = arith.constant 0 : i32
    return %c0_i32, %c0_i32_0 : i32, i32
  }
  func.func @transform_5(%arg0: i32) -> (i32, i32) {
    %c0_i32 = arith.constant 0 : i32
    %c0_i32_0 = arith.constant 0 : i32
    %c0_i32_1 = arith.constant 0 : i32
    return %c0_i32, %c0_i32_0 : i32, i32
  }
  func.func @transform_6(%arg0: i32) -> (i32, i32, i32) {
    %c0_i32 = arith.constant 0 : i32
    %c0_i32_0 = arith.constant 0 : i32
    %c0_i32_1 = arith.constant 0 : i32
    return %arg0, %c0_i32, %c0_i32_0 : i32, i32, i32
  }
}

</mosaic_0001>

<bundles_post_ra>
// kernel: ffconvm.1
= control target key start
LH: loop header
LB: loop body
LE: loop exit
PB: predicated region body
PF: predicated region fallthrough
CT: control target
= control target key end

     0   :  { %11 = vsyncpa [#allocation3], 0  ;;  %s10003_s0 = inlined_call_operand.hbm [shape: f32[8,64,64], index: 0, kind: input, shape index: {}]   ;;  %s10004_s1 = inlined_call_operand.vmem [shape: f32[1,64], index: 1, kind: input, shape index: {}]   ;;  %s10005_s2 = inlined_call_operand.vmem [shape: f32[1,64], index: 2, kind: input, shape index: {}]   ;;  %s10006_s3 = inlined_call_operand.hbm [shape: f32[64,128], index: 3, kind: input, shape index: {}]   ;;  %s10007_s4 = inlined_call_operand.vmem [shape: f32[1,128], index: 4, kind: input, shape index: {}]   ;;  %s10008_s5 = inlined_call_operand.hbm [shape: f32[17,128], index: 5, kind: input, shape index: {}]   ;;  %s10009_s6 = inlined_call_operand.hbm [shape: f32[8,64,128], index: 6, kind: output, shape index: {}]  }
   0x1   :  { %13 = vsyncpa [#allocation3 + $0x1], 0 }
   0x2   :  { %14 = vsyncpa [#allocation6], 0 }
   0x3   :  { %15 = vsyncpa [#allocation4], 0 }
   0x4   :  { %17 = vsyncpa [#allocation4 + $0x1], 0  ;;  %s6297_s21 = smov 0   ;;  %s6299_s22 = smov 0  }
   0x5   :  { %s6301_s23 = smov 0   ;;  %s6303_s24 = smov 0  }
   0x6 LB: > { %s6318_s25 = sadd.s32 4294967295, %s6252_s24   ;;  %s5608_s26 = sadd.s32 4294967294, %s6252_s24   ;;  %s6252_s24 = sphi %s6303_s24, %s10477_s24   ;;  %s6248_s23 = sphi %s6301_s23, %s10476_s23   ;;  %s6244_s22 = sphi %s6299_s22, %s10475_s22   ;;  %s6240_s21 = sphi %s6297_s21, %s10474_s21  }
   0x7   : > { %p43_p0 = scmp.ne.s32.totalorder %s6244_s22, %s6240_s21  ;;  %p10010_p1 = scmp.eq.s32.totalorder %s6318_s25, 0 }
   0x8   : > { %p178_p3 = scmp.eq.s32.totalorder %s5608_s26, 1  ;;  %p5609_p5 = scmp.ge.s32.totalorder %s6252_s24, 1 }
   0x9   : > { %p6327_p4 = por %p10010_p1, %p43_p0  ;;  %p185_p7 = scmp.lt.s32.totalorder %s6252_s24, 3 }
   0xa   : > { %p6332_p6 = por %p178_p3, %p43_p0  ;;  %s6254_s30 = smov [#allocation5]  }
   0xb   : > { %s10145_s27 = scalar_select %p6327_p4, 1, 0 }
   0xc   : > { %s10146_s28 = scalar_select %p6332_p6, 1, 0 }
   0xd   : > { %p6337_p8 = pnand %p5609_p5, %p185_p7  ;;  %s203_s7 = sshll.u32 %s6254_s30, 4  ;;  %s6341_s7 = int_to_ptr.vmem [resolvable:$true] %s203_s7 }
   0xe   : > { %s6255_s9 = smov [#allocation7]   ;;  %s6096_s13 = scalar_lea.hbm %s10006_s3, 1024 }
   0xf   : > { %p5840_p9 = pneg %p6337_p8  ;;  %s219_s10 = sshll.u32 %s6255_s9, 4  ;;  %s6352_s10 = int_to_ptr.vmem [resolvable:$true] %s219_s10 }
  0x10   : > { %p6097_p12 = scmp.ne.s32.totalorder %s10006_s3, %s6096_s13  ;;  %p6103_p5 = scmp.lt.u32.totalorder %s6096_s13, %s10006_s3 }
  0x11   : > { %p6348_p11 = pnand %p5840_p9, %p10010_p1 }
  0x13   : > { %p6098_p13 = pneg %p6348_p11 }
  0x15   : > { %p6099_p0 = pnand %p6098_p13, %p6097_p12 }
  0x17   : > { %p6100_p3 = pneg %p6099_p0 }
  0x19   : > { %p6105_p7 = pnand %p6103_p5, %p6100_p3 }
  0x1b   : > { %6108 = shalt.err (!%p6105_p7)
}
  0x1c   : > { %s6109_s18 = scalar_lea.vmem %s6341_s7, 1024  ;;  %p6117_p2 = scmp.lt.s32.totalorder %s6341_s7, %s6341_s7 }
  0x1d   : > { %p6110_p9 = scmp.ne.s32.totalorder %s6341_s7, %s6109_s18  ;;  %p6118_p12 = scmp.lt.s32.totalorder %s6109_s18, %s6109_s18 }
  0x1f   : > { %p6112_p10 = pnand %p6110_p9, %p6098_p13  ;;  %p6119_p0 = por %p6118_p12, %p6117_p2 }
  0x21   : > { %p6113_p1 = pneg %p6112_p10 }
  0x23   : > { %p6120_p6 = pnand %p6119_p0, %p6113_p1 }
  0x25   : > { %6123 = shalt.err (!%p6120_p6)
}
  0x26   : > { %s6256_s19 = smov 128   ;;  %s6257_s20 = smov 8  }
  0x27   : > { %5843 = dma.hbm_to_vmem [thread:$0]  (!%p6348_p11), %s10006_s3, 1024, %s6341_s7, [#allocation6], %s6256_s19, %s6256_s19, %s6257_s20  }
  0x28   : > { %s6124_s12 = scalar_lea.hbm %s10008_s5, 384 }
  0x29   : > { %p6125_p1 = scmp.ne.s32.totalorder %s10008_s5, %s6124_s12  ;;  %p6131_p10 = scmp.lt.u32.totalorder %s6124_s12, %s10008_s5 }
  0x2b   : > { %p6127_p2 = pnand %p6125_p1, %p6098_p13 }
  0x2d   : > { %p6128_p6 = pneg %p6127_p2 }
  0x2f   : > { %p6133_p3 = pnand %p6131_p10, %p6128_p6 }
  0x31   : > { %6136 = shalt.err (!%p6133_p3)
}
  0x32   : > { %s6137_s7 = scalar_lea.vmem %s6352_s10, 384  ;;  %p6145_p12 = scmp.lt.s32.totalorder %s6352_s10, %s6352_s10 }
  0x33   : > { %p6138_p5 = scmp.ne.s32.totalorder %s6352_s10, %s6137_s7  ;;  %p6146_p0 = scmp.lt.s32.totalorder %s6137_s7, %s6137_s7 }
  0x35   : > { %p6140_p7 = pnand %p6138_p5, %p6098_p13  ;;  %p6147_p1 = por %p6146_p0, %p6145_p12 }
  0x37   : > { %p6141_p9 = pneg %p6140_p7 }
  0x39   : > { %p6148_p2 = pnand %p6147_p1, %p6141_p9 }
  0x3b   : > { %6151 = shalt.err (!%p6148_p2)
}
  0x3c   : > { %5846 = dma.hbm_to_vmem [thread:$0]  (!%p6348_p11), %s10008_s5, 384, %s6352_s10, [#allocation6], %s6256_s19, %s6256_s19, %s6257_s20  }
  0x3d   : > { %s6413_s8 = sadd.s32 1, %s6252_s24   ;;  %s30_s26 = sadd.s32 1, %s6248_s23 }
  0x3e   : > { %s27_s30 = ssub.s32 %s6252_s24, %s6413_s8  ;;  %p37_p13 = scmp.ne.s32.totalorder %s6248_s23, %s6244_s22 }
  0x3f   : > { %p28_p6 = scmp.eq.s32.totalorder %s27_s30, 0  ;;  %p38_p10 = scmp.eq.s32.totalorder %s6252_s24, 0 }
  0x40   : > { %p10149_p3 = scmp.eq.s32.totalorder %s6318_s25, 1  ;;  %p5857_p7 = scmp.lt.s32.totalorder %s6252_s24, 2 }
  0x41   : > { %s6429_s11 = scalar_select %p28_p6, %s6248_s23, %s30_s26  }
  0x42   : > { %p6423_p5 = por %p10149_p3, %p37_p13  ;;  %p39_p9 = por %p38_p10, %p37_p13 }
  0x43   : > { %s233_s12 = sand.u32 1, %s6248_s23   ;;  %s5697_s10 = sshll.u32 %s6252_s24, 12 }
  0x44   : > { %s10150_s9 = scalar_select %p6423_p5, 1, 0 }
  0x45   : > { %s5613_s13 = sshll.u32 %s233_s12, 8  ;;  %s6436_s16 = scalar_lea.hbm %s10003_s0, %s5697_s10 }
  0x46   : > { %s237_s7 = scalar_lea.vmem [#allocation2], %s5613_s13  ;;  %p6440_p11 = pnand %p5857_p7, %p39_p9 }
  0x47   : > { %s245_s17 = sshll.u32 %s237_s7, 4  ;;  %s6444_s26 = scalar_lea.sflag [#allocation3], %s233_s12  ;;  %s6438_s17 = int_to_ptr.vmem [resolvable:$true] %s245_s17 }
  0x48   : > { %s6152_s30 = scalar_lea.hbm %s6436_s16, 4096  ;;  %p6154_p0 = pneg %p6440_p11 }
  0x49   : > { %p6153_p12 = scmp.ne.s32.totalorder %s6436_s16, %s6152_s30  ;;  %s6157_s14 = scalar_lea.hbm %s10003_s0, 8192 }
  0x4a   : > { %p6158_p13 = scmp.lt.u32.totalorder %s6436_s16, %s10003_s0  ;;  %p6159_p6 = scmp.lt.u32.totalorder %s6157_s14, %s6152_s30 }
  0x4b   : > { %p6155_p1 = pnand %p6154_p0, %p6153_p12  ;;  %p6161_p3 = scmp.lt.u32.totalorder %s6152_s30, %s6436_s16 }
  0x4c   : > { %p6160_p10 = por %p6159_p6, %p6158_p13 }
  0x4d   : > { %p6156_p2 = pneg %p6155_p1 }
  0x4e   : > { %p6162_p7 = por %p6161_p3, %p6160_p10 }
  0x50   : > { %p6163_p9 = pnand %p6162_p7, %p6156_p2 }
  0x52   : > { %6166 = shalt.err (!%p6163_p9)
}
  0x53   : > { %s6167_s12 = scalar_lea.vmem %s6438_s17, 4096  ;;  %s6258_s13 = smov [#allocation2]  }
  0x54   : > { %p6168_p12 = scmp.ne.s32.totalorder %s6438_s17, %s6167_s12  ;;  %s6172_s10 = sshll.u32 %s6258_s13, 4  ;;  %s6173_s10 = int_to_ptr.vmem [resolvable:$false] %s6172_s10 }
  0x55   : > { %s6174_s15 = scalar_lea.vmem %s6173_s10, 8192  ;;  %p6175_p4 = scmp.lt.s32.totalorder %s6438_s17, %s6173_s10 }
  0x56   : > { %p6170_p1 = pnand %p6168_p12, %p6154_p0  ;;  %p6176_p13 = scmp.lt.s32.totalorder %s6174_s15, %s6167_s12 }
  0x58   : > { %p6171_p5 = pneg %p6170_p1  ;;  %p6177_p6 = por %p6176_p13, %p6175_p4 }
  0x5a   : > { %p6178_p10 = pnand %p6177_p6, %p6171_p5 }
  0x5c   : > { %6181 = shalt.err (!%p6178_p10)
}
  0x5d   : > { %5850 = dma.hbm_to_vmem [thread:$0]  (!%p6440_p11), %s6436_s16, 4096, %s6438_s17, %s6444_s26, %s6256_s19, %s6256_s19, %s6257_s20  }
  0x5e   : > { %257 = sbr.rel (%p6337_p8) target bundleno = 1189 (0x4a5), region = 44 }
  0x65   : > { %s6478_s30 = sand.u32 1, %s6244_s22   ;;  %p10152_p4 = scmp.ne.s32.totalorder %s10145_s27, 0 }
  0x66   : > { %s5618_s14 = sshll.u32 %s6478_s30, 8  ;;  %s260_s7 = scalar_lea.sflag [#allocation3], %s6478_s30 }
  0x67   : > { %s6484_s18 = scalar_lea.vmem [#allocation2], %s5618_s14 }
  0x68   : > { %6227 = dma.done.wait (%p10152_p4), %s260_s7, 4096  }
  0x69   : > { %6229 = vsyncadd (%p10152_p4), %s260_s7, 4294963200  ;;  %p10153_p5 = scmp.eq.s32.totalorder %s6318_s25, 0 }
  0x6b   : > { %6231 = dma.done.wait (%p10153_p5), [#allocation6], 1408   ;;  %p10154_p8 = pmov %p10153_p5 }
  0x6c   : > { %vm334_vm0 = vcmask 523264   ;;  %v6495_v0 = vld [vmem:[%s6484_s18] sm:$0xff]  ;;  %v6498_v1 = vld [vmem:[%s6484_s18 + $0x8] sm:$0xff]  ;;  %v6515_v8 = vld [vmem:[%s6484_s18 + $0x10] sm:$0xff]  ;;  %s7541_s26 = scalar_lea.vmem [#allocation8], %s5618_s14  ;;  %s5699_s14 = sshll.u32 %s6318_s25, 12 }
  0x6d   : > { %6233 = vsyncadd (%p10154_p8), [#allocation6], 4294965888  ;;  %v6501_v2 = vld [vmem:[%s6484_s18 + $0x80] sm:$0xff]  ;;  %v335_v3 = vsel %vm334_vm0, %v6495_v0, 0.0  ;;  %v338_v4 = vsel %vm334_vm0, %v6498_v1, 0.0  ;;  %v6508_v5 = vld [vmem:[%s6484_s18 + $0x88] sm:$0xff]  ;;  %s9954_s29 = scalar_lea.hbm %s10009_s6, %s5699_s14 }
  0x6e   : > { %336 = vadd.xlane.f32.xlu0 %v335_v3  ;;  %339 = vadd.xlane.f32.xlu1 %v338_v4  ;;  %v383_v6 = vsel %vm334_vm0, %v6501_v2, 0.0  ;;  %v386_v7 = vsel %vm334_vm0, %v6508_v5, 0.0  ;;  %v6518_v9 = vld [vmem:[%s6484_s18 + $0x90] sm:$0xff]  ;;  %v341_v10 = vsel %vm334_vm0, %v6515_v8, 0.0  ;;  %v6525_v12 = vld [vmem:[%s6484_s18 + $0x18] sm:$0xff]  ;;  %v6535_v16 = vld [vmem:[%s6484_s18 + $0x20] sm:$0xff] }
  0x6f   : > { %v389_v11 = vsel %vm334_vm0, %v6518_v9, 0.0  ;;  %v6528_v13 = vld [vmem:[%s6484_s18 + $0x98] sm:$0xff]  ;;  %v344_v14 = vsel %vm334_vm0, %v6525_v12, 0.0  ;;  %v6538_v17 = vld [vmem:[%s6484_s18 + $0xa0] sm:$0xff]  ;;  %v347_v18 = vsel %vm334_vm0, %v6535_v16, 0.0  ;;  %v6545_v20 = vld [vmem:[%s6484_s18 + $0x28] sm:$0xff] }
  0x70   : > { %v392_v15 = vsel %vm334_vm0, %v6528_v13, 0.0  ;;  %v395_v19 = vsel %vm334_vm0, %v6538_v17, 0.0  ;;  %v6548_v21 = vld [vmem:[%s6484_s18 + $0xa8] sm:$0xff]  ;;  %v350_v22 = vsel %vm334_vm0, %v6545_v20, 0.0  ;;  %v6555_v24 = vld [vmem:[%s6484_s18 + $0x30] sm:$0xff]  ;;  %v6565_v28 = vld [vmem:[%s6484_s18 + $0x38] sm:$0xff] }
  0x71   : > { %v398_v23 = vsel %vm334_vm0, %v6548_v21, 0.0  ;;  %v6558_v25 = vld [vmem:[%s6484_s18 + $0xb0] sm:$0xff]  ;;  %v353_v26 = vsel %vm334_vm0, %v6555_v24, 0.0  ;;  %v6568_v29 = vld [vmem:[%s6484_s18 + $0xb8] sm:$0xff]  ;;  %v356_v30 = vsel %vm334_vm0, %v6565_v28, 0.0  ;;  %v6575_v32 = vld [vmem:[%s6484_s18 + $0x40] sm:$0xff] }
  0x72   : > { %384 = vadd.xlane.f32.xlu0 %v383_v6  ;;  %387 = vadd.xlane.f32.xlu1 %v386_v7  ;;  %v401_v27 = vsel %vm334_vm0, %v6558_v25, 0.0  ;;  %v404_v31 = vsel %vm334_vm0, %v6568_v29, 0.0  ;;  %v6578_v33 = vld [vmem:[%s6484_s18 + $0xc0] sm:$0xff]  ;;  %v359_v34 = vsel %vm334_vm0, %v6575_v32, 0.0  ;;  %v6585_v36 = vld [vmem:[%s6484_s18 + $0x48] sm:$0xff]  ;;  %v6595_v40 = vld [vmem:[%s6484_s18 + $0x50] sm:$0xff] }
  0x73   : > { %v407_v35 = vsel %vm334_vm0, %v6578_v33, 0.0  ;;  %v6588_v37 = vld [vmem:[%s6484_s18 + $0xc8] sm:$0xff]  ;;  %v362_v38 = vsel %vm334_vm0, %v6585_v36, 0.0  ;;  %v6598_v41 = vld [vmem:[%s6484_s18 + $0xd0] sm:$0xff]  ;;  %v365_v42 = vsel %vm334_vm0, %v6595_v40, 0.0  ;;  %v6605_v44 = vld [vmem:[%s6484_s18 + $0x58] sm:$0xff] }
  0x74   : > { %v410_v39 = vsel %vm334_vm0, %v6588_v37, 0.0  ;;  %v413_v43 = vsel %vm334_vm0, %v6598_v41, 0.0  ;;  %v6608_v45 = vld [vmem:[%s6484_s18 + $0xd8] sm:$0xff]  ;;  %v368_v46 = vsel %vm334_vm0, %v6605_v44, 0.0  ;;  %v6615_v48 = vld [vmem:[%s6484_s18 + $0x60] sm:$0xff]  ;;  %v6625_v52 = vld [vmem:[%s6484_s18 + $0x68] sm:$0xff] }
  0x75   : > { %v416_v47 = vsel %vm334_vm0, %v6608_v45, 0.0  ;;  %v6618_v49 = vld [vmem:[%s6484_s18 + $0xe0] sm:$0xff]  ;;  %v371_v50 = vsel %vm334_vm0, %v6615_v48, 0.0  ;;  %v6628_v53 = vld [vmem:[%s6484_s18 + $0xe8] sm:$0xff]  ;;  %v374_v54 = vsel %vm334_vm0, %v6625_v52, 0.0  ;;  %v6635_v56 = vld [vmem:[%s6484_s18 + $0x70] sm:$0xff] }
  0x76   : > { %342 = vadd.xlane.f32.xlu0 %v341_v10  ;;  %390 = vadd.xlane.f32.xlu1 %v389_v11  ;;  %v419_v51 = vsel %vm334_vm0, %v6618_v49, 0.0  ;;  %v422_v55 = vsel %vm334_vm0, %v6628_v53, 0.0  ;;  %v6638_v57 = vld [vmem:[%s6484_s18 + $0xf0] sm:$0xff]  ;;  %v377_v58 = vsel %vm334_vm0, %v6635_v56, 0.0  ;;  %v6645_v60 = vld [vmem:[%s6484_s18 + $0x78] sm:$0xff]  ;;  %s5516_s7 = sshll.u32 %s7541_s26, 4  ;;  %s9956_s7 = int_to_ptr.vmem [resolvable:$true] %s5516_s7 }
  0x77   : > { %v425_v59 = vsel %vm334_vm0, %v6638_v57, 0.0  ;;  %v6648_v61 = vld [vmem:[%s6484_s18 + $0xf8] sm:$0xff]  ;;  %v380_v62 = vsel %vm334_vm0, %v6645_v60, 0.0  ;;  %s5502_s25 = scalar_lea.sflag [#allocation4], %s6478_s30  ;;  %s6182_s19 = scalar_lea.vmem %s9956_s7, 4096 }
  0x78   : > { %v428_v63 = vsel %vm334_vm0, %v6648_v61, 0.0  ;;  %p6183_p11 = scmp.ne.s32.totalorder %s9956_s7, %s6182_s19  ;;  %p10471_p0 = scmp.ne.s32.totalorder %s10150_s9, 0 }
  0x79   : > { %s6259_s20 = smov [#allocation8]  }
  0x7a   : > { %345 = vadd.xlane.f32.xlu0 %v344_v14  ;;  %393 = vadd.xlane.f32.xlu1 %v392_v15  ;;  %p6184_p2 = pnand %p6183_p11, %p10471_p0  ;;  %s6186_s16 = sshll.u32 %s6259_s20, 4  ;;  %s6187_s16 = int_to_ptr.vmem [resolvable:$false] %s6186_s16 }
  0x7b   : > { %s6188_s17 = scalar_lea.vmem %s6187_s16, 8192  ;;  %p6189_p7 = scmp.lt.s32.totalorder %s9956_s7, %s6187_s16 }
  0x7c   : > { %p6185_p3 = pneg %p6184_p2  ;;  %p6190_p9 = scmp.lt.s32.totalorder %s6188_s17, %s6182_s19 }
  0x7e   : > { %348 = vadd.xlane.f32.xlu0 %v347_v18  ;;  %396 = vadd.xlane.f32.xlu1 %v395_v19  ;;  %p6191_p12 = por %p6190_p9, %p6189_p7 }
  0x80   : > { %p6192_p1 = pnand %p6191_p12, %p6185_p3 }
  0x82   : > { %351 = vadd.xlane.f32.xlu0 %v350_v22  ;;  %399 = vadd.xlane.f32.xlu1 %v398_v23 }
  0x86   : > { %354 = vadd.xlane.f32.xlu0 %v353_v26  ;;  %402 = vadd.xlane.f32.xlu1 %v401_v27 }
  0x8a   : > { %357 = vadd.xlane.f32.xlu0 %v356_v30  ;;  %405 = vadd.xlane.f32.xlu1 %v404_v31 }
  0x8e   : > { %360 = vadd.xlane.f32.xlu0 %v359_v34  ;;  %408 = vadd.xlane.f32.xlu1 %v407_v35 }
  0x92   : > { %363 = vadd.xlane.f32.xlu0 %v362_v38  ;;  %411 = vadd.xlane.f32.xlu1 %v410_v39 }
  0x96   : > { %366 = vadd.xlane.f32.xlu0 %v365_v42  ;;  %414 = vadd.xlane.f32.xlu1 %v413_v43 }
  0x9a   : > { %369 = vadd.xlane.f32.xlu0 %v368_v46  ;;  %417 = vadd.xlane.f32.xlu1 %v416_v47 }
  0x9e   : > { %372 = vadd.xlane.f32.xlu0 %v371_v50  ;;  %420 = vadd.xlane.f32.xlu1 %v419_v51 }
  0xa2   : > { %375 = vadd.xlane.f32.xlu0 %v374_v54  ;;  %423 = vadd.xlane.f32.xlu1 %v422_v55 }
  0xa6   : > { %378 = vadd.xlane.f32.xlu0 %v377_v58  ;;  %426 = vadd.xlane.f32.xlu1 %v425_v59 }
  0xaa   : > { %381 = vadd.xlane.f32.xlu0 %v380_v62  ;;  %429 = vadd.xlane.f32.xlu1 %v428_v63 }
  0xfb   : > { %v337_v3 = vpop.xlane.xlu0 %336  ;;  %v340_v4 = vpop.xlane.xlu1 %339 }
  0xfc   : > { %v432_v6 = vmul.f32 0.015625, %v337_v3  ;;  %v433_v7 = vmul.f32 0.015625, %v340_v4 }
  0xfe   : > { %v6655_v10 = vsub.f32 %v6495_v0, %v432_v6  ;;  %v6658_v11 = vsub.f32 %v6498_v1, %v433_v7 }
  0xff   : > { %v385_v14 = vpop.xlane.xlu0 %384  ;;  %v388_v15 = vpop.xlane.xlu1 %387 }
 0x100   : > { %v448_v18 = vmul.f32 0.015625, %v385_v14  ;;  %v449_v19 = vmul.f32 0.015625, %v388_v15  ;;  %v496_v22 = vmul.f32 %v6655_v10, %v6655_v10  ;;  %v497_v23 = vmul.f32 %v6658_v11, %v6658_v11 }
 0x102   : > { %v6665_v26 = vsub.f32 %v6501_v2, %v448_v18  ;;  %v6668_v27 = vsub.f32 %v6508_v5, %v449_v19  ;;  %v528_v0 = vsel %vm334_vm0, %v496_v22, 0.0  ;;  %v531_v31 = vsel %vm334_vm0, %v497_v23, 0.0 }
 0x103   : > { %529 = vadd.xlane.f32.xlu0 %v528_v0  ;;  %v343_v1 = vpop.xlane.xlu0 %342  ;;  %v391_v30 = vpop.xlane.xlu1 %390 }
 0x104   : > { %v434_v34 = vmul.f32 0.015625, %v343_v1  ;;  %v450_v35 = vmul.f32 0.015625, %v391_v30  ;;  %v512_v38 = vmul.f32 %v6665_v26, %v6665_v26  ;;  %v513_v39 = vmul.f32 %v6668_v27, %v6668_v27 }
 0x106   : > { %v6677_v2 = vsub.f32 %v6515_v8, %v434_v34  ;;  %v6680_v5 = vsub.f32 %v6518_v9, %v450_v35  ;;  %v576_v42 = vsel %vm334_vm0, %v512_v38, 0.0  ;;  %v579_v47 = vsel %vm334_vm0, %v513_v39, 0.0 }
 0x107   : > { %532 = vadd.xlane.f32.xlu0 %v531_v31  ;;  %577 = vadd.xlane.f32.xlu1 %v576_v42  ;;  %v346_v43 = vpop.xlane.xlu0 %345  ;;  %v394_v46 = vpop.xlane.xlu1 %393 }
 0x108   : > { %v435_v50 = vmul.f32 0.015625, %v346_v43  ;;  %v451_v51 = vmul.f32 0.015625, %v394_v46  ;;  %v498_v54 = vmul.f32 %v6677_v2, %v6677_v2  ;;  %v514_v8 = vmul.f32 %v6680_v5, %v6680_v5 }
 0x10a   : > { %v6689_v55 = vsub.f32 %v6525_v12, %v435_v50  ;;  %v6692_v9 = vsub.f32 %v6528_v13, %v451_v51  ;;  %v534_v58 = vsel %vm334_vm0, %v498_v54, 0.0  ;;  %v582_v63 = vsel %vm334_vm0, %v514_v8, 0.0 }
 0x10b   : > { %580 = vadd.xlane.f32.xlu1 %v579_v47  ;;  %535 = vadd.xlane.f32.xlu0 %v534_v58  ;;  %v349_v59 = vpop.xlane.xlu0 %348  ;;  %v397_v62 = vpop.xlane.xlu1 %396 }
 0x10c   : > { %v436_v3 = vmul.f32 0.015625, %v349_v59  ;;  %v452_v4 = vmul.f32 0.015625, %v397_v62  ;;  %v499_v6 = vmul.f32 %v6689_v55, %v6689_v55  ;;  %v515_v12 = vmul.f32 %v6692_v9, %v6692_v9  ;;  %v830_v59 = vld [vmem:[#allocation5] sm:$0xff]  ;;  %v831_v62 = vld [vmem:[#allocation5 + $0x8] sm:$0xff] }
 0x10e   : > { %v6701_v7 = vsub.f32 %v6535_v16, %v436_v3  ;;  %v6704_v13 = vsub.f32 %v6538_v17, %v452_v4  ;;  %v537_v14 = vsel %vm334_vm0, %v499_v6, 0.0  ;;  %v585_v19 = vsel %vm334_vm0, %v515_v12, 0.0 }
 0x10f   : > { %583 = vadd.xlane.f32.xlu1 %v582_v63  ;;  %538 = vadd.xlane.f32.xlu0 %v537_v14  ;;  %v352_v15 = vpop.xlane.xlu0 %351  ;;  %v400_v18 = vpop.xlane.xlu1 %399 }
 0x110   : > { %v437_v22 = vmul.f32 0.015625, %v352_v15  ;;  %v453_v23 = vmul.f32 0.015625, %v400_v18  ;;  %v500_v0 = vmul.f32 %v6701_v7, %v6701_v7  ;;  %v516_v16 = vmul.f32 %v6704_v13, %v6704_v13 }
 0x112   : > { %v6713_v1 = vsub.f32 %v6545_v20, %v437_v22  ;;  %v6716_v17 = vsub.f32 %v6548_v21, %v453_v23  ;;  %v540_v30 = vsel %vm334_vm0, %v500_v0, 0.0  ;;  %v588_v35 = vsel %vm334_vm0, %v516_v16, 0.0  ;;  %v833_v22 = vld [vmem:[#allocation5 + $0x18] sm:$0xff] }
 0x113   : > { %586 = vadd.xlane.f32.xlu1 %v585_v19  ;;  %541 = vadd.xlane.f32.xlu0 %v540_v30  ;;  %v355_v31 = vpop.xlane.xlu0 %354  ;;  %v403_v34 = vpop.xlane.xlu1 %402 }
 0x114   : > { %v438_v38 = vmul.f32 0.015625, %v355_v31  ;;  %v454_v39 = vmul.f32 0.015625, %v403_v34  ;;  %v501_v42 = vmul.f32 %v6713_v1, %v6713_v1  ;;  %v517_v20 = vmul.f32 %v6716_v17, %v6716_v17 }
 0x116   : > { %v6725_v43 = vsub.f32 %v6555_v24, %v438_v38  ;;  %v6728_v21 = vsub.f32 %v6558_v25, %v454_v39  ;;  %v543_v46 = vsel %vm334_vm0, %v501_v42, 0.0  ;;  %v591_v51 = vsel %vm334_vm0, %v517_v20, 0.0  ;;  %v835_v20 = vld [vmem:[#allocation5 + $0x28] sm:$0xff] }
 0x117   : > { %589 = vadd.xlane.f32.xlu1 %v588_v35  ;;  %544 = vadd.xlane.f32.xlu0 %v543_v46  ;;  %v358_v47 = vpop.xlane.xlu0 %357  ;;  %v406_v50 = vpop.xlane.xlu1 %405  ;;  %v5804_v25 = vpack.c.bf16 %v831_v62, %v830_v59 }
 0x118   : > { %v439_v54 = vmul.f32 0.015625, %v358_v47  ;;  %v455_v8 = vmul.f32 0.015625, %v406_v50  ;;  %v502_v58 = vmul.f32 %v6725_v43, %v6725_v43  ;;  %v518_v24 = vmul.f32 %v6728_v21, %v6728_v21 }
 0x119   : > { %5805 = vmatprep.subr.bf16.mxu0 %v5804_v25  ;;  %5820 = vmatprep.subr.bf16.mxu1 %v5804_v25 }
 0x11a   : > { %v6737_v63 = vsub.f32 %v6565_v28, %v439_v54  ;;  %v6740_v3 = vsub.f32 %v6568_v29, %v455_v8  ;;  %v546_v4 = vsel %vm334_vm0, %v502_v58, 0.0  ;;  %v594_v14 = vsel %vm334_vm0, %v518_v24, 0.0  ;;  %v832_v29 = vld [vmem:[#allocation5 + $0x10] sm:$0xff]  ;;  %5807 = vmatpush3.bf16.msra.mxu0 %v5804_v25  ;;  %5824 = vmatpush3.bf16.msra.mxu1 %v5804_v25  ;;  %v837_v25 = vld [vmem:[#allocation5 + $0x38] sm:$0xff] }
 0x11b   : > { %592 = vadd.xlane.f32.xlu1 %v591_v51  ;;  %547 = vadd.xlane.f32.xlu0 %v546_v4  ;;  %v361_v6 = vpop.xlane.xlu0 %360  ;;  %v409_v12 = vpop.xlane.xlu1 %408  ;;  %v5808_v23 = vpack.c.bf16 %v833_v22, %v832_v29 }
 0x11c   : > { %v440_v15 = vmul.f32 0.015625, %v361_v6  ;;  %v456_v18 = vmul.f32 0.015625, %v409_v12  ;;  %v503_v19 = vmul.f32 %v6737_v63, %v6737_v63  ;;  %v519_v28 = vmul.f32 %v6740_v3, %v6740_v3 }
 0x11d   : > { %5809 = vmatprep.subr.bf16.mxu0 %v5808_v23  ;;  %5821 = vmatprep.subr.bf16.mxu1 %v5808_v23 }
 0x11e   : > { %v6749_v0 = vsub.f32 %v6575_v32, %v440_v15  ;;  %v6752_v16 = vsub.f32 %v6578_v33, %v456_v18  ;;  %v549_v30 = vsel %vm334_vm0, %v503_v19, 0.0  ;;  %v597_v35 = vsel %vm334_vm0, %v519_v28, 0.0  ;;  %v834_v33 = vld [vmem:[#allocation5 + $0x20] sm:$0xff]  ;;  %5811 = vmatpush3.bf16.msra.mxu0 %v5808_v23  ;;  %5825 = vmatpush3.bf16.msra.mxu1 %v5808_v23 }
 0x11f   : > { %595 = vadd.xlane.f32.xlu1 %v594_v14  ;;  %550 = vadd.xlane.f32.xlu0 %v549_v30  ;;  %v364_v31 = vpop.xlane.xlu0 %363  ;;  %v412_v34 = vpop.xlane.xlu1 %411  ;;  %v5812_v46 = vpack.c.bf16 %v835_v20, %v834_v33 }
 0x120   : > { %v441_v38 = vmul.f32 0.015625, %v364_v31  ;;  %v457_v39 = vmul.f32 0.015625, %v412_v34  ;;  %v504_v42 = vmul.f32 %v6749_v0, %v6749_v0  ;;  %v520_v32 = vmul.f32 %v6752_v16, %v6752_v16 }
 0x121   : > { %5813 = vmatprep.subr.bf16.mxu0 %v5812_v46  ;;  %5822 = vmatprep.subr.bf16.mxu1 %v5812_v46 }
 0x122   : > { %v6761_v47 = vsub.f32 %v6585_v36, %v441_v38  ;;  %v6764_v50 = vsub.f32 %v6588_v37, %v457_v39  ;;  %v552_v51 = vsel %vm334_vm0, %v504_v42, 0.0  ;;  %v600_v58 = vsel %vm334_vm0, %v520_v32, 0.0  ;;  %v836_v37 = vld [vmem:[#allocation5 + $0x30] sm:$0xff]  ;;  %5815 = vmatpush3.bf16.msra.mxu0 %v5812_v46  ;;  %5826 = vmatpush3.bf16.msra.mxu1 %v5812_v46 }
 0x123   : > { %598 = vadd.xlane.f32.xlu1 %v597_v35  ;;  %553 = vadd.xlane.f32.xlu0 %v552_v51  ;;  %v367_v54 = vpop.xlane.xlu0 %366  ;;  %v415_v8 = vpop.xlane.xlu1 %414  ;;  %v5816_v4 = vpack.c.bf16 %v837_v25, %v836_v37 }
 0x124   : > { %v442_v24 = vmul.f32 0.015625, %v367_v54  ;;  %v458_v59 = vmul.f32 0.015625, %v415_v8  ;;  %v505_v62 = vmul.f32 %v6761_v47, %v6761_v47  ;;  %v521_v36 = vmul.f32 %v6764_v50, %v6764_v50 }
 0x125   : > { %5817 = vmatprep.subr.bf16.mxu0 %v5816_v4  ;;  %5823 = vmatprep.subr.bf16.mxu1 %v5816_v4 }
 0x126   : > { %v6773_v6 = vsub.f32 %v6595_v40, %v442_v24  ;;  %v6776_v12 = vsub.f32 %v6598_v41, %v458_v59  ;;  %v555_v14 = vsel %vm334_vm0, %v505_v62, 0.0  ;;  %v603_v19 = vsel %vm334_vm0, %v521_v36, 0.0  ;;  %5819 = vmatpush3.bf16.msra.mxu0 %v5816_v4  ;;  %5827 = vmatpush3.bf16.msra.mxu1 %v5816_v4 }
 0x127   : > { %601 = vadd.xlane.f32.xlu1 %v600_v58  ;;  %556 = vadd.xlane.f32.xlu0 %v555_v14  ;;  %v370_v15 = vpop.xlane.xlu0 %369  ;;  %v418_v18 = vpop.xlane.xlu1 %417 }
 0x128   : > { %v443_v28 = vmul.f32 0.015625, %v370_v15  ;;  %v459_v29 = vmul.f32 0.015625, %v418_v18  ;;  %v506_v22 = vmul.f32 %v6773_v6, %v6773_v6  ;;  %v522_v40 = vmul.f32 %v6776_v12, %v6776_v12 }
 0x12a   : > { %v6785_v41 = vsub.f32 %v6605_v44, %v443_v28  ;;  %v6788_v23 = vsub.f32 %v6608_v45, %v459_v29  ;;  %v558_v30 = vsel %vm334_vm0, %v506_v22, 0.0  ;;  %v606_v35 = vsel %vm334_vm0, %v522_v40, 0.0 }
 0x12b   : > { %604 = vadd.xlane.f32.xlu1 %v603_v19  ;;  %559 = vadd.xlane.f32.xlu0 %v558_v30  ;;  %v373_v31 = vpop.xlane.xlu0 %372  ;;  %v421_v34 = vpop.xlane.xlu1 %420 }
 0x12c   : > { %v444_v38 = vmul.f32 0.015625, %v373_v31  ;;  %v460_v39 = vmul.f32 0.015625, %v421_v34  ;;  %v507_v42 = vmul.f32 %v6785_v41, %v6785_v41  ;;  %v523_v44 = vmul.f32 %v6788_v23, %v6788_v23 }
 0x12e   : > { %v6797_v32 = vsub.f32 %v6615_v48, %v444_v38  ;;  %v6800_v45 = vsub.f32 %v6618_v49, %v460_v39  ;;  %v561_v33 = vsel %vm334_vm0, %v507_v42, 0.0  ;;  %v609_v51 = vsel %vm334_vm0, %v523_v44, 0.0 }
 0x12f   : > { %607 = vadd.xlane.f32.xlu1 %v606_v35  ;;  %562 = vadd.xlane.f32.xlu0 %v561_v33  ;;  %v376_v20 = vpop.xlane.xlu0 %375  ;;  %v424_v46 = vpop.xlane.xlu1 %423 }
 0x130   : > { %v445_v54 = vmul.f32 0.015625, %v376_v20  ;;  %v461_v8 = vmul.f32 0.015625, %v424_v46  ;;  %v508_v58 = vmul.f32 %v6797_v32, %v6797_v32  ;;  %v524_v48 = vmul.f32 %v6800_v45, %v6800_v45 }
 0x132   : > { %v6809_v24 = vsub.f32 %v6625_v52, %v445_v54  ;;  %v6812_v49 = vsub.f32 %v6628_v53, %v461_v8  ;;  %v564_v59 = vsel %vm334_vm0, %v508_v58, 0.0  ;;  %v612_v37 = vsel %vm334_vm0, %v524_v48, 0.0 }
 0x133   : > { %610 = vadd.xlane.f32.xlu1 %v609_v51  ;;  %565 = vadd.xlane.f32.xlu0 %v564_v59  ;;  %v379_v62 = vpop.xlane.xlu0 %378  ;;  %v427_v36 = vpop.xlane.xlu1 %426 }
 0x134   : > { %v446_v25 = vmul.f32 0.015625, %v379_v62  ;;  %v462_v4 = vmul.f32 0.015625, %v427_v36  ;;  %v509_v14 = vmul.f32 %v6809_v24, %v6809_v24  ;;  %v525_v52 = vmul.f32 %v6812_v49, %v6812_v49 }
 0x136   : > { %v6821_v15 = vsub.f32 %v6635_v56, %v446_v25  ;;  %v6824_v53 = vsub.f32 %v6638_v57, %v462_v4  ;;  %v567_v18 = vsel %vm334_vm0, %v509_v14, 0.0  ;;  %v615_v29 = vsel %vm334_vm0, %v525_v52, 0.0 }
 0x137   : > { %613 = vadd.xlane.f32.xlu1 %v612_v37  ;;  %568 = vadd.xlane.f32.xlu0 %v567_v18  ;;  %v382_v19 = vpop.xlane.xlu0 %381  ;;  %v430_v28 = vpop.xlane.xlu1 %429 }
 0x138   : > { %v447_v22 = vmul.f32 0.015625, %v382_v19  ;;  %v463_v40 = vmul.f32 0.015625, %v430_v28  ;;  %v510_v30 = vmul.f32 %v6821_v15, %v6821_v15  ;;  %v526_v56 = vmul.f32 %v6824_v53, %v6824_v53 }
 0x13a   : > { %v6833_v31 = vsub.f32 %v6645_v60, %v447_v22  ;;  %v6836_v57 = vsub.f32 %v6648_v61, %v463_v40  ;;  %v570_v34 = vsel %vm334_vm0, %v510_v30, 0.0  ;;  %v618_v35 = vsel %vm334_vm0, %v526_v56, 0.0  ;;  %v6849_v22 = vld [vmem:[%s10004_s1] ss:$0 sm:$0xff] }
 0x13b   : > { %616 = vadd.xlane.f32.xlu1 %v615_v29  ;;  %571 = vadd.xlane.f32.xlu0 %v570_v34 }
 0x13c   : > { %v511_v38 = vmul.f32 %v6833_v31, %v6833_v31  ;;  %v527_v39 = vmul.f32 %v6836_v57, %v6836_v57 }
 0x13e   : > { %v573_v42 = vsel %vm334_vm0, %v511_v38, 0.0  ;;  %v621_v60 = vsel %vm334_vm0, %v527_v39, 0.0  ;;  %v6855_v38 = vld [vmem:[%s10005_s2] ss:$0 sm:$0xff] }
 0x13f   : > { %619 = vadd.xlane.f32.xlu1 %v618_v35  ;;  %574 = vadd.xlane.f32.xlu0 %v573_v42 }
 0x143   : > { %622 = vadd.xlane.f32.xlu1 %v621_v60 }
 0x190   : > { %v530_v61 = vpop.xlane.xlu0 %529 }
 0x191   : > { %v624_v44 = vmul.f32 0.015625, %v530_v61 }
 0x193   : > { %v656_v33 = vadd.f32 1e-05, %v624_v44 }
 0x194   : > { %v578_v20 = vpop.xlane.xlu1 %577  ;;  %v533_v46 = vpop.xlane.xlu0 %532 }
 0x195   : > { %5899 = vrsqrt.f32 %v656_v33  ;;  %v640_v51 = vmul.f32 0.015625, %v578_v20  ;;  %v625_v54 = vmul.f32 0.015625, %v533_v46 }
 0x197   : > { %v672_v8 = vadd.f32 1e-05, %v640_v51  ;;  %v657_v58 = vadd.f32 1e-05, %v625_v54 }
 0x198   : > { %v581_v48 = vpop.xlane.xlu1 %580  ;;  %v536_v59 = vpop.xlane.xlu0 %535 }
 0x199   : > { %5901 = vrsqrt.f32 %v672_v8  ;;  %v641_v62 = vmul.f32 0.015625, %v581_v48  ;;  %v626_v36 = vmul.f32 0.015625, %v536_v59 }
 0x19a   : > { %5903 = vrsqrt.f32 %v657_v58 }
 0x19b   : > { %v673_v37 = vadd.f32 1e-05, %v641_v62  ;;  %v658_v25 = vadd.f32 1e-05, %v626_v36 }
 0x19c   : > { %v584_v4 = vpop.xlane.xlu1 %583  ;;  %v539_v14 = vpop.xlane.xlu0 %538 }
 0x19d   : > { %5905 = vrsqrt.f32 %v673_v37  ;;  %v642_v52 = vmul.f32 0.015625, %v584_v4  ;;  %v627_v18 = vmul.f32 0.015625, %v539_v14 }
 0x19e   : > { %5907 = vrsqrt.f32 %v658_v25 }
 0x19f   : > { %v5900_v19 = vpop.eup %5899  ;;  %v674_v28 = vadd.f32 1e-05, %v642_v52  ;;  %v659_v29 = vadd.f32 1e-05, %v627_v18 }
 0x1a0   : > { %v587_v40 = vpop.xlane.xlu1 %586  ;;  %v542_v30 = vpop.xlane.xlu0 %541  ;;  %v720_v56 = vmul.f32 %v5900_v19, %v6655_v10 }
 0x1a1   : > { %5909 = vrsqrt.f32 %v674_v28  ;;  %v643_v34 = vmul.f32 0.015625, %v587_v40  ;;  %v628_v35 = vmul.f32 0.015625, %v542_v30 }
 0x1a2   : > { %5911 = vrsqrt.f32 %v659_v29  ;;  %v759_v39 = vmul.f32 %v6849_v22, %v720_v56 }
 0x1a3   : > { %v5902_v42 = vpop.eup %5901  ;;  %v675_v60 = vadd.f32 1e-05, %v643_v34  ;;  %v660_v61 = vadd.f32 1e-05, %v628_v35 }
 0x1a4   : > { %v5904_v44 = vpop.eup %5903  ;;  %v590_v33 = vpop.xlane.xlu1 %589  ;;  %v798_v46 = vadd.f32 %v6855_v38, %v759_v39  ;;  %v736_v10 = vmul.f32 %v5902_v42, %v6665_v26 }
 0x1a5   : > { %v545_v20 = vpop.xlane.xlu0 %544  ;;  %5913 = vrsqrt.f32 %v675_v60  ;;  %v644_v51 = vmul.f32 0.015625, %v590_v33  ;;  %v721_v8 = vmul.f32 %v5904_v44, %v6658_v11 }
 0x1a6   : > { %v629_v54 = vmul.f32 0.015625, %v545_v20  ;;  %5915 = vrsqrt.f32 %v660_v61  ;;  %5756 = vmatprep.mubr.msk.f32.mxu0 %vm334_vm0, %v798_v46  ;;  %v775_v58 = vmul.f32 %v6849_v22, %v736_v10 }
 0x1a7   : > { %v5906_v48 = vpop.eup %5905  ;;  %v676_v59 = vadd.f32 1e-05, %v644_v51  ;;  %v760_v36 = vmul.f32 %v6849_v22, %v721_v8 }
 0x1a8   : > { %v661_v62 = vadd.f32 1e-05, %v629_v54  ;;  %v5908_v37 = vpop.eup %5907  ;;  %v593_v25 = vpop.xlane.xlu1 %592  ;;  %v814_v26 = vadd.f32 %v6855_v38, %v775_v58  ;;  %v737_v14 = vmul.f32 %v5906_v48, %v6668_v27 }
 0x1a9   : > { %v548_v4 = vpop.xlane.xlu0 %547  ;;  %5917 = vrsqrt.f32 %v676_v59  ;;  %v645_v52 = vmul.f32 0.015625, %v593_v25  ;;  %v799_v18 = vadd.f32 %v6855_v38, %v760_v36  ;;  %v722_v19 = vmul.f32 %v5908_v37, %v6677_v2 }
 0x1aa   : > { %v630_v11 = vmul.f32 0.015625, %v548_v4  ;;  %5919 = vrsqrt.f32 %v661_v62  ;;  %5780 = vmatprep.mubr.msk.f32.mxu1 %vm334_vm0, %v814_v26  ;;  %v776_v28 = vmul.f32 %v6849_v22, %v737_v14 }
 0x1ab   : > { %v5910_v29 = vpop.eup %5909  ;;  %v677_v40 = vadd.f32 1e-05, %v645_v52  ;;  %5757 = vmatmul.mubr.msk.f32.vlgmr.msra.gmra.mrb[0].mxu0 %vm334_vm0, %v799_v18  ;;  %v761_v35 = vmul.f32 %v6849_v22, %v722_v19 }
 0x1ac   : > { %v662_v30 = vadd.f32 1e-05, %v630_v11  ;;  %v5912_v56 = vpop.eup %5911  ;;  %v596_v34 = vpop.xlane.xlu1 %595  ;;  %v815_v39 = vadd.f32 %v6855_v38, %v776_v28  ;;  %v738_v42 = vmul.f32 %v5910_v29, %v6680_v5 }
 0x1ad   : > { %v551_v27 = vpop.xlane.xlu0 %550  ;;  %5921 = vrsqrt.f32 %v677_v40  ;;  %v646_v60 = vmul.f32 0.015625, %v596_v34  ;;  %v723_v2 = vmul.f32 %v5912_v56, %v6689_v55  ;;  %v800_v44 = vadd.f32 %v6855_v38, %v761_v35 }
 0x1ae   : > { %v631_v61 = vmul.f32 0.015625, %v551_v27  ;;  %5923 = vrsqrt.f32 %v662_v30  ;;  %5781 = vmatmul.mubr.msk.f32.vlgmr.msra.gmra.mrb[0].mxu1 %vm334_vm0, %v815_v39  ;;  %v777_v33 = vmul.f32 %v6849_v22, %v738_v42 }
 0x1af   : > { %v5914_v20 = vpop.eup %5913  ;;  %v678_v46 = vadd.f32 1e-05, %v646_v60  ;;  %v762_v51 = vmul.f32 %v6849_v22, %v723_v2  ;;  %5759 = vmatprep.mubr.msk.f32.mxu0 %vm334_vm0, %v800_v44 }
 0x1b0   : > { %v663_v10 = vadd.f32 1e-05, %v631_v61  ;;  %v5916_v54 = vpop.eup %5915  ;;  %v599_v5 = vpop.xlane.xlu1 %598  ;;  %v816_v58 = vadd.f32 %v6855_v38, %v777_v33  ;;  %v739_v55 = vmul.f32 %v5914_v20, %v6692_v9 }
 0x1b1   : > { %v554_v8 = vpop.xlane.xlu0 %553  ;;  %5925 = vrsqrt.f32 %v678_v46  ;;  %v647_v48 = vmul.f32 0.015625, %v599_v5  ;;  %v801_v62 = vadd.f32 %v6855_v38, %v762_v51  ;;  %v724_v36 = vmul.f32 %v5916_v54, %v6701_v7 }
 0x1b2   : > { %v632_v59 = vmul.f32 0.015625, %v554_v8  ;;  %5927 = vrsqrt.f32 %v663_v10  ;;  %5783 = vmatprep.mubr.msk.f32.mxu1 %vm334_vm0, %v816_v58  ;;  %v778_v37 = vmul.f32 %v6849_v22, %v739_v55 }
 0x1b3   : > { %v5918_v25 = vpop.eup %5917  ;;  %v679_v4 = vadd.f32 1e-05, %v647_v48  ;;  %5760 = vmatmul.mubr.msk.f32.gmra.mrb[2].mxu0 %vm334_vm0, %v801_v62  ;;  %v763_v11 = vmul.f32 %v6849_v22, %v724_v36 }
 0x1b4   : > { %v664_v26 = vadd.f32 1e-05, %v632_v59  ;;  %v5920_v14 = vpop.eup %5919  ;;  %v602_v52 = vpop.xlane.xlu1 %601  ;;  %v817_v18 = vadd.f32 %v6855_v38, %v778_v37  ;;  %v740_v19 = vmul.f32 %v5918_v25, %v6704_v13 }
 0x1b5   : > { %v557_v9 = vpop.xlane.xlu0 %556  ;;  %5929 = vrsqrt.f32 %v679_v4  ;;  %v648_v28 = vmul.f32 0.015625, %v602_v52  ;;  %v725_v7 = vmul.f32 %v5920_v14, %v6713_v1  ;;  %v802_v40 = vadd.f32 %v6855_v38, %v763_v11 }
 0x1b6   : > { %v633_v29 = vmul.f32 0.015625, %v557_v9  ;;  %5931 = vrsqrt.f32 %v664_v26  ;;  %5784 = vmatmul.mubr.msk.f32.gmra.mrb[2].mxu1 %vm334_vm0, %v817_v18  ;;  %v779_v30 = vmul.f32 %v6849_v22, %v740_v19 }
 0x1b7   : > { %v5922_v56 = vpop.eup %5921  ;;  %v680_v34 = vadd.f32 1e-05, %v648_v28  ;;  %v764_v35 = vmul.f32 %v6849_v22, %v725_v7  ;;  %5762 = vmatprep.mubr.msk.f32.mxu0 %vm334_vm0, %v802_v40 }
 0x1b8   : > { %v665_v27 = vadd.f32 1e-05, %v633_v29  ;;  %v5924_v39 = vpop.eup %5923  ;;  %v605_v13 = vpop.xlane.xlu1 %604  ;;  %v818_v60 = vadd.f32 %v6855_v38, %v779_v30  ;;  %v741_v1 = vmul.f32 %v5922_v56, %v6716_v17 }
 0x1b9   : > { %v560_v42 = vpop.xlane.xlu0 %559  ;;  %5933 = vrsqrt.f32 %v680_v34  ;;  %v649_v61 = vmul.f32 0.015625, %v605_v13  ;;  %v803_v44 = vadd.f32 %v6855_v38, %v764_v35  ;;  %v726_v33 = vmul.f32 %v5924_v39, %v6725_v43 }
 0x1ba   : > { %v634_v2 = vmul.f32 0.015625, %v560_v42  ;;  %5935 = vrsqrt.f32 %v665_v27  ;;  %5786 = vmatprep.mubr.msk.f32.mxu1 %vm334_vm0, %v818_v60  ;;  %v780_v20 = vmul.f32 %v6849_v22, %v741_v1 }
 0x1bb   : > { %v5926_v46 = vpop.eup %5925  ;;  %v681_v10 = vadd.f32 1e-05, %v649_v61  ;;  %5763 = vmatmul.mubr.msk.f32.gmra.mrb[4].mxu0 %vm334_vm0, %v803_v44  ;;  %v765_v8 = vmul.f32 %v6849_v22, %v726_v33 }
 0x1bc   : > { %v666_v51 = vadd.f32 1e-05, %v634_v2  ;;  %v5928_v54 = vpop.eup %5927  ;;  %v608_v5 = vpop.xlane.xlu1 %607  ;;  %v819_v58 = vadd.f32 %v6855_v38, %v780_v20  ;;  %v742_v55 = vmul.f32 %v5926_v46, %v6728_v21 }
 0x1bd   : > { %v563_v17 = vpop.xlane.xlu0 %562  ;;  %5937 = vrsqrt.f32 %v681_v10  ;;  %v650_v48 = vmul.f32 0.015625, %v608_v5  ;;  %v727_v43 = vmul.f32 %v5928_v54, %v6737_v63  ;;  %v804_v62 = vadd.f32 %v6855_v38, %v765_v8 }
 0x1be   : > { %v635_v59 = vmul.f32 0.015625, %v563_v17  ;;  %5939 = vrsqrt.f32 %v666_v51  ;;  %5787 = vmatmul.mubr.msk.f32.gmra.mrb[4].mxu1 %vm334_vm0, %v819_v58  ;;  %v781_v36 = vmul.f32 %v6849_v22, %v742_v55 }
 0x1bf   : > { %v5930_v37 = vpop.eup %5929  ;;  %v682_v25 = vadd.f32 1e-05, %v650_v48  ;;  %v766_v26 = vmul.f32 %v6849_v22, %v727_v43  ;;  %5765 = vmatprep.mubr.msk.f32.mxu0 %vm334_vm0, %v804_v62 }
 0x1c0   : > { %v667_v4 = vadd.f32 1e-05, %v635_v59  ;;  %v5932_v14 = vpop.eup %5931  ;;  %v611_v21 = vpop.xlane.xlu1 %610  ;;  %v820_v9 = vadd.f32 %v6855_v38, %v781_v36  ;;  %v743_v63 = vmul.f32 %v5930_v37, %v6740_v3 }
 0x1c1   : > { %v566_v52 = vpop.xlane.xlu0 %565  ;;  %5941 = vrsqrt.f32 %v682_v25  ;;  %v651_v11 = vmul.f32 0.015625, %v611_v21  ;;  %v805_v19 = vadd.f32 %v6855_v38, %v766_v26  ;;  %v728_v28 = vmul.f32 %v5932_v14, %v6749_v0 }
 0x1c2   : > { %v636_v18 = vmul.f32 0.015625, %v566_v52  ;;  %5943 = vrsqrt.f32 %v667_v4  ;;  %5789 = vmatprep.mubr.msk.f32.mxu1 %vm334_vm0, %v820_v9  ;;  %v782_v29 = vmul.f32 %v6849_v22, %v743_v63 }
 0x1c3   : > { %v5934_v7 = vpop.eup %5933  ;;  %v683_v40 = vadd.f32 1e-05, %v651_v11  ;;  %5766 = vmatmul.mubr.msk.f32.gmra.mrb[6].mxu0 %vm334_vm0, %v805_v19  ;;  %v767_v27 = vmul.f32 %v6849_v22, %v728_v28 }
 0x1c4   : > { %v668_v30 = vadd.f32 1e-05, %v636_v18  ;;  %v5936_v56 = vpop.eup %5935  ;;  %v614_v34 = vpop.xlane.xlu1 %613  ;;  %v821_v35 = vadd.f32 %v6855_v38, %v782_v29  ;;  %v744_v39 = vmul.f32 %v5934_v7, %v6752_v16 }
 0x1c5   : > { %v569_v3 = vpop.xlane.xlu0 %568  ;;  %5945 = vrsqrt.f32 %v683_v40  ;;  %v652_v13 = vmul.f32 0.015625, %v614_v34  ;;  %v729_v0 = vmul.f32 %v5936_v56, %v6761_v47  ;;  %v806_v60 = vadd.f32 %v6855_v38, %v767_v27 }
 0x1c6   : > { %v637_v42 = vmul.f32 0.015625, %v569_v3  ;;  %5947 = vrsqrt.f32 %v668_v30  ;;  %5790 = vmatmul.mubr.msk.f32.gmra.mrb[6].mxu1 %vm334_vm0, %v821_v35  ;;  %v783_v1 = vmul.f32 %v6849_v22, %v744_v39 }
 0x1c7   : > { %v5938_v61 = vpop.eup %5937  ;;  %v684_v2 = vadd.f32 1e-05, %v652_v13  ;;  %v768_v33 = vmul.f32 %v6849_v22, %v729_v0  ;;  %5768 = vmatprep.mubr.msk.f32.mxu0 %vm334_vm0, %v806_v60 }
 0x1c8   : > { %v669_v44 = vadd.f32 1e-05, %v637_v42  ;;  %v5940_v20 = vpop.eup %5939  ;;  %v617_v16 = vpop.xlane.xlu1 %616  ;;  %v822_v10 = vadd.f32 %v6855_v38, %v783_v1  ;;  %v745_v47 = vmul.f32 %v5938_v61, %v6764_v50 }
 0x1c9   : > { %v572_v46 = vpop.xlane.xlu0 %571  ;;  %5949 = vrsqrt.f32 %v684_v2  ;;  %v653_v51 = vmul.f32 0.015625, %v617_v16  ;;  %v807_v5 = vadd.f32 %v6855_v38, %v768_v33  ;;  %v730_v17 = vmul.f32 %v5940_v20, %v6773_v6 }
 0x1ca   : > { %v638_v54 = vmul.f32 0.015625, %v572_v46  ;;  %5951 = vrsqrt.f32 %v669_v44  ;;  %5792 = vmatprep.mubr.msk.f32.mxu1 %vm334_vm0, %v822_v10  ;;  %v784_v8 = vmul.f32 %v6849_v22, %v745_v47 }
 0x1cb   : > { %v5942_v58 = vpop.eup %5941  ;;  %v685_v55 = vadd.f32 1e-05, %v653_v51  ;;  %5769 = vmatmul.mubr.msk.f32.gmra.mrb[8].mxu0 %vm334_vm0, %v807_v5  ;;  %v769_v62 = vmul.f32 %v6849_v22, %v730_v17  ;;  %v6987_v5 = vld [vmem:[%s10007_s4] ss:$0 sm:$0xff] }
 0x1cc   : > { %v670_v48 = vadd.f32 1e-05, %v638_v54  ;;  %v5944_v59 = vpop.eup %5943  ;;  %v620_v43 = vpop.xlane.xlu1 %619  ;;  %v823_v36 = vadd.f32 %v6855_v38, %v784_v8  ;;  %v746_v37 = vmul.f32 %v5942_v58, %v6776_v12 }
 0x1cd   : > { %v575_v50 = vpop.xlane.xlu0 %574  ;;  %5953 = vrsqrt.f32 %v685_v55  ;;  %v654_v25 = vmul.f32 0.015625, %v620_v43  ;;  %v731_v6 = vmul.f32 %v5944_v59, %v6785_v41  ;;  %v808_v26 = vadd.f32 %v6855_v38, %v769_v62 }
 0x1ce   : > { %v639_v4 = vmul.f32 0.015625, %v575_v50  ;;  %5955 = vrsqrt.f32 %v670_v48  ;;  %5793 = vmatmul.mubr.msk.f32.gmra.mrb[8].mxu1 %vm334_vm0, %v823_v36  ;;  %v785_v14 = vmul.f32 %v6849_v22, %v746_v37 }
 0x1cf   : > { %v5946_v21 = vpop.eup %5945  ;;  %v686_v52 = vadd.f32 1e-05, %v654_v25  ;;  %v770_v63 = vmul.f32 %v6849_v22, %v731_v6  ;;  %5771 = vmatprep.mubr.msk.f32.mxu0 %vm334_vm0, %v808_v26  ;;  %v1393_v26 = vlaneseq }
 0x1d0   : > { %v671_v9 = vadd.f32 1e-05, %v639_v4  ;;  %v5948_v11 = vpop.eup %5947  ;;  %v623_v12 = vpop.xlane.xlu1 %622  ;;  %v824_v18 = vadd.f32 %v6855_v38, %v785_v14  ;;  %v747_v41 = vmul.f32 %v5946_v21, %v6788_v23 }
 0x1d1   : > { %5957 = vrsqrt.f32 %v686_v52  ;;  %v655_v19 = vmul.f32 0.015625, %v623_v12  ;;  %v809_v28 = vadd.f32 %v6855_v38, %v770_v63  ;;  %v732_v29 = vmul.f32 %v5948_v11, %v6797_v32 }
 0x1d2   : > { %5959 = vrsqrt.f32 %v671_v9  ;;  %5795 = vmatprep.mubr.msk.f32.mxu1 %vm334_vm0, %v824_v18  ;;  %v786_v7 = vmul.f32 %v6849_v22, %v747_v41  ;;  %v7009_v18 = vshrl.u32 %v1393_v26, 7 }
 0x1d3   : > { %v5950_v40 = vpop.eup %5949  ;;  %v687_v30 = vadd.f32 1e-05, %v655_v19  ;;  %5772 = vmatmul.mubr.msk.f32.gmra.mrb[10].mxu0 %vm334_vm0, %v809_v28  ;;  %v771_v56 = vmul.f32 %v6849_v22, %v732_v29 }
 0x1d4   : > { %v5952_v34 = vpop.eup %5951  ;;  %v825_v23 = vadd.f32 %v6855_v38, %v786_v7  ;;  %v748_v3 = vmul.f32 %v5950_v40, %v6800_v45  ;;  %vm2074_vm1 = vcmp.lt.s32.totalorder %v7009_v18, 7  ;;  %vm2335_vm2 = vcmp.lt.s32.totalorder %v7009_v18, 6 }
 0x1d5   : > { %5961 = vrsqrt.f32 %v687_v30  ;;  %v810_v27 = vadd.f32 %v6855_v38, %v771_v56  ;;  %v733_v32 = vmul.f32 %v5952_v34, %v6809_v24  ;;  %v1812_v56 = vsub.s32 0, %v7009_v18 }
 0x1d6   : > { %5796 = vmatmul.mubr.msk.f32.gmra.mrb[10].mxu1 %vm334_vm0, %v825_v23  ;;  %v787_v35 = vmul.f32 %v6849_v22, %v748_v3  ;;  %v7022_v23 = vld [vmem:[#allocation7 + $0x8] sm:$0xff]  ;;  %vm2596_vm3 = vcmp.lt.s32.totalorder %v7009_v18, 5  ;;  %vm2857_vm4 = vcmp.lt.s32.totalorder %v7009_v18, 4  ;;  %vm3118_vm5 = vcmp.lt.s32.totalorder %v7009_v18, 3 }
 0x1d7   : > { %v5954_v39 = vpop.eup %5953  ;;  %5774 = vmatprep.mubr.msk.f32.mxu0 %vm334_vm0, %v810_v27  ;;  %v772_v13 = vmul.f32 %v6849_v22, %v733_v32  ;;  %v7026_v32 = vld [vmem:[#allocation7] sm:$0xff]  ;;  %vm3379_vm6 = vcmp.lt.s32.totalorder %v7009_v18, 2  ;;  %vm3640_vm7 = vcmp.lt.s32.totalorder %v7009_v18, 1 }
 0x1d8   : > { %v5956_v42 = vpop.eup %5955  ;;  %v826_v0 = vadd.f32 %v6855_v38, %v787_v35  ;;  %v749_v60 = vmul.f32 %v5954_v39, %v6812_v49 }
 0x1d9   : > { %v811_v45 = vadd.f32 %v6855_v38, %v772_v13  ;;  %v734_v1 = vmul.f32 %v5956_v42, %v6821_v15  ;;  %v7034_v42 = vrot.slane %v7022_v23, %v1812_v56 }
 0x1da   : > { %5798 = vmatprep.mubr.msk.f32.mxu1 %vm334_vm0, %v826_v0  ;;  %v788_v24 = vmul.f32 %v6849_v22, %v749_v60  ;;  %v2237_v0 = vsub.s32 1, %v7009_v18 }
 0x1db   : > { %v5958_v61 = vpop.eup %5957  ;;  %5775 = vmatmul.mubr.msk.f32.gmra.mrb[12].mxu0 %vm334_vm0, %v811_v45  ;;  %v773_v2 = vmul.f32 %v6849_v22, %v734_v1  ;;  %10155 = vst [vmem:[#allocation12_spill] sm:$0xff] %v7034_v42  ;;  %v7038_v45 = vrot.slane %v7026_v32, %v1812_v56 }
 0x1dc   : > { %v5960_v44 = vpop.eup %5959  ;;  %v827_v33 = vadd.f32 %v6855_v38, %v788_v24  ;;  %v750_v20 = vmul.f32 %v5958_v61, %v6824_v53 }
 0x1dd   : > { %v812_v49 = vadd.f32 %v6855_v38, %v773_v2  ;;  %v735_v16 = vmul.f32 %v5960_v44, %v6833_v31  ;;  %10156 = vst [vmem:[#allocation13_spill] sm:$0xff] %v7038_v45 }
 0x1de   : > { %5799 = vmatmul.mubr.msk.f32.gmra.mrb[12].mxu1 %vm334_vm0, %v827_v33  ;;  %v789_v15 = vmul.f32 %v6849_v22, %v750_v20  ;;  %v7052_v20 = vrot.slane %v7026_v32, %v2237_v0 }
 0x1df   : > { %v5962_v46 = vpop.eup %5961  ;;  %5777 = vmatprep.mubr.msk.f32.mxu0 %vm334_vm0, %v812_v49  ;;  %v774_v10 = vmul.f32 %v6849_v22, %v735_v16 }
 0x1e0   : > { %v828_v47 = vadd.f32 %v6855_v38, %v789_v15  ;;  %v751_v51 = vmul.f32 %v5962_v46, %v6836_v57  ;;  %10159 = vst [vmem:[#allocation16_spill] sm:$0xff] %v7052_v20  ;;  %v2498_v15 = vsub.s32 2, %v7009_v18 }
 0x1e1   : > { %v813_v54 = vadd.f32 %v6855_v38, %v774_v10 }
 0x1e2   : > { %5801 = vmatprep.mubr.msk.f32.mxu1 %vm334_vm0, %v828_v47  ;;  %v790_v53 = vmul.f32 %v6849_v22, %v751_v51  ;;  %v2759_v47 = vsub.s32 3, %v7009_v18 }
 0x1e3   : > { %5778 = vmatmul.mubr.msk.f32.gmra.mrb[14].mxu0 %vm334_vm0, %v813_v54 }
 0x1e4   : > { %v829_v31 = vadd.f32 %v6855_v38, %v790_v53 }
 0x1e6   : > { %5802 = vmatmul.mubr.msk.f32.gmra.mrb[14].mxu1 %vm334_vm0, %v829_v31 }
 0x27e   : > { %v5758_v17 = vpop.f32.mrb[0].mxu0 }
 0x27f   : > { %v1013_v57 = vadd.f32 %v5758_v17, %v6987_v5  ;;  %v1007_v8 = vpop.f32.mrb[1].mxu0  ;;  %v3020_v17 = vsub.s32 4, %v7009_v18 }
 0x280   : > { %v1008_v58 = vadd.f32 %v6987_v5, %v1007_v8  ;;  %v7074_v8 = vrot.slane %v7026_v32, %v2498_v15 }
 0x281   : > { %v5658_v55 = vmul.f32 -1.442695, %v1013_v57  ;;  %v5782_v48 = vpop.f32.mrb[0].mxu1 }
 0x282   : > { %v5657_v22 = vmul.f32 -1.442695, %v1008_v58  ;;  %v6992_v59 = vadd.f32 %v5782_v48, %v6987_v5  ;;  %v1087_v38 = vpop.f32.mrb[1].mxu1 }
 0x283   : > { %5963 = vpow2.f32 %v5658_v55  ;;  %v6995_v43 = vadd.f32 %v6987_v5, %v1087_v38 }
 0x284   : > { %5965 = vpow2.f32 %v5657_v22  ;;  %v5674_v50 = vmul.f32 -1.442695, %v6992_v59 }
 0x285   : > { %v5673_v62 = vmul.f32 -1.442695, %v6995_v43 }
 0x286   : > { %v5761_v36 = vpop.f32.mrb[2].mxu0  ;;  %5967 = vpow2.f32 %v5674_v50 }
 0x287   : > { %v1017_v37 = vpop.f32.mrb[3].mxu0  ;;  %5969 = vpow2.f32 %v5673_v62  ;;  %v7007_v12 = vadd.f32 %v5761_v36, %v6987_v5  ;;  %v3542_v62 = vsub.s32 6, %v7009_v18 }
 0x288   : > { %v7002_v63 = vadd.f32 %v6987_v5, %v1017_v37 }
 0x289   : > { %v5785_v25 = vpop.f32.mrb[2].mxu1  ;;  %v5660_v30 = vmul.f32 -1.442695, %v7007_v12 }
 0x28a   : > { %v1097_v4 = vpop.f32.mrb[3].mxu1  ;;  %v7012_v41 = vadd.f32 %v5785_v25, %v6987_v5  ;;  %v5659_v7 = vmul.f32 -1.442695, %v7002_v63 }
 0x28b   : > { %v7031_v13 = vadd.f32 %v6987_v5, %v1097_v4  ;;  %v7094_v4 = vrot.slane %v7026_v32, %v2759_v47 }
 0x28c   : > { %v5676_v34 = vmul.f32 -1.442695, %v7012_v41 }
 0x28d   : > { %v5964_v6 = vpop.eup %5963  ;;  %v5675_v2 = vmul.f32 -1.442695, %v7031_v13 }
 0x28e   : > { %v5966_v14 = vpop.eup %5965  ;;  %v1263_v21 = vadd.f32 1.0, %v5964_v6  ;;  %v6999_v52 = vpop.f32.mrb[4].mxu0 }
 0x28f   : > { %v1262_v9 = vadd.f32 1.0, %v5966_v14  ;;  %v7004_v11 = vpop.f32.mrb[5].mxu0  ;;  %v7098_v14 = vrot.slane %v7026_v32, %v3020_v17 }
 0x290   : > { %5971 = vrcp.f32 %v1263_v21  ;;  %v5968_v29 = vpop.eup %5967  ;;  %v3803_v21 = vsub.s32 7, %v7009_v18 }
 0x291   : > { %5973 = vrcp.f32 %v1262_v9  ;;  %v7014_v19 = vpop.f32.mrb[4].mxu1  ;;  %v5970_v40 = vpop.eup %5969  ;;  %v1279_v3 = vadd.f32 1.0, %v5968_v29 }
 0x292   : > { %v7016_v28 = vpop.f32.mrb[5].mxu1  ;;  %v1278_v35 = vadd.f32 1.0, %v5970_v40  ;;  %5975 = vpow2.f32 %v5659_v7 }
 0x293   : > { %5977 = vpow2.f32 %v5660_v30 }
 0x294   : > { %5979 = vpow2.f32 %v5676_v34 }
 0x295   : > { %5981 = vrcp.f32 %v1279_v3  ;;  %v7120_v3 = vrot.slane %v7026_v32, %v3542_v62 }
 0x296   : > { %v7024_v27 = vpop.f32.mrb[6].mxu0  ;;  %5983 = vrcp.f32 %v1278_v35 }
 0x297   : > { %v7028_v39 = vpop.f32.mrb[7].mxu0  ;;  %5985 = vpow2.f32 %v5675_v2  ;;  %v7133_v2 = vrot.slane %v7026_v32, %v3803_v21 }
 0x299   : > { %v7077_v55 = vpop.f32.mrb[6].mxu1 }
 0x29a   : > { %v5972_v60 = vpop.eup %5971  ;;  %10161 = vst [vmem:[#allocation18_spill] sm:$0xff] %v7077_v55  ;;  %v7090_v36 = vpop.f32.mrb[7].mxu1 }
 0x29b   : > { %v5974_v1 = vpop.eup %5973  ;;  %v7040_v24 = vmul.f32 %v5972_v60, %v1013_v57  ;;  %10163 = vst [vmem:[#allocation20_spill] sm:$0xff] %v7090_v36 }
 0x29c   : > { %v7042_v61 = vmul.f32 %v5974_v1, %v1008_v58  ;;  %v5976_v53 = vpop.eup %5975  ;;  %v3281_v58 = vsub.s32 5, %v7009_v18 }
 0x29d   : > { %10157 = vst [vmem:[#allocation14_spill] sm:$0xff] %v7040_v24  ;;  %v1815_v44 = vmul.f32 %v7034_v42, %v7040_v24  ;;  %v10030_v33 = vrot.slane %v7040_v24, 1  ;;  %v10029_v10 = vrot.slane %v7040_v24, 2  ;;  %v5978_v57 = vpop.eup %5977  ;;  %v10022_v50 = vrot.slane %v7040_v24, 3 }
 0x29e   : > { %10158 = vst [vmem:[#allocation15_spill] sm:$0xff] %v7042_v61  ;;  %v1979_v49 = vmul.f32 %v7038_v45, %v7042_v61  ;;  %v10017_v16 = vrot.slane %v7042_v61, 1  ;;  %v10016_v46 = vrot.slane %v7042_v61, 2  ;;  %v5980_v48 = vpop.eup %5979  ;;  %v10015_v38 = vrot.slane %v7042_v61, 3 }
 0x29f   : > { %v5982_v37 = vpop.eup %5981  ;;  %v1264_v6 = vadd.f32 1.0, %v5976_v53  ;;  %v1265_v9 = vadd.f32 1.0, %v5978_v57  ;;  %v7105_v7 = vrot.slane %v7026_v32, %v3281_v58  ;;  %v1281_v40 = vadd.f32 1.0, %v5980_v48 }
 0x2a0   : > { %v2011_v51 = vadd.f32 %v1979_v49, %v1815_v44  ;;  %v7067_v54 = vsel %vm2074_vm1, %v10017_v16, %v10030_v33  ;;  %v7085_v22 = vsel %vm2335_vm2, %v10016_v46, %v10029_v10  ;;  %v5984_v26 = vpop.eup %5983  ;;  %v7113_v30 = vsel %vm2596_vm3, %v10015_v38, %v10022_v50 }
 0x2a1   : > { %10160 = vst [vmem:[#allocation17_spill] sm:$0xff] %v7067_v54  ;;  %v2240_v31 = vmul.f32 %v7052_v20, %v7067_v54  ;;  %10162 = vst [vmem:[#allocation19_spill] sm:$0xff] %v7085_v22  ;;  %v2501_v29 = vmul.f32 %v7074_v8, %v7085_v22  ;;  %v10014_v56 = vrot.slane %v7042_v61, 4  ;;  %v10021_v34 = vrot.slane %v7040_v24, 4  ;;  %v5986_v49 = vpop.eup %5985 }
 0x2a2   : > { %10164 = vst [vmem:[#allocation21_spill] sm:$0xff] %v7113_v30  ;;  %v7124_v60 = vmul.f32 %v5982_v37, %v6992_v59  ;;  %v7127_v1 = vmul.f32 %v5984_v26, %v6995_v43  ;;  %5987 = vrcp.f32 %v1264_v6  ;;  %v7137_v44 = vadd.f32 %v6999_v52, %v6987_v5 }
 0x2a3   : > { %v2272_v25 = vadd.f32 %v2240_v31, %v2011_v51  ;;  %5989 = vrcp.f32 %v1265_v9  ;;  %v2762_v59 = vmul.f32 %v7094_v4, %v7113_v30  ;;  %v10013_v43 = vrot.slane %v7042_v61, 5 }
 0x2a4   : > { %10165 = vst [vmem:[#allocation22_spill] sm:$0xff] %v7124_v60  ;;  %10166 = vst [vmem:[#allocation23_spill] sm:$0xff] %v7127_v1  ;;  %v7145_v51 = vrot.slane %v7022_v23, %v2237_v0  ;;  %5991 = vrcp.f32 %v1281_v40  ;;  %v7153_v52 = vsel %vm2857_vm4, %v10014_v56, %v10021_v34  ;;  %v10020_v32 = vrot.slane %v7040_v24, 5 }
 0x2a5   : > { %v2533_v35 = vadd.f32 %v2501_v29, %v2272_v25  ;;  %10167 = vst [vmem:[#allocation24_spill] sm:$0xff] %v7137_v44  ;;  %10168 = vst [vmem:[#allocation25_spill] sm:$0xff] %v7153_v52  ;;  %v10018_v53 = vrot.slane %v7127_v1, 1  ;;  %v10019_v31 = vrot.slane %v7124_v60, 1  ;;  %v7159_v48 = vrot.slane %v7022_v23, %v2498_v15 }
 0x2a6   : > { %v7162_v0 = vrot.slane %v7022_v23, %v2759_v47  ;;  %v7166_v37 = vadd.f32 %v6987_v5, %v7004_v11  ;;  %v7169_v25 = vrot.slane %v7022_v23, %v3020_v17  ;;  %v7172_v6 = vrot.slane %v7022_v23, %v3281_v58 }
 0x2a7   : > { %v2794_v57 = vadd.f32 %v2762_v59, %v2533_v35  ;;  %v1280_v26 = vadd.f32 1.0, %v5986_v49  ;;  %v5662_v9 = vmul.f32 -1.442695, %v7137_v44  ;;  %v3023_v15 = vmul.f32 %v7098_v14, %v7153_v52 }
 0x2a8   : > { %10169 = vst [vmem:[#allocation26_spill] sm:$0xff] %v7166_v37  ;;  %v1831_v47 = vmul.f32 %v7034_v42, %v7124_v60  ;;  %v1995_v29 = vmul.f32 %v7038_v45, %v7127_v1  ;;  %v7183_v11 = vadd.f32 %v7014_v19, %v6987_v5  ;;  %v7191_v17 = vsel %vm3118_vm5, %v10013_v43, %v10020_v32 }
 0x2a9   : > { %10171 = vst [vmem:[#allocation28_spill] sm:$0xff] %v7191_v17  ;;  %v10023_v58 = vrot.slane %v7042_v61, 6  ;;  %v10026_v40 = vrot.slane %v7040_v24, 6  ;;  %v7201_v19 = vsel %vm2074_vm1, %v10018_v53, %v10019_v31  ;;  %v3055_v35 = vadd.f32 %v3023_v15, %v2794_v57 }
 0x2aa   : > { %10170 = vst [vmem:[#allocation27_spill] sm:$0xff] %v7183_v11  ;;  %10172 = vst [vmem:[#allocation29_spill] sm:$0xff] %v7201_v19  ;;  %v10024_v49 = vrot.slane %v7042_v61, 7  ;;  %v10025_v59 = vrot.slane %v7040_v24, 7  ;;  %v5661_v43 = vmul.f32 -1.442695, %v7166_v37  ;;  %5993 = vrcp.f32 %v1280_v26 }
 0x2ab   : > { %v10027_v56 = vrot.slane %v7127_v1, 2  ;;  %v10028_v38 = vrot.slane %v7124_v60, 2  ;;  %v7210_v46 = vadd.f32 %v6987_v5, %v7016_v28  ;;  %v3284_v53 = vmul.f32 %v7105_v7, %v7191_v17 }
 0x2ac   : > { %v5988_v16 = vpop.eup %5987  ;;  %v7217_v57 = vrot.slane %v7022_v23, %v3542_v62  ;;  %v2027_v15 = vadd.f32 %v1995_v29, %v1831_v47  ;;  %v2256_v31 = vmul.f32 %v7052_v20, %v7201_v19  ;;  %v7227_v28 = vsel %vm3379_vm6, %v10023_v58, %v10026_v40 }
 0x2ad   : > { %10173 = vst [vmem:[#allocation30_spill] sm:$0xff] %v7210_v46  ;;  %v5990_v32 = vpop.eup %5989  ;;  %10174 = vst [vmem:[#allocation31_spill] sm:$0xff] %v7227_v28  ;;  %v10031_v26 = vrot.slane %v7127_v1, 3  ;;  %v10032_v34 = vrot.slane %v7124_v60, 3  ;;  %v5678_v62 = vmul.f32 -1.442695, %v7183_v11  ;;  %v3316_v47 = vadd.f32 %v3284_v53, %v3055_v35 }
 0x2ae   : > { %v5992_v50 = vpop.eup %5991  ;;  %v7238_v29 = vsel %vm3640_vm7, %v10024_v49, %v10025_v59  ;;  %v7243_v58 = vrot.slane %v7022_v23, %v3803_v21  ;;  %5995 = vpow2.f32 %v5662_v9  ;;  %v7251_v53 = vsel %vm2335_vm2, %v10027_v56, %v10028_v38 }
 0x2af   : > { %10175 = vst [vmem:[#allocation32_spill] sm:$0xff] %v7238_v29  ;;  %10176 = vst [vmem:[#allocation33_spill] sm:$0xff] %v7251_v53  ;;  %v7254_v35 = vmul.f32 %v5988_v16, %v7002_v63  ;;  %5997 = vpow2.f32 %v5661_v43  ;;  %v7257_v49 = vmul.f32 -1.442695, %v7210_v46  ;;  %v3545_v23 = vmul.f32 %v7120_v3, %v7227_v28 }
 0x2b0   : > { %v2288_v21 = vadd.f32 %v2256_v31, %v2027_v15  ;;  %v10033_v9 = vrot.slane %v7127_v1, 4  ;;  %v10034_v59 = vrot.slane %v7124_v60, 4  ;;  %v1980_v40 = vmul.f32 %v7038_v45, %v7040_v24 }
 0x2b1   : > { %v3806_v56 = vmul.f32 %v7133_v2, %v7238_v29  ;;  %v7273_v63 = vsel %vm2596_vm3, %v10031_v26, %v10032_v34  ;;  %5999 = vpow2.f32 %v5678_v62  ;;  %v3577_v16 = vadd.f32 %v3545_v23, %v3316_v47 }
 0x2b2   : > { %10177 = vst [vmem:[#allocation34_spill] sm:$0xff] %v7273_v63  ;;  %v2517_v43 = vmul.f32 %v7074_v8, %v7251_v53  ;;  %v7278_v31 = vmul.f32 %v5990_v32, %v7007_v12  ;;  %v7281_v15 = vmul.f32 %v5992_v50, %v7012_v41  ;;  %v1816_v10 = vmul.f32 %v7034_v42, %v7254_v35  ;;  %v7299_v50 = vpop.f32.mrb[8].mxu0 }
 0x2b3   : > { %v10036_v33 = vrot.slane %v7254_v35, 1  ;;  %v2778_v47 = vmul.f32 %v7094_v4, %v7273_v63  ;;  %v7296_v12 = vsel %vm2857_vm4, %v10033_v9, %v10034_v59  ;;  %10180 = vst [vmem:[#allocation37_spill] sm:$0xff] %v7299_v50  ;;  %v7309_v26 = vpop.f32.mrb[9].mxu0  ;;  %v10184_v29 = vrot.slane %v7040_v24, 2 }
 0x2b4   : > { %10178 = vst [vmem:[#allocation35_spill] sm:$0xff] %v7278_v31  ;;  %v2549_v62 = vadd.f32 %v2517_v43, %v2288_v21  ;;  %10179 = vst [vmem:[#allocation36_spill] sm:$0xff] %v7296_v12  ;;  %v5994_v32 = vpop.eup %5993  ;;  %v2012_v34 = vadd.f32 %v1980_v40, %v1816_v10  ;;  %v10181_v21 = vrot.slane %v7040_v24, 1  ;;  %v10183_v40 = vrot.slane %v7254_v35, 2 }
 0x2b5   : > { %10182 = vst [vmem:[#allocation38_spill] sm:$0xff] %v7309_v26  ;;  %v10186_v38 = vrot.slane %v7040_v24, 3  ;;  %v7333_v52 = vmul.f32 %v5994_v32, %v7031_v13  ;;  %v10191_v13 = vrot.slane %v7040_v24, 4  ;;  %v10193_v32 = vrot.slane %v7127_v1, 6 }
 0x2b6   : > { %v2104_v43 = vsel %vm2074_vm1, %v10181_v21, %v10036_v33  ;;  %v2365_v21 = vsel %vm2335_vm2, %v10184_v29, %v10183_v40  ;;  %v10185_v33 = vrot.slane %v7254_v35, 3  ;;  %v2810_v28 = vadd.f32 %v2778_v47, %v2549_v62 }
 0x2b7   : > { %v2241_v23 = vmul.f32 %v7052_v20, %v2104_v43  ;;  %v2502_v17 = vmul.f32 %v7074_v8, %v2365_v21  ;;  %v3838_v29 = vadd.f32 %v3806_v56, %v3577_v16  ;;  %v7339_v40 = vmul.f32 %v7038_v45, %v7124_v60 }
 0x2b8   : > { %v2626_v9 = vsel %vm2596_vm3, %v10186_v38, %v10185_v33  ;;  %v7329_v59 = vpop.eup %5995  ;;  %v10187_v33 = vrot.slane %v7124_v60, 5  ;;  %v10188_v38 = vrot.slane %v7127_v1, 5  ;;  %v3039_v56 = vmul.f32 %v7098_v14, %v7296_v12 }
 0x2b9   : > { %v2273_v10 = vadd.f32 %v2241_v23, %v2012_v34  ;;  %v7335_v30 = vpop.eup %5997  ;;  %v10190_v34 = vrot.slane %v7254_v35, 4  ;;  %v10192_v16 = vrot.slane %v7124_v60, 6  ;;  %v10196_v22 = vrot.slane %v7124_v60, 7 }
 0x2ba   : > { %v7347_v62 = vsel %vm3118_vm5, %v10188_v38, %v10187_v33  ;;  %v2763_v38 = vmul.f32 %v7094_v4, %v2626_v9  ;;  %v10199_v54 = vrot.slane %v7254_v35, 5  ;;  %v10200_v12 = vrot.slane %v7040_v24, 5 }
 0x2bb   : > { %10189 = vst [vmem:[#allocation39_spill] sm:$0xff] %v7347_v62  ;;  %v2887_v47 = vsel %vm2857_vm4, %v10191_v13, %v10190_v34  ;;  %v7363_v23 = vsel %vm3379_vm6, %v10193_v32, %v10192_v16  ;;  %v2534_v33 = vadd.f32 %v2502_v17, %v2273_v10  ;;  %v7366_v41 = vpop.eup %5999  ;;  %v10197_v34 = vrot.slane %v7127_v1, 7 }
 0x2bc   : > { %10194 = vst [vmem:[#allocation40_spill] sm:$0xff] %v7363_v23  ;;  %10195 = vst [vmem:[#allocation41_spill] sm:$0xff] %v7366_v41  ;;  %v3148_v16 = vsel %vm3118_vm5, %v10200_v12, %v10199_v54  ;;  %v3349_v17 = vrot.slane %v7254_v35, 6  ;;  %v3610_v10 = vrot.slane %v7254_v35, 7  ;;  %v3071_v32 = vadd.f32 %v3039_v56, %v2810_v28 }
 0x2bd   : > { %v7374_v13 = vsel %vm3640_vm7, %v10197_v34, %v10196_v22  ;;  %v3300_v63 = vmul.f32 %v7105_v7, %v7347_v62  ;;  %v2795_v53 = vadd.f32 %v2763_v38, %v2534_v33  ;;  %v3024_v19 = vmul.f32 %v7098_v14, %v2887_v47 }
 0x2be   : > { %10198 = vst [vmem:[#allocation42_spill] sm:$0xff] %v7374_v13  ;;  %v10201_v34 = vrot.slane %v7040_v24, 6  ;;  %v10202_v54 = vrot.slane %v7040_v24, 7  ;;  %v4002_v28 = vmul.f32 %v7145_v51, %v2104_v43  ;;  %v7399_v56 = vmul.f32 %v7120_v3, %v7363_v23 }
 0x2bf   : > { %v7403_v33 = vmul.f32 %v7133_v2, %v7374_v13  ;;  %v3056_v38 = vadd.f32 %v3024_v19, %v2795_v53  ;;  %v3285_v22 = vmul.f32 %v7105_v7, %v3148_v16  ;;  %v4198_v11 = vmul.f32 %v7159_v48, %v2365_v21 }
 0x2c0   : > { %v3409_v61 = vsel %vm3379_vm6, %v10201_v34, %v3349_v17  ;;  %v3670_v12 = vsel %vm3640_vm7, %v10202_v54, %v3610_v10  ;;  %v1817_v34 = vmul.f32 %v7034_v42, %v7278_v31  ;;  %v4034_v1 = vadd.f32 %v4002_v28, %v3838_v29 }
 0x2c1   : > { %v3317_v46 = vadd.f32 %v3285_v22, %v3056_v38  ;;  %v3546_v23 = vmul.f32 %v7120_v3, %v3409_v61  ;;  %v3332_v13 = vadd.f32 %v3300_v63, %v3071_v32  ;;  %v1981_v53 = vmul.f32 %v7038_v45, %v7254_v35 }
 0x2c2   : > { %v10203_v44 = vrot.slane %v7278_v31, 1  ;;  %v10204_v62 = vrot.slane %v7254_v35, 1  ;;  %v3807_v22 = vmul.f32 %v7133_v2, %v3670_v12  ;;  %v4230_v38 = vadd.f32 %v4198_v11, %v4034_v1  ;;  %v7442_v11 = vld [vmem:[#allocation7 + $0x10] ss:$0 sm:$0xff] }
 0x2c3   : > { %v3578_v28 = vadd.f32 %v3546_v23, %v3317_v46  ;;  %v4394_v43 = vmul.f32 %v7162_v0, %v2626_v9  ;;  %v10205_v32 = vrot.slane %v7278_v31, 2  ;;  %v10206_v19 = vrot.slane %v7254_v35, 2 }
 0x2c4   : > { %v2103_v29 = vsel %vm2074_vm1, %v10204_v62, %v10203_v44  ;;  %v10207_v44 = vrot.slane %v7278_v31, 3  ;;  %v10208_v46 = vrot.slane %v7254_v35, 3  ;;  %v4590_v21 = vmul.f32 %v7169_v25, %v2887_v47 }
 0x2c5   : > { %v7432_v54 = vsel %vm2335_vm2, %v10206_v19, %v10205_v32  ;;  %v3839_v9 = vadd.f32 %v3807_v22, %v3578_v28  ;;  %v4003_v62 = vmul.f32 %v7145_v51, %v2103_v29  ;;  %v4426_v23 = vadd.f32 %v4394_v43, %v4230_v38 }
 0x2c6   : > { %v7440_v1 = vsel %vm2596_vm3, %v10208_v46, %v10207_v44  ;;  %v7448_v19 = vmul.f32 %v7442_v11, %v7278_v31  ;;  %v2013_v32 = vadd.f32 %v1981_v53, %v1817_v34  ;;  %v2242_v63 = vmul.f32 %v7052_v20, %v2103_v29 }
 0x2c7   : > { %v10209_v26 = vrot.slane %v7278_v31, 4  ;;  %v10210_v44 = vrot.slane %v7254_v35, 4  ;;  %v4035_v28 = vadd.f32 %v4003_v62, %v3839_v9  ;;  %v4199_v43 = vmul.f32 %v7159_v48, %v7432_v54 }
 0x2c8   : > { %v4622_v47 = vadd.f32 %v4590_v21, %v4426_v23  ;;  %v4786_v22 = vmul.f32 %v7172_v6, %v3148_v16  ;;  %v10211_v38 = vrot.slane %v7278_v31, 5  ;;  %v10212_v34 = vrot.slane %v7254_v35, 5 }
 0x2c9   : > { %v7457_v46 = vsel %vm2857_vm4, %v10210_v44, %v10209_v26  ;;  %v10213_v29 = vrot.slane %v7278_v31, 6  ;;  %v10214_v9 = vrot.slane %v7278_v31, 7  ;;  %v4395_v16 = vmul.f32 %v7162_v0, %v7440_v1 }
 0x2ca   : > { %v7468_v53 = vsel %vm3118_vm5, %v10212_v34, %v10211_v38  ;;  %v4231_v62 = vadd.f32 %v4199_v43, %v4035_v28  ;;  %v4818_v23 = vadd.f32 %v4786_v22, %v4622_v47  ;;  %v4982_v44 = vmul.f32 %v7217_v57, %v3409_v61 }
 0x2cb   : > { %v7474_v26 = vsel %vm3379_vm6, %v3349_v17, %v10213_v29  ;;  %v7480_v21 = vsel %vm3640_vm7, %v3610_v10, %v10214_v9  ;;  %v1832_v38 = vmul.f32 %v7034_v42, %v7333_v52  ;;  %v4591_v17 = vmul.f32 %v7169_v25, %v7457_v46 }
 0x2cc   : > { %v5178_v34 = vmul.f32 %v7243_v58, %v3670_v12  ;;  %v2060_v29 = vrot.slane %v7333_v52, 1  ;;  %v2321_v10 = vrot.slane %v7333_v52, 2  ;;  %v4427_v9 = vadd.f32 %v4395_v16, %v4231_v62 }
 0x2cd   : > { %v5014_v50 = vadd.f32 %v4982_v44, %v4818_v23  ;;  %v2028_v36 = vadd.f32 %v7339_v40, %v1832_v38  ;;  %v2582_v28 = vrot.slane %v7333_v52, 3  ;;  %v4787_v61 = vmul.f32 %v7172_v6, %v7468_v53 }
 0x2ce   : > { %v5374_v43 = vmul.f32 %v7442_v11, %v7254_v35  ;;  %v10215_v12 = vrot.slane %v7124_v60, 1  ;;  %v4623_v55 = vadd.f32 %v4591_v17, %v4427_v9  ;;  %v4983_v23 = vmul.f32 %v7217_v57, %v7474_v26 }
 0x2cf   : > { %v5210_v16 = vadd.f32 %v5178_v34, %v5014_v50  ;;  %v1833_v44 = vmul.f32 %v7034_v42, %v7281_v15  ;;  %v1997_v38 = vmul.f32 %v7038_v45, %v7333_v52  ;;  %v10216_v47 = vrot.slane %v7124_v60, 2 }
 0x2d0   : > { %v2088_v22 = vsel %vm2074_vm1, %v10215_v12, %v2060_v29  ;;  %v4819_v17 = vadd.f32 %v4787_v61, %v4623_v55  ;;  %v10217_v9 = vrot.slane %v7124_v60, 3  ;;  %v3593_v42 = vadd.f32 %v7399_v56, %v3332_v13 }
 0x2d1   : > { %v2257_v62 = vmul.f32 %v7052_v20, %v2088_v22  ;;  %v2349_v12 = vsel %vm2335_vm2, %v10216_v47, %v2321_v10  ;;  %v5406_v50 = vadd.f32 %v5374_v43, %v5210_v16  ;;  %v2274_v31 = vadd.f32 %v2242_v63, %v2013_v32 }
 0x2d2   : > { %v2610_v40 = vsel %vm2596_vm3, %v10217_v9, %v2582_v28  ;;  %v10218_v41 = vrot.slane %v7281_v15, 1  ;;  %v2518_v55 = vmul.f32 %v7074_v8, %v2349_v12  ;;  %v5015_v61 = vadd.f32 %v4983_v23, %v4819_v17 }
 0x2d3   : > { %v2289_v34 = vadd.f32 %v2257_v62, %v2028_v36  ;;  %v5179_v36 = vmul.f32 %v7243_v58, %v7480_v21  ;;  %v5438_v43 = vadd.f32 %v5406_v50, %v7040_v24  ;;  %v10219_v47 = vrot.slane %v7333_v52, 4  ;;  %v7546_v50 = vpop.f32.mrb[8].mxu1 }
 0x2d4   : > { %v2087_v37 = vsel %vm2074_vm1, %v2060_v29, %v10218_v41  ;;  %v10220_v16 = vrot.slane %v7124_v60, 4  ;;  %v10068_v56 = vrot.slane %v7281_v15, 2  ;;  %v2779_v41 = vmul.f32 %v7094_v4, %v2610_v40 }
 0x2d5   : > { %v2550_v63 = vadd.f32 %v2518_v55, %v2289_v34  ;;  %v10062_v32 = vrot.slane %v7333_v52, 5  ;;  %v5211_v29 = vadd.f32 %v5179_v36, %v5015_v61  ;;  %5470 = vst [vmem:[%s7541_s26 + $0x8] sm:$0xff] %v5438_v43  ;;  %v2029_v62 = vadd.f32 %v1997_v38, %v1833_v44 }
 0x2d6   : > { %v2871_v13 = vsel %vm2857_vm4, %v10220_v16, %v10219_v47  ;;  %v2258_v23 = vmul.f32 %v7052_v20, %v2087_v37  ;;  %v3365_v17 = vrot.slane %v7333_v52, 6  ;;  %v10221_v55 = vrot.slane %v7124_v60, 5 }
 0x2d7   : > { %v2811_v9 = vadd.f32 %v2779_v41, %v2550_v63  ;;  %v3040_v34 = vmul.f32 %v7098_v14, %v2871_v13  ;;  %v3626_v36 = vrot.slane %v7333_v52, 7  ;;  %v3854_v44 = vadd.f32 %v7403_v33, %v3593_v42 }
 0x2d8   : > { %v3132_v61 = vsel %vm3118_vm5, %v10221_v55, %v10062_v32  ;;  %v2503_v38 = vmul.f32 %v7074_v8, %v7432_v54  ;;  %v5407_v43 = vadd.f32 %v7448_v19, %v5211_v29  ;;  %v10067_v47 = vrot.slane %v7281_v15, 3 }
 0x2d9   : > { %v2348_v16 = vsel %vm2335_vm2, %v2321_v10, %v10068_v56  ;;  %v3072_v63 = vadd.f32 %v3040_v34, %v2811_v9  ;;  %v3301_v41 = vmul.f32 %v7105_v7, %v3132_v61  ;;  %v10222_v42 = vrot.slane %v7124_v60, 6 }
 0x2da   : > { %v5439_v54 = vadd.f32 %v5407_v43, %v7254_v35  ;;  %v2290_v19 = vadd.f32 %v2258_v23, %v2029_v62  ;;  %v4018_v29 = vmul.f32 %v7145_v51, %v2088_v22  ;;  %6001 = vpow2.f32 %v7257_v49 }
 0x2db   : > { %v3393_v33 = vsel %vm3379_vm6, %v10222_v42, %v3365_v17  ;;  %v2535_v55 = vadd.f32 %v2503_v38, %v2274_v31  ;;  %v3333_v32 = vadd.f32 %v3301_v41, %v3072_v63  ;;  %v10223_v9 = vrot.slane %v7124_v60, 7 }
 0x2dc   : > { %v3562_v10 = vmul.f32 %v7120_v3, %v3393_v33  ;;  %5471 = vst [vmem:[%s7541_s26 + $0x10] sm:$0xff] %v5439_v54  ;;  %v10066_v42 = vrot.slane %v7281_v15, 4  ;;  %v2519_v35 = vmul.f32 %v7074_v8, %v2348_v16  ;;  %v4050_v62 = vadd.f32 %v4018_v29, %v3854_v44 }
 0x2dd   : > { %v3654_v34 = vsel %vm3640_vm7, %v10223_v9, %v3626_v36  ;;  %v4214_v22 = vmul.f32 %v7159_v48, %v2349_v12  ;;  %v2764_v49 = vmul.f32 %v7094_v4, %v7440_v1  ;;  %v2609_v31 = vsel %vm2596_vm3, %v2582_v28, %v10067_v47 }
 0x2de   : > { %v3594_v23 = vadd.f32 %v3562_v10, %v3333_v32  ;;  %v3823_v38 = vmul.f32 %v7133_v2, %v3654_v34  ;;  %v3025_v43 = vmul.f32 %v7098_v14, %v7457_v46  ;;  %v2551_v63 = vadd.f32 %v2519_v35, %v2290_v19 }
 0x2df   : > { %v4246_v44 = vadd.f32 %v4214_v22, %v4050_v62  ;;  %v4410_v12 = vmul.f32 %v7162_v0, %v2610_v40  ;;  %v2796_v41 = vadd.f32 %v2764_v49, %v2535_v55  ;;  %v10065_v1 = vrot.slane %v7281_v15, 5 }
 0x2e0   : > { %v3855_v54 = vadd.f32 %v3823_v38, %v3594_v23  ;;  %v4019_v29 = vmul.f32 %v7145_v51, %v2087_v37  ;;  %v2780_v9 = vmul.f32 %v7094_v4, %v2609_v31  ;;  %v10224_v28 = vrot.slane %v7333_v52, 4  ;;  %v7613_v23 = vpop.f32.mrb[9].mxu1 }
 0x2e1   : > { %v4442_v46 = vadd.f32 %v4410_v12, %v4246_v44  ;;  %v4606_v19 = vmul.f32 %v7169_v25, %v2871_v13  ;;  %v10064_v40 = vrot.slane %v7281_v15, 6  ;;  %v4215_v10 = vmul.f32 %v7159_v48, %v2348_v16 }
 0x2e2   : > { %v2870_v32 = vsel %vm2857_vm4, %v10224_v28, %v10066_v42  ;;  %v4051_v55 = vadd.f32 %v4019_v29, %v3855_v54  ;;  %v1266_v35 = vadd.f32 1.0, %v7335_v30  ;;  %v10063_v37 = vrot.slane %v7281_v15, 7 }
 0x2e3   : > { %v2812_v62 = vadd.f32 %v2780_v9, %v2551_v63  ;;  %v4638_v22 = vadd.f32 %v4606_v19, %v4442_v46  ;;  %v4802_v49 = vmul.f32 %v7172_v6, %v3132_v61  ;;  %v3041_v38 = vmul.f32 %v7098_v14, %v2870_v32 }
 0x2e4   : > { %v4247_v44 = vadd.f32 %v4215_v10, %v4051_v55  ;;  %v4411_v13 = vmul.f32 %v7162_v0, %v2609_v31  ;;  %v1267_v12 = vadd.f32 1.0, %v7329_v59  ;;  %v6002_v54 = vpop.eup %6001  ;;  %v10225_v30 = vrot.slane %v7333_v52, 5 }
 0x2e5   : > { %v4834_v63 = vadd.f32 %v4802_v49, %v4638_v22  ;;  %v4998_v61 = vmul.f32 %v7217_v57, %v3393_v33  ;;  %6003 = vrcp.f32 %v1266_v35  ;;  %v3057_v29 = vadd.f32 %v3025_v43, %v2796_v41 }
 0x2e6   : > { %v3131_v16 = vsel %vm3118_vm5, %v10225_v30, %v10065_v1  ;;  %v4443_v9 = vadd.f32 %v4411_v13, %v4247_v44  ;;  %v4607_v28 = vmul.f32 %v7169_v25, %v2870_v32  ;;  %v7628_v31 = vadd.f32 %v7024_v27, %v6987_v5 }
 0x2e7   : > { %v3073_v59 = vadd.f32 %v3041_v38, %v2812_v62  ;;  %v3392_v46 = vsel %vm3379_vm6, %v3365_v17, %v10064_v40  ;;  %v5030_v19 = vadd.f32 %v4998_v61, %v4834_v63  ;;  %v5194_v33 = vmul.f32 %v7243_v58, %v3654_v34 }
 0x2e8   : > { %v3286_v43 = vmul.f32 %v7105_v7, %v7468_v53  ;;  %v4639_v41 = vadd.f32 %v4607_v28, %v4443_v9  ;;  %v4803_v32 = vmul.f32 %v7172_v6, %v3131_v16  ;;  %6005 = vrcp.f32 %v1267_v12 }
 0x2e9   : > { %v3302_v27 = vmul.f32 %v7105_v7, %v3131_v16  ;;  %v3653_v55 = vsel %vm3640_vm7, %v3626_v36, %v10063_v37  ;;  %v5226_v17 = vadd.f32 %v5194_v33, %v5030_v19  ;;  %v5390_v34 = vmul.f32 %v7442_v11, %v7333_v52  ;;  %v10229_v33 = vld [vmem:[#allocation41_spill] sm:$0xff] }
 0x2ea   : > { %v3318_v10 = vadd.f32 %v3286_v43, %v3057_v29  ;;  %v4835_v35 = vadd.f32 %v4803_v32, %v4639_v41  ;;  %v4999_v53 = vmul.f32 %v7217_v57, %v3392_v46  ;;  %v5664_v49 = vmul.f32 -1.442695, %v7628_v31  ;;  %v10230_v41 = vld [vmem:[#allocation35_spill] sm:$0xff] }
 0x2eb   : > { %v3334_v62 = vadd.f32 %v3302_v27, %v3073_v59  ;;  %v5422_v22 = vadd.f32 %v5390_v34, %v5226_v17  ;;  %v7653_v38 = vadd.f32 %v6987_v5, %v7028_v39  ;;  %v3547_v36 = vmul.f32 %v7120_v3, %v7474_v26  ;;  %v10231_v17 = vld [vmem:[#allocation18_spill] sm:$0xff] }
 0x2ec   : > { %v5031_v44 = vadd.f32 %v4999_v53, %v4835_v35  ;;  %v5195_v13 = vmul.f32 %v7243_v58, %v3653_v55  ;;  %v3563_v12 = vmul.f32 %v7120_v3, %v3392_v46  ;;  %v5391_v63 = vmul.f32 %v7442_v11, %v7281_v15  ;;  %v10228_v46 = vld [vmem:[#allocation26_spill] sm:$0xff] }
 0x2ed   : > { %10226 = vst [vmem:[#allocation43_spill] sm:$0xff] %v7653_v38  ;;  %v5454_v30 = vadd.f32 %v5422_v22, %v7124_v60  ;;  %v3579_v16 = vadd.f32 %v3547_v36, %v3318_v10  ;;  %v7663_v9 = vmul.f32 0.0, %v7038_v45  ;;  %6007 = vpow2.f32 %v5664_v49  ;;  %v10233_v10 = vld [vmem:[#allocation20_spill] sm:$0xff]  ;;  %v10235_v49 = vld [vmem:[#allocation37_spill] sm:$0xff] }
 0x2ee   : > { %v5227_v61 = vadd.f32 %v5195_v13, %v5031_v44  ;;  %v3595_v39 = vadd.f32 %v3563_v12, %v3334_v62  ;;  %v5663_v26 = vmul.f32 -1.442695, %v7653_v38  ;;  %v3808_v28 = vmul.f32 %v7133_v2, %v7480_v21  ;;  %v10237_v13 = vld [vmem:[#allocation12_spill] sm:$0xff] }
 0x2ef   : > { %v6004_v29 = vpop.eup %6003  ;;  %10227 = vst [vmem:[#allocation44_spill] sm:$0xff] %v7663_v9  ;;  %5486 = vst [vmem:[%s7541_s26 + $0x88] sm:$0xff] %v5454_v30  ;;  %v1283_v43 = vadd.f32 1.0, %v10229_v33  ;;  %v1982_v32 = vmul.f32 %v7038_v45, %v10230_v41  ;;  %v3824_v27 = vmul.f32 %v7133_v2, %v3653_v55  ;;  %v7678_v34 = vadd.f32 %v10231_v17, %v6987_v5  ;;  %v10238_v30 = vld [vmem:[#allocation38_spill] sm:$0xff] }
 0x2f0   : > { %v5423_v59 = vadd.f32 %v5391_v63, %v5227_v61  ;;  %v7670_v19 = vmul.f32 %v6004_v29, %v10228_v46  ;;  %v7682_v35 = vadd.f32 %v6987_v5, %v10233_v10  ;;  %v7684_v53 = vadd.f32 %v3808_v28, %v3579_v16  ;;  %v10240_v61 = vld [vmem:[#allocation24_spill] sm:$0xff] }
 0x2f1   : > { %10232 = vst [vmem:[#allocation26_spill] sm:$0xff] %v7678_v34  ;;  %v1282_v22 = vadd.f32 1.0, %v6002_v54  ;;  %v7689_v36 = vadd.f32 %v10235_v49, %v6987_v5  ;;  %v7693_v55 = vmul.f32 %v7038_v45, %v7281_v15  ;;  %v7695_v44 = vadd.f32 %v3824_v27, %v3595_v39 }
 0x2f2   : > { %10234 = vst [vmem:[#allocation41_spill] sm:$0xff] %v7682_v35  ;;  %v6006_v21 = vpop.eup %6005  ;;  %v5455_v62 = vadd.f32 %v5423_v59, %v7333_v52  ;;  %v1818_v12 = vmul.f32 %v10237_v13, %v7670_v19  ;;  %v7701_v16 = vadd.f32 %v6987_v5, %v10238_v30  ;;  %v2046_v52 = vrot.slane %v7670_v19, 1 }
 0x2f3   : > { %10236 = vst [vmem:[#allocation35_spill] sm:$0xff] %v7689_v36  ;;  %v2307_v54 = vrot.slane %v7670_v19, 2  ;;  %v2568_v63 = vrot.slane %v7670_v19, 3  ;;  %6009 = vrcp.f32 %v1283_v43  ;;  %v7708_v29 = vmul.f32 %v6006_v21, %v10240_v61 }
 0x2f4   : > { %10239 = vst [vmem:[#allocation18_spill] sm:$0xff] %v7701_v16  ;;  %5487 = vst [vmem:[%s7541_s26 + $0x90] sm:$0xff] %v5455_v62  ;;  %v2014_v39 = vadd.f32 %v1982_v32, %v1818_v12  ;;  %v5680_v28 = vmul.f32 -1.442695, %v7678_v34  ;;  %v7712_v59 = vmul.f32 -1.442695, %v7682_v35  ;;  %6011 = vrcp.f32 %v1282_v22 }
 0x2f5   : > { %v10241_v46 = vrot.slane %v10230_v41, 1  ;;  %v2829_v27 = vrot.slane %v7670_v19, 4  ;;  %v7720_v17 = vmul.f32 -1.442695, %v7689_v36  ;;  %v10242_v32 = vrot.slane %v10230_v41, 2 }
 0x2f6   : > { %6013 = vpow2.f32 %v5663_v26  ;;  %v7728_v21 = vmul.f32 -1.442695, %v7701_v16  ;;  %v10243_v62 = vrot.slane %v10230_v41, 3  ;;  %v3090_v22 = vrot.slane %v7670_v19, 5  ;;  %v7775_v16 = vpop.f32.mrb[10].mxu0 }
 0x2f7   : > { %v2102_v33 = vsel %vm2074_vm1, %v10241_v46, %v2046_v52  ;;  %v2363_v10 = vsel %vm2335_vm2, %v10242_v32, %v2307_v54  ;;  %v7736_v12 = vadd.s32 56, %v7009_v18  ;;  %v7739_v30 = vadd.s32 64, %v7009_v18  ;;  %v6008_v61 = vpop.eup %6007  ;;  %10249 = vst [vmem:[#allocation38_spill] sm:$0xff] %v7775_v16  ;;  %v7789_v34 = vpop.f32.mrb[11].mxu0 }
 0x2f8   : > { %v2243_v43 = vmul.f32 %v7052_v20, %v2102_v33  ;;  %v2624_v49 = vsel %vm2596_vm3, %v10243_v62, %v2568_v63  ;;  %v2504_v32 = vmul.f32 %v7074_v8, %v2363_v10  ;;  %6015 = vpow2.f32 %v5680_v28  ;;  %10252 = vst [vmem:[#allocation24_spill] sm:$0xff] %v7789_v34 }
 0x2f9   : > { %v1819_v37 = vmul.f32 %v10237_v13, %v7708_v29  ;;  %v10244_v62 = vrot.slane %v10230_v41, 4  ;;  %v3351_v1 = vrot.slane %v7670_v19, 6  ;;  %v7752_v42 = vadd.f32 %v7546_v50, %v6987_v5 }
 0x2fa   : > { %v2275_v26 = vadd.f32 %v2243_v43, %v2014_v39  ;;  %v1983_v39 = vmul.f32 %v7038_v45, %v7670_v19  ;;  %v2765_v43 = vmul.f32 %v7094_v4, %v2624_v49  ;;  %v10246_v56 = vrot.slane %v10230_v41, 5 }
 0x2fb   : > { %v2885_v40 = vsel %vm2857_vm4, %v10244_v62, %v2829_v27  ;;  %10245 = vst [vmem:[#allocation20_spill] sm:$0xff] %v7752_v42  ;;  %v3612_v62 = vrot.slane %v7670_v19, 7  ;;  %v7763_v24 = vadd.f32 1.0, %v6008_v61  ;;  %v7767_v50 = vadd.f32 %v6987_v5, %v7613_v23 }
 0x2fc   : > { %v2536_v28 = vadd.f32 %v2504_v32, %v2275_v26  ;;  %v3146_v46 = vsel %vm3118_vm5, %v10246_v56, %v3090_v22  ;;  %v10248_v60 = vrot.slane %v7708_v29, 1  ;;  %v3026_v9 = vmul.f32 %v7098_v14, %v2885_v40 }
 0x2fd   : > { %10247 = vst [vmem:[#allocation37_spill] sm:$0xff] %v7767_v50  ;;  %v6010_v56 = vpop.eup %6009  ;;  %v10250_v5 = vrot.slane %v10230_v41, 6  ;;  %v4004_v47 = vmul.f32 %v7145_v51, %v2102_v33  ;;  %v2015_v35 = vadd.f32 %v1983_v39, %v1819_v37  ;;  %v10253_v16 = vrot.slane %v10230_v41, 7 }
 0x2fe   : > { %v2101_v26 = vsel %vm2074_vm1, %v2046_v52, %v10248_v60  ;;  %v2797_v32 = vadd.f32 %v2765_v43, %v2536_v28  ;;  %v10251_v60 = vrot.slane %v7708_v29, 2  ;;  %v3287_v43 = vmul.f32 %v7105_v7, %v3146_v46  ;;  %v6012_v61 = vpop.eup %6011 }
 0x2ff   : > { %v3407_v23 = vsel %vm3379_vm6, %v10250_v5, %v3351_v1  ;;  %v2244_v36 = vmul.f32 %v7052_v20, %v2101_v26  ;;  %v3668_v5 = vsel %vm3640_vm7, %v10253_v16, %v3612_v62  ;;  %v4036_v37 = vadd.f32 %v4004_v47, %v7684_v53 }
 0x300   : > { %v2362_v52 = vsel %vm2335_vm2, %v2307_v54, %v10251_v60  ;;  %v3058_v28 = vadd.f32 %v3026_v9, %v2797_v32  ;;  %v4200_v33 = vmul.f32 %v7159_v48, %v2363_v10  ;;  %v7798_v39 = vpop.eup %6013  ;;  %v10254_v54 = vrot.slane %v7708_v29, 3 }
 0x301   : > { %v3548_v34 = vmul.f32 %v7120_v3, %v3407_v23  ;;  %v7809_v16 = vmul.f32 %v7442_v11, %v7708_v29  ;;  %v4396_v53 = vmul.f32 %v7162_v0, %v2624_v49  ;;  %v2505_v9 = vmul.f32 %v7074_v8, %v2362_v52 }
 0x302   : > { %v2623_v32 = vsel %vm2596_vm3, %v2568_v63, %v10254_v54  ;;  %v3319_v60 = vadd.f32 %v3287_v43, %v3058_v28  ;;  %v4232_v47 = vadd.f32 %v4200_v33, %v4036_v37  ;;  %v7812_v10 = vpop.eup %6015  ;;  %v10256_v50 = vrot.slane %v7708_v29, 4 }
 0x303   : > { %10255 = vst [vmem:[#allocation45_spill] sm:$0xff] %v7812_v10  ;;  %v3809_v43 = vmul.f32 %v7133_v2, %v3668_v5  ;;  %v2276_v54 = vadd.f32 %v2244_v36, %v2015_v35  ;;  %v7823_v38 = vmul.f32 %v7094_v4, %v2623_v32  ;;  %v4592_v49 = vmul.f32 %v7169_v25, %v2885_v40 }
 0x304   : > { %v7819_v63 = vsel %vm2857_vm4, %v2829_v27, %v10256_v50  ;;  %v3580_v28 = vadd.f32 %v3548_v34, %v3319_v60  ;;  %v4428_v37 = vadd.f32 %v4396_v53, %v4232_v47  ;;  %v10257_v33 = vrot.slane %v7708_v29, 5  ;;  %v10258_v50 = vld [vmem:[#allocation27_spill] sm:$0xff]  ;;  %v10260_v47 = vld [vmem:[#allocation30_spill] sm:$0xff] }
 0x305   : > { %v4005_v27 = vmul.f32 %v7145_v51, %v2101_v26  ;;  %v7834_v34 = vmul.f32 %v6010_v56, %v10258_v50  ;;  %v10259_v35 = vrot.slane %v7708_v29, 6  ;;  %v4788_v40 = vmul.f32 %v7172_v6, %v3146_v46 }
 0x306   : > { %v7830_v10 = vsel %vm3118_vm5, %v3090_v22, %v10257_v33  ;;  %v3841_v42 = vadd.f32 %v3809_v43, %v3580_v28  ;;  %v4624_v60 = vadd.f32 %v4592_v49, %v4428_v37  ;;  %v7844_v53 = vmul.f32 %v6012_v61, %v10260_v47 }
 0x307   : > { %v7840_v36 = vsel %vm3379_vm6, %v3351_v1, %v10259_v35  ;;  %v10261_v22 = vrot.slane %v7708_v29, 7  ;;  %v4201_v28 = vmul.f32 %v7159_v48, %v2362_v52  ;;  %v4397_v43 = vmul.f32 %v7162_v0, %v2623_v32 }
 0x308   : > { %v4037_v56 = vadd.f32 %v4005_v27, %v3841_v42  ;;  %v4593_v1 = vmul.f32 %v7169_v25, %v7819_v63  ;;  %v4820_v37 = vadd.f32 %v4788_v40, %v4624_v60  ;;  %v4984_v46 = vmul.f32 %v7217_v57, %v3407_v23 }
 0x309   : > { %v7850_v26 = vsel %vm3640_vm7, %v3612_v62, %v10261_v22  ;;  %v1835_v61 = vmul.f32 %v10237_v13, %v7834_v34  ;;  %v4789_v33 = vmul.f32 %v7172_v6, %v7830_v10  ;;  %v5180_v62 = vmul.f32 %v7243_v58, %v3668_v5 }
 0x30a   : > { %v4233_v49 = vadd.f32 %v4201_v28, %v4037_v56  ;;  %v10079_v42 = vrot.slane %v7834_v34, 1  ;;  %v5016_v52 = vadd.f32 %v4984_v46, %v4820_v37  ;;  %v5376_v32 = vmul.f32 %v7442_v11, %v7670_v19 }
 0x30b   : > { %v1834_v27 = vmul.f32 %v10237_v13, %v7844_v53  ;;  %v1999_v23 = vmul.f32 %v7038_v45, %v7844_v53  ;;  %v2062_v60 = vrot.slane %v7844_v53, 1  ;;  %v2323_v40 = vrot.slane %v7844_v53, 2 }
 0x30c   : > { %v4429_v50 = vadd.f32 %v4397_v43, %v4233_v49  ;;  %v5212_v5 = vadd.f32 %v5180_v62, %v5016_v52  ;;  %v2584_v56 = vrot.slane %v7844_v53, 3  ;;  %v10262_v43 = vrot.slane %v7281_v15, 1 }
 0x30d   : > { %v2030_v47 = vadd.f32 %v7693_v55, %v1834_v27  ;;  %v2031_v22 = vadd.f32 %v1999_v23, %v1835_v61  ;;  %v2085_v37 = vsel %vm2074_vm1, %v2062_v60, %v10079_v42  ;;  %v2845_v49 = vrot.slane %v7844_v53, 4 }
 0x30e   : > { %v4625_v28 = vadd.f32 %v4593_v1, %v4429_v50  ;;  %v2086_v46 = vsel %vm2074_vm1, %v10262_v43, %v2062_v60  ;;  %v5408_v35 = vadd.f32 %v5376_v32, %v5212_v5  ;;  %v2260_v61 = vmul.f32 %v7052_v20, %v2085_v37 }
 0x30f   : > { %v2259_v55 = vmul.f32 %v7052_v20, %v2086_v46  ;;  %v10263_v1 = vrot.slane %v7281_v15, 2  ;;  %v4985_v27 = vmul.f32 %v7217_v57, %v7840_v36  ;;  %v10264_v50 = vrot.slane %v7834_v34, 2 }
 0x310   : > { %v4821_v52 = vadd.f32 %v4789_v33, %v4625_v28  ;;  %v5440_v60 = vadd.f32 %v5408_v35, %v10230_v41  ;;  %v10265_v42 = vrot.slane %v7281_v15, 3  ;;  %v2537_v28 = vadd.f32 %v2505_v9, %v2276_v54 }
 0x311   : > { %v2347_v62 = vsel %vm2335_vm2, %v10263_v1, %v2323_v40  ;;  %v2346_v32 = vsel %vm2335_vm2, %v2323_v40, %v10264_v50  ;;  %v2291_v5 = vadd.f32 %v2259_v55, %v2030_v47  ;;  %v5181_v23 = vmul.f32 %v7243_v58, %v7850_v26 }
 0x312   : > { %v2520_v43 = vmul.f32 %v7074_v8, %v2347_v62  ;;  %v2608_v33 = vsel %vm2596_vm3, %v10265_v42, %v2584_v56  ;;  %v5017_v1 = vadd.f32 %v4985_v27, %v4821_v52  ;;  %v2292_v20 = vadd.f32 %v2260_v61, %v2031_v22  ;;  %5472 = vst [vmem:[%s7541_s26 + $0x18] sm:$0xff] %v5440_v60 }
 0x313   : > { %v10090_v13 = vrot.slane %v7834_v34, 4  ;;  %v2781_v41 = vmul.f32 %v7094_v4, %v2608_v33  ;;  %v10266_v35 = vrot.slane %v7281_v15, 4  ;;  %v2521_v42 = vmul.f32 %v7074_v8, %v2346_v32 }
 0x314   : > { %v2552_v40 = vadd.f32 %v2520_v43, %v2291_v5  ;;  %v5213_v55 = vadd.f32 %v5181_v23, %v5017_v1  ;;  %v3106_v9 = vrot.slane %v7844_v53, 5  ;;  %v3367_v54 = vrot.slane %v7844_v53, 6 }
 0x315   : > { %v2869_v47 = vsel %vm2857_vm4, %v10266_v35, %v2845_v49  ;;  %v10267_v22 = vrot.slane %v7834_v34, 3  ;;  %v3628_v50 = vrot.slane %v7844_v53, 7  ;;  %v2553_v5 = vadd.f32 %v2521_v42, %v2292_v20 }
 0x316   : > { %v2813_v52 = vadd.f32 %v2781_v41, %v2552_v40  ;;  %v3042_v27 = vmul.f32 %v7098_v14, %v2869_v47  ;;  %v5409_v60 = vadd.f32 %v7809_v16, %v5213_v55  ;;  %v10268_v23 = vrot.slane %v7281_v15, 5 }
 0x317   : > { %v2607_v61 = vsel %vm2596_vm3, %v2584_v56, %v10267_v22  ;;  %6017 = vrcp.f32 %v7763_v24  ;;  %v2798_v1 = vadd.f32 %v7823_v38, %v2537_v28  ;;  %v10089_v56 = vrot.slane %v7834_v34, 5 }
 0x318   : > { %v3130_v43 = vsel %vm3118_vm5, %v10268_v23, %v3106_v9  ;;  %v3074_v40 = vadd.f32 %v3042_v27, %v2813_v52  ;;  %v5441_v35 = vadd.f32 %v5409_v60, %v7670_v19  ;;  %v2782_v16 = vmul.f32 %v7094_v4, %v2607_v61 }
 0x319   : > { %v3303_v41 = vmul.f32 %v7105_v7, %v3130_v43  ;;  %v10269_v20 = vrot.slane %v7281_v15, 6  ;;  %v4020_v42 = vmul.f32 %v7145_v51, %v2086_v46  ;;  %v2868_v24 = vsel %vm2857_vm4, %v2845_v49, %v10090_v13 }
 0x31a   : > { %v10270_v19 = vrot.slane %v7281_v15, 7  ;;  %v3027_v52 = vmul.f32 %v7098_v14, %v7819_v63  ;;  %5473 = vst [vmem:[%s7541_s26 + $0x20] sm:$0xff] %v5441_v35  ;;  %v2814_v46 = vadd.f32 %v2782_v16, %v2553_v5  ;;  %6019 = vpow2.f32 %v7712_v59 }
 0x31b   : > { %v3391_v55 = vsel %vm3379_vm6, %v10269_v20, %v3367_v54  ;;  %v3335_v38 = vadd.f32 %v3303_v41, %v3074_v40  ;;  %v4052_v27 = vadd.f32 %v4020_v42, %v7695_v44  ;;  %v4216_v23 = vmul.f32 %v7159_v48, %v2347_v62 }
 0x31c   : > { %v3564_v28 = vmul.f32 %v7120_v3, %v3391_v55  ;;  %v3652_v22 = vsel %vm3640_vm7, %v10270_v19, %v3628_v50  ;;  %6021 = vpow2.f32 %v7720_v17  ;;  %v3059_v40 = vadd.f32 %v3027_v52, %v2798_v1 }
 0x31d   : > { %v3825_v60 = vmul.f32 %v7133_v2, %v3652_v22  ;;  %v10086_v41 = vrot.slane %v7834_v34, 6  ;;  %v3043_v20 = vmul.f32 %v7098_v14, %v2868_v24  ;;  %v3129_v63 = vsel %vm3118_vm5, %v3106_v9, %v10089_v56 }
 0x31e   : > { %v3596_v49 = vadd.f32 %v3564_v28, %v3335_v38  ;;  %v4021_v59 = vmul.f32 %v7145_v51, %v2085_v37  ;;  %v4248_v5 = vadd.f32 %v4216_v23, %v4052_v27  ;;  %v4412_v35 = vmul.f32 %v7162_v0, %v2608_v33 }
 0x31f   : > { %v3288_v62 = vmul.f32 %v7105_v7, %v7830_v10  ;;  %v3075_v17 = vadd.f32 %v3043_v20, %v2814_v46  ;;  %v1268_v1 = vadd.f32 1.0, %v7798_v39  ;;  %6023 = vpow2.f32 %v7728_v21  ;;  %v7977_v46 = vpop.f32.mrb[10].mxu1 }
 0x320   : > { %v3857_v44 = vadd.f32 %v3825_v60, %v3596_v49  ;;  %v4217_v42 = vmul.f32 %v7159_v48, %v2346_v32  ;;  %v4444_v38 = vadd.f32 %v4412_v35, %v4248_v5  ;;  %v4608_v9 = vmul.f32 %v7169_v25, %v2869_v47  ;;  %10271 = vst [vmem:[#allocation27_spill] sm:$0xff] %v7977_v46  ;;  %v7984_v60 = vpop.f32.mrb[11].mxu1 }
 0x321   : > { %v6018_v28 = vpop.eup %6017  ;;  %v3320_v19 = vadd.f32 %v3288_v62, %v3059_v40  ;;  %v10085_v37 = vrot.slane %v7834_v34, 7  ;;  %v3304_v33 = vmul.f32 %v7105_v7, %v3129_v63  ;;  %v3390_v10 = vsel %vm3379_vm6, %v3367_v54, %v10086_v41  ;;  %10272 = vst [vmem:[#allocation30_spill] sm:$0xff] %v7984_v60 }
 0x322   : > { %v4053_v16 = vadd.f32 %v4021_v59, %v3857_v44  ;;  %v4413_v21 = vmul.f32 %v7162_v0, %v2607_v61  ;;  %v4640_v52 = vadd.f32 %v4608_v9, %v4444_v38  ;;  %v4804_v32 = vmul.f32 %v7172_v6, %v3130_v43 }
 0x323   : > { %v3549_v47 = vmul.f32 %v7120_v3, %v7840_v36  ;;  %v3336_v27 = vadd.f32 %v3304_v33, %v3075_v17  ;;  %6025 = vrcp.f32 %v1268_v1  ;;  %v7982_v49 = vand.u32 63, %v7736_v12 }
 0x324   : > { %v4249_v39 = vadd.f32 %v4217_v42, %v4053_v16  ;;  %v4609_v54 = vmul.f32 %v7169_v25, %v2868_v24  ;;  %v4836_v40 = vadd.f32 %v4804_v32, %v4640_v52  ;;  %v5000_v61 = vmul.f32 %v7217_v57, %v3391_v55  ;;  %v6020_v20 = vpop.eup %6019  ;;  %v10273_v16 = vld [vmem:[#allocation20_spill] sm:$0xff] }
 0x325   : > { %v3581_v43 = vadd.f32 %v3549_v47, %v3320_v19  ;;  %v3565_v44 = vmul.f32 %v7120_v3, %v3390_v10  ;;  %v3651_v12 = vsel %vm3640_vm7, %v3628_v50, %v10085_v37  ;;  %v7996_v36 = vand.u32 63, %v7739_v30 }
 0x326   : > { %v4445_v23 = vadd.f32 %v4413_v21, %v4249_v39  ;;  %v6022_v59 = vpop.eup %6021  ;;  %v4805_v24 = vmul.f32 %v7172_v6, %v3129_v63  ;;  %v5032_v35 = vadd.f32 %v5000_v61, %v4836_v40  ;;  %v5196_v55 = vmul.f32 %v7243_v58, %v3652_v22  ;;  %v10275_v39 = vld [vmem:[#allocation37_spill] sm:$0xff]  ;;  %v10276_v61 = vld [vmem:[#allocation12_spill] sm:$0xff] }
 0x327   : > { %v3810_v62 = vmul.f32 %v7133_v2, %v7850_v26  ;;  %v3597_v17 = vadd.f32 %v3565_v44, %v3336_v27  ;;  %v8003_v1 = vmul.f32 %v6018_v28, %v7628_v31  ;;  %v5682_v42 = vmul.f32 -1.442695, %v10273_v16  ;;  %v10274_v26 = vld [vmem:[#allocation45_spill] sm:$0xff] }
 0x328   : > { %v4641_v5 = vadd.f32 %v4609_v54, %v4445_v23  ;;  %v5001_v30 = vmul.f32 %v7217_v57, %v3390_v10  ;;  %v5228_v38 = vadd.f32 %v5196_v55, %v5032_v35  ;;  %v5392_v9 = vmul.f32 %v7442_v11, %v7844_v53 }
 0x329   : > { %v6024_v63 = vpop.eup %6023  ;;  %v1984_v22 = vmul.f32 %v7038_v45, %v7708_v29  ;;  %v3826_v19 = vmul.f32 %v7133_v2, %v3651_v12  ;;  %v1285_v33 = vadd.f32 1.0, %v10274_v26  ;;  %v5681_v31 = vmul.f32 -1.442695, %v10275_v39 }
 0x32a   : > { %v4837_v50 = vadd.f32 %v4805_v24, %v4641_v5  ;;  %v8014_v28 = vadd.f32 %v3810_v62, %v3581_v43  ;;  %v5197_v52 = vmul.f32 %v7243_v58, %v3651_v12  ;;  %v5424_v10 = vadd.f32 %v5392_v9, %v5228_v38 }
 0x32b   : > { %v8019_v32 = vmul.f32 %v7038_v45, %v7834_v34  ;;  %v5393_v47 = vmul.f32 %v7442_v11, %v7834_v34  ;;  %v8023_v27 = vadd.f32 %v3826_v19, %v3597_v17  ;;  %v1284_v23 = vadd.f32 1.0, %v6020_v20 }
 0x32c   : > { %v5033_v21 = vadd.f32 %v5001_v30, %v4837_v50  ;;  %v5456_v40 = vadd.f32 %v5424_v10, %v7281_v15  ;;  %v1821_v43 = vmul.f32 %v10276_v61, %v8003_v1  ;;  %v10084_v44 = vrot.slane %v8003_v1, 1  ;;  %v10277_v15 = vld [vmem:[#allocation43_spill] sm:$0xff] }
 0x32d   : > { %v6026_v12 = vpop.eup %6025  ;;  %v10083_v5 = vrot.slane %v8003_v1, 2  ;;  %v10087_v24 = vrot.slane %v8003_v1, 3  ;;  %6027 = vrcp.f32 %v1285_v33  ;;  %v1271_v35 = vadd.f32 1.0, %v6022_v59 }
 0x32e   : > { %v5229_v54 = vadd.f32 %v5197_v52, %v5033_v21  ;;  %5488 = vst [vmem:[%s7541_s26 + $0x98] sm:$0xff] %v5456_v40  ;;  %v10088_v20 = vrot.slane %v8003_v1, 4  ;;  %v10091_v62 = vrot.slane %v8003_v1, 5  ;;  %v8035_v17 = vmul.f32 %v6026_v12, %v10277_v15 }
 0x32f   : > { %6029 = vrcp.f32 %v1284_v23  ;;  %v1270_v38 = vadd.f32 1.0, %v6024_v63  ;;  %v10281_v15 = vrot.slane %v7708_v29, 3  ;;  %v10294_v39 = vrot.slane %v8003_v1, 7 }
 0x330   : > { %v5425_v55 = vadd.f32 %v5393_v47, %v5229_v54  ;;  %v1820_v59 = vmul.f32 %v10276_v61, %v8035_v17  ;;  %v1985_v19 = vmul.f32 %v7038_v45, %v8035_v17  ;;  %v2048_v26 = vrot.slane %v8035_v17, 1  ;;  %v10279_v54 = vld [vmem:[#allocation16_spill] sm:$0xff] }
 0x331   : > { %v2309_v33 = vrot.slane %v8035_v17, 2  ;;  %v2570_v21 = vrot.slane %v8035_v17, 3  ;;  %v2831_v52 = vrot.slane %v8035_v17, 4  ;;  %6031 = vrcp.f32 %v1271_v35 }
 0x332   : > { %v5457_v9 = vadd.f32 %v5425_v55, %v7844_v53  ;;  %v2016_v10 = vadd.f32 %v1984_v22, %v1820_v59  ;;  %v2017_v63 = vadd.f32 %v1985_v19, %v1821_v43  ;;  %v2099_v53 = vsel %vm2074_vm1, %v2048_v26, %v10084_v44  ;;  %v10284_v44 = vld [vmem:[#allocation38_spill] sm:$0xff] }
 0x333   : > { %v10278_v47 = vrot.slane %v7708_v29, 1  ;;  %v2246_v12 = vmul.f32 %v10279_v54, %v2099_v53  ;;  %v2360_v22 = vsel %vm2335_vm2, %v2309_v33, %v10083_v5  ;;  %v10280_v43 = vrot.slane %v7708_v29, 2 }
 0x334   : > { %5489 = vst [vmem:[%s7541_s26 + $0xa0] sm:$0xff] %v5457_v9  ;;  %v8069_v55 = vmul.f32 %v7442_v11, %v8003_v1  ;;  %v2622_v9 = vsel %vm2596_vm3, %v10281_v15, %v2570_v21  ;;  %v3092_v59 = vrot.slane %v8035_v17, 5  ;;  %6033 = vrcp.f32 %v1270_v38  ;;  %v8085_v15 = vld [vmem:[%s10007_s4] ss:$0 sm:$0xff] }
 0x335   : > { %v2100_v23 = vsel %vm2074_vm1, %v10278_v47, %v2048_v26  ;;  %v2361_v35 = vsel %vm2335_vm2, %v10280_v43, %v2309_v33  ;;  %v2278_v26 = vadd.f32 %v2246_v12, %v2017_v63  ;;  %6035 = vpow2.f32 %v5682_v42  ;;  %10283 = vst [vmem:[#allocation45_spill] sm:$0xff] %v8085_v15 }
 0x336   : > { %v2245_v40 = vmul.f32 %v10279_v54, %v2100_v23  ;;  %v2506_v47 = vmul.f32 %v7074_v8, %v2361_v35  ;;  %v2507_v5 = vmul.f32 %v7074_v8, %v2360_v22  ;;  %v10282_v33 = vrot.slane %v7708_v29, 4 }
 0x337   : > { %6037 = vpow2.f32 %v5681_v31  ;;  %v8089_v38 = vadd.f32 %v8085_v15, %v10284_v44  ;;  %v2621_v42 = vsel %vm2596_vm3, %v2570_v21, %v10087_v24  ;;  %v2882_v31 = vsel %vm2857_vm4, %v2831_v52, %v10088_v20  ;;  %v10288_v20 = vld [vmem:[#allocation26_spill] sm:$0xff] }
 0x338   : > { %v2277_v19 = vadd.f32 %v2245_v40, %v2016_v10  ;;  %v2883_v43 = vsel %vm2857_vm4, %v10282_v33, %v2831_v52  ;;  %v6028_v10 = vpop.eup %6027  ;;  %v2767_v40 = vmul.f32 %v7094_v4, %v2622_v9  ;;  %v2539_v12 = vadd.f32 %v2507_v5, %v2278_v26 }
 0x339   : > { %10285 = vst [vmem:[#allocation12_spill] sm:$0xff] %v8089_v38  ;;  %v10286_v33 = vrot.slane %v7708_v29, 5  ;;  %v6030_v37 = vpop.eup %6029  ;;  %v3028_v21 = vmul.f32 %v7098_v14, %v2883_v43  ;;  %v3143_v24 = vsel %vm3118_vm5, %v3092_v59, %v10091_v62  ;;  %v4006_v5 = vmul.f32 %v7145_v51, %v2100_v23 }
 0x33a   : > { %v2538_v63 = vadd.f32 %v2506_v47, %v2277_v19  ;;  %v3353_v19 = vrot.slane %v8035_v17, 6  ;;  %v3614_v47 = vrot.slane %v8035_v17, 7  ;;  %v2768_v52 = vmul.f32 %v7094_v4, %v2621_v42 }
 0x33b   : > { %v3144_v44 = vsel %vm3118_vm5, %v10286_v33, %v3092_v59  ;;  %v10287_v26 = vrot.slane %v7708_v29, 6  ;;  %v8118_v56 = vmul.f32 %v6028_v10, %v10288_v20  ;;  %v10290_v59 = vrot.slane %v7708_v29, 7 }
 0x33c   : > { %v2799_v41 = vadd.f32 %v2767_v40, %v2538_v63  ;;  %v8121_v63 = vmul.f32 -1.442695, %v8089_v38  ;;  %v6032_v40 = vpop.eup %6031  ;;  %v3289_v30 = vmul.f32 %v7105_v7, %v3144_v44  ;;  %v4038_v62 = vadd.f32 %v4006_v5, %v8014_v28 }
 0x33d   : > { %v3405_v33 = vsel %vm3379_vm6, %v10287_v26, %v3353_v19  ;;  %10289 = vst [vmem:[#allocation43_spill] sm:$0xff] %v8118_v56  ;;  %v3666_v23 = vsel %vm3640_vm7, %v10290_v59, %v3614_v47  ;;  %v8129_v50 = vadd.f32 %v2768_v52, %v2539_v12  ;;  %v8132_v26 = vmul.f32 %v7098_v14, %v2882_v31 }
 0x33e   : > { %v3060_v13 = vadd.f32 %v3028_v21, %v2799_v41  ;;  %v8135_v20 = vmul.f32 %v7105_v7, %v3143_v24  ;;  %v4202_v10 = vmul.f32 %v7159_v48, %v2361_v35  ;;  %v8138_v41 = vpop.f32.mrb[12].mxu0  ;;  %v10292_v38 = vrot.slane %v8003_v1, 6  ;;  %v6034_v52 = vpop.eup %6033 }
 0x33f   : > { %10291 = vst [vmem:[#allocation38_spill] sm:$0xff] %v8138_v41  ;;  %v3550_v28 = vmul.f32 %v7120_v3, %v3405_v33  ;;  %v4007_v12 = vmul.f32 %v7145_v51, %v2099_v53  ;;  %v8146_v5 = vpop.f32.mrb[13].mxu0  ;;  %v3665_v35 = vsel %vm3640_vm7, %v3614_v47, %v10294_v39  ;;  %v3811_v41 = vmul.f32 %v7133_v2, %v3666_v23  ;;  %v8154_v60 = vpop.eup %6035 }
 0x340   : > { %v3321_v21 = vadd.f32 %v3289_v30, %v3060_v13  ;;  %v3404_v59 = vsel %vm3379_vm6, %v3353_v19, %v10292_v38  ;;  %10293 = vst [vmem:[#allocation26_spill] sm:$0xff] %v8146_v5  ;;  %v4234_v13 = vadd.f32 %v4202_v10, %v4038_v62  ;;  %v4398_v30 = vmul.f32 %v7162_v0, %v2622_v9 }
 0x341   : > { %10295 = vst [vmem:[#allocation46_spill] sm:$0xff] %v8154_v60  ;;  %v4203_v19 = vmul.f32 %v7159_v48, %v2360_v22  ;;  %v4399_v53 = vmul.f32 %v7162_v0, %v2621_v42  ;;  %v4594_v5 = vmul.f32 %v7169_v25, %v2883_v43  ;;  %v8159_v16 = vpop.eup %6037  ;;  %v4595_v15 = vmul.f32 %v7169_v25, %v2882_v31  ;;  %v8309_v60 = vpop.f32.mrb[12].mxu1 }
 0x342   : > { %v3582_v38 = vadd.f32 %v3550_v28, %v3321_v21  ;;  %10296 = vst [vmem:[#allocation47_spill] sm:$0xff] %v8159_v16  ;;  %v4430_v46 = vadd.f32 %v4398_v30, %v4234_v13  ;;  %v4790_v39 = vmul.f32 %v7172_v6, %v3144_v44  ;;  %v4791_v62 = vmul.f32 %v7172_v6, %v3143_v24 }
 0x343   : > { %v4986_v9 = vmul.f32 %v7217_v57, %v3405_v33  ;;  %v4987_v10 = vmul.f32 %v7217_v57, %v3404_v59  ;;  %v5182_v22 = vmul.f32 %v7243_v58, %v3666_v23  ;;  %v5183_v42 = vmul.f32 %v7243_v58, %v3665_v35 }
 0x344   : > { %v3843_v47 = vadd.f32 %v3811_v41, %v3582_v38  ;;  %v4626_v21 = vadd.f32 %v4594_v5, %v4430_v46  ;;  %v5378_v43 = vmul.f32 %v7442_v11, %v8035_v17  ;;  %v1837_v31 = vmul.f32 %v10276_v61, %v8118_v56  ;;  %v10297_v41 = vld [vmem:[#allocation41_spill] sm:$0xff]  ;;  %v10298_v11 = vld [vmem:[#allocation35_spill] sm:$0xff] }
 0x345   : > { %v8175_v33 = vmul.f32 %v6030_v37, %v10297_v41  ;;  %v8185_v37 = vld [vmem:[#allocation7 + $0x10] ss:$0 sm:$0xff]  ;;  %v8195_v5 = vmul.f32 %v6032_v40, %v10298_v11  ;;  %v10303_v16 = vrot.slane %v7834_v34, 3  ;;  %vm2115_vm8 = vcmp.ge.s32.totalorder %v7996_v36, 7 }
 0x346   : > { %v4039_v28 = vadd.f32 %v4007_v12, %v3843_v47  ;;  %v4822_v13 = vadd.f32 %v4790_v39, %v4626_v21  ;;  %v8189_v39 = vmul.f32 %v8185_v37, %v8118_v56  ;;  %vm2376_vm9 = vcmp.ge.s32.totalorder %v7996_v36, 6 }
 0x347   : > { %v1836_v12 = vmul.f32 %v10276_v61, %v8175_v33  ;;  %v2064_v38 = vrot.slane %v8175_v33, 1  ;;  %v2325_v21 = vrot.slane %v8175_v33, 2  ;;  %v2847_v23 = vrot.slane %v8175_v33, 4 }
 0x348   : > { %v4235_v30 = vadd.f32 %v4203_v19, %v4039_v28  ;;  %v5018_v47 = vadd.f32 %v4986_v9, %v4822_v13  ;;  %v2586_v28 = vrot.slane %v8175_v33, 3  ;;  %v2001_v9 = vmul.f32 %v7038_v45, %v8175_v33 }
 0x349   : > { %v2032_v19 = vadd.f32 %v8019_v32, %v1836_v12  ;;  %v10299_v13 = vrot.slane %v7834_v34, 1  ;;  %v10302_v12 = vld [vmem:[#allocation18_spill] sm:$0xff]  ;;  %vm2637_vm10 = vcmp.ge.s32.totalorder %v7996_v36, 5  ;;  %vm2898_vm11 = vcmp.ge.s32.totalorder %v7996_v36, 4 }
 0x34a   : > { %v4431_v41 = vadd.f32 %v4399_v53, %v4235_v30  ;;  %v5214_v46 = vadd.f32 %v5182_v22, %v5018_v47  ;;  %v10300_v53 = vrot.slane %v8118_v56, 1  ;;  %v10301_v22 = vrot.slane %v7834_v34, 2  ;;  %10316 = vst [vmem:[#allocation18_spill] sm:$0xff] %v8309_v60 }
 0x34b   : > { %v2084_v24 = vsel %vm2074_vm1, %v10299_v13, %v2064_v38  ;;  %v8214_v47 = vmul.f32 %v6034_v52, %v10302_v12  ;;  %v8229_v52 = vadd.f32 %v2001_v9, %v1837_v31  ;;  %v10306_v31 = vrot.slane %v8118_v56, 3 }
 0x34c   : > { %v4627_v44 = vadd.f32 %v4595_v15, %v4431_v41  ;;  %v2083_v32 = vsel %vm2074_vm1, %v2064_v38, %v10300_v53  ;;  %v2261_v40 = vmul.f32 %v10279_v54, %v2084_v24  ;;  %v2345_v30 = vsel %vm2335_vm2, %v10301_v22, %v2325_v21 }
 0x34d   : > { %v5410_v11 = vadd.f32 %v5378_v43, %v5214_v46  ;;  %v8218_v15 = vadd.f32 %v8132_v26, %v8129_v50  ;;  %v8221_v41 = vmul.f32 %v7120_v3, %v3404_v59  ;;  %v2522_v53 = vmul.f32 %v7074_v8, %v2345_v30 }
 0x34e   : > { %v4823_v38 = vadd.f32 %v4791_v62, %v4627_v44  ;;  %v2293_v13 = vadd.f32 %v2261_v40, %v2032_v19  ;;  %v2606_v43 = vsel %vm2596_vm3, %v10303_v16, %v2586_v28  ;;  %v8232_v22 = vmul.f32 %v10279_v54, %v2083_v32 }
 0x34f   : > { %v5442_v46 = vadd.f32 %v5410_v11, %v7708_v29  ;;  %v8235_v50 = vmul.f32 %v7133_v2, %v3665_v35  ;;  %v2783_v62 = vmul.f32 %v7094_v4, %v2606_v43  ;;  %v10304_v44 = vrot.slane %v7834_v34, 4 }
 0x350   : > { %v5019_v26 = vadd.f32 %v4987_v10, %v4823_v38  ;;  %v2554_v59 = vadd.f32 %v2522_v53, %v2293_v13  ;;  %v10305_v29 = vrot.slane %v8118_v56, 2  ;;  %v8253_v35 = vsel %vm2596_vm3, %v2586_v28, %v10306_v31 }
 0x351   : > { %v2867_v19 = vsel %vm2857_vm4, %v10304_v44, %v2847_v23  ;;  %5474 = vst [vmem:[%s7541_s26 + $0x28] sm:$0xff] %v5442_v46  ;;  %v3108_v10 = vrot.slane %v8175_v33, 5  ;;  %v3369_v9 = vrot.slane %v8175_v33, 6  ;;  %v3630_v38 = vrot.slane %v8175_v33, 7 }
 0x352   : > { %v8247_v16 = vsel %vm2335_vm2, %v2325_v21, %v10305_v29  ;;  %v5215_v40 = vadd.f32 %v5183_v42, %v5019_v26  ;;  %v2815_v11 = vadd.f32 %v2783_v62, %v2554_v59  ;;  %v3044_v12 = vmul.f32 %v7098_v14, %v2867_v19 }
 0x353   : > { %v10307_v13 = vrot.slane %v8118_v56, 4  ;;  %v10308_v53 = vrot.slane %v7834_v34, 5  ;;  %v10309_v46 = vrot.slane %v7834_v34, 6  ;;  %v4022_v26 = vmul.f32 %v7145_v51, %v2084_v24 }
 0x354   : > { %v5411_v59 = vadd.f32 %v8069_v55, %v5215_v40  ;;  %v3076_v62 = vadd.f32 %v3044_v12, %v2815_v11  ;;  %v10310_v44 = vrot.slane %v8118_v56, 5  ;;  %v10311_v31 = vrot.slane %v8118_v56, 6 }
 0x355   : > { %v8263_v21 = vsel %vm2857_vm4, %v2847_v23, %v10307_v13  ;;  %v3128_v28 = vsel %vm3118_vm5, %v10308_v53, %v3108_v10  ;;  %v3389_v42 = vsel %vm3379_vm6, %v10309_v46, %v3369_v9  ;;  %v10313_v24 = vrot.slane %v8118_v56, 7 }
 0x356   : > { %v8279_v23 = vsel %vm3118_vm5, %v3108_v10, %v10310_v44  ;;  %v3305_v29 = vmul.f32 %v7105_v7, %v3128_v28  ;;  %v8287_v13 = vsel %vm3379_vm6, %v3369_v9, %v10311_v31  ;;  %v3566_v55 = vmul.f32 %v7120_v3, %v3389_v42 }
 0x357   : > { %10312 = vst [vmem:[#allocation41_spill] sm:$0xff] %v8287_v13  ;;  %v8294_v40 = vsel %vm3640_vm7, %v3630_v38, %v10313_v24  ;;  %v10315_v10 = vrot.slane %v7834_v34, 7  ;;  %v5443_v12 = vadd.f32 %v5411_v59, %v8035_v17  ;;  %v4023_v46 = vmul.f32 %v7145_v51, %v2083_v32 }
 0x358   : > { %10314 = vst [vmem:[#allocation35_spill] sm:$0xff] %v8294_v40  ;;  %v3337_v53 = vadd.f32 %v3305_v29, %v3076_v62  ;;  %v4054_v9 = vadd.f32 %v4022_v26, %v8023_v27  ;;  %v4218_v31 = vmul.f32 %v7159_v48, %v2345_v30  ;;  %v4219_v24 = vmul.f32 %v7159_v48, %v8247_v16  ;;  %v8317_v26 = vpop.f32.mrb[13].mxu1 }
 0x359   : > { %v3650_v11 = vsel %vm3640_vm7, %v10315_v10, %v3630_v38  ;;  %v4414_v56 = vmul.f32 %v7162_v0, %v2606_v43  ;;  %5475 = vst [vmem:[%s7541_s26 + $0x30] sm:$0xff] %v5443_v12  ;;  %v4415_v32 = vmul.f32 %v7162_v0, %v8253_v35  ;;  %v4610_v27 = vmul.f32 %v7169_v25, %v2867_v19 }
 0x35a   : > { %v3827_v44 = vmul.f32 %v7133_v2, %v3650_v11  ;;  %v3598_v17 = vadd.f32 %v3566_v55, %v3337_v53  ;;  %v4611_v38 = vmul.f32 %v7169_v25, %v8263_v21  ;;  %10317 = vst [vmem:[#allocation48_spill] sm:$0xff] %v8317_v26  ;;  %v4250_v30 = vadd.f32 %v4218_v31, %v4054_v9  ;;  %v10318_v26 = vld [vmem:[#allocation44_spill] sm:$0xff] }
 0x35b   : > { %v4806_v59 = vmul.f32 %v7172_v6, %v3128_v28  ;;  %v4807_v43 = vmul.f32 %v7172_v6, %v8279_v23  ;;  %v5002_v62 = vmul.f32 %v7217_v57, %v3389_v42  ;;  %v5003_v55 = vmul.f32 %v7217_v57, %v8287_v13 }
 0x35c   : > { %v3859_v29 = vadd.f32 %v3827_v44, %v3598_v17  ;;  %v5198_v19 = vmul.f32 %v7243_v58, %v3650_v11  ;;  %v5199_v10 = vmul.f32 %v7243_v58, %v8294_v40  ;;  %v4446_v12 = vadd.f32 %v4414_v56, %v4250_v30 }
 0x35d   : > { %v5394_v28 = vmul.f32 %v8185_v37, %v8175_v33  ;;  %v1822_v53 = vmul.f32 %v10276_v61, %v8214_v47  ;;  %v1823_v42 = vmul.f32 %v10276_v61, %v8195_v5  ;;  %v1987_v44 = vmul.f32 %v7038_v45, %v8214_v47 }
 0x35e   : > { %v4055_v9 = vadd.f32 %v4023_v46, %v3859_v29  ;;  %v2050_v31 = vrot.slane %v8214_v47, 1  ;;  %v10099_v11 = vrot.slane %v8195_v5, 1  ;;  %v4642_v17 = vadd.f32 %v4610_v27, %v4446_v12 }
 0x35f   : > { %v2018_v56 = vadd.f32 %v10318_v26, %v1822_v53  ;;  %v2311_v30 = vrot.slane %v8214_v47, 2  ;;  %v10100_v60 = vrot.slane %v8195_v5, 2  ;;  %v2019_v13 = vadd.f32 %v1987_v44, %v1823_v42 }
 0x360   : > { %v4251_v40 = vadd.f32 %v4219_v24, %v4055_v9  ;;  %v8347_v46 = vsel %vm2074_vm1, %v2050_v31, %v10099_v11  ;;  %v10319_v29 = vrot.slane %v8003_v1, 1  ;;  %v4838_v12 = vadd.f32 %v4806_v59, %v4642_v17 }
 0x361   : > { %v2248_v24 = vmul.f32 %v10279_v54, %v8347_v46  ;;  %v8364_v42 = vsel %vm2335_vm2, %v2311_v30, %v10100_v60  ;;  %vm3159_vm12 = vcmp.ge.s32.totalorder %v7996_v36, 3  ;;  %v10320_v59 = vrot.slane %v8003_v1, 2 }
 0x362   : > { %v8353_v27 = vsel %vm2074_vm1, %v10319_v29, %v2050_v31  ;;  %v4447_v9 = vadd.f32 %v4415_v32, %v4251_v40  ;;  %v2509_v17 = vmul.f32 %v7074_v8, %v8364_v42  ;;  %v5034_v29 = vadd.f32 %v5002_v62, %v4838_v12 }
 0x363   : > { %v2211_v53 = vsel %vm2115_vm8, %v8353_v27, 0.0  ;;  %v8372_v31 = vsel %vm2335_vm2, %v10320_v59, %v2311_v30  ;;  %v2280_v11 = vadd.f32 %v2248_v24, %v2019_v13  ;;  %v2572_v26 = vrot.slane %v8214_v47, 3 }
 0x364   : > { %v2247_v44 = vmul.f32 %v10279_v54, %v2211_v53  ;;  %v2472_v60 = vsel %vm2376_vm9, %v8372_v31, 0.0  ;;  %v4643_v40 = vadd.f32 %v4611_v38, %v4447_v9  ;;  %v10109_v54 = vrot.slane %v8195_v5, 3 }
 0x365   : > { %v2508_v53 = vmul.f32 %v7074_v8, %v2472_v60  ;;  %vm3420_vm13 = vcmp.ge.s32.totalorder %v7996_v36, 2  ;;  %v5230_v30 = vadd.f32 %v5198_v19, %v5034_v29  ;;  %v2541_v59 = vadd.f32 %v2509_v17, %v2280_v11 }
 0x366   : > { %v2279_v32 = vadd.f32 %v2247_v44, %v2018_v56  ;;  %v10321_v45 = vrot.slane %v8003_v1, 3  ;;  %v2833_v62 = vrot.slane %v8214_v47, 4  ;;  %v4839_v12 = vadd.f32 %v4807_v43, %v4643_v40 }
 0x367   : > { %v8394_v60 = vsel %vm2596_vm3, %v2572_v26, %v10109_v54  ;;  %vm3681_vm14 = vcmp.ge.s32.totalorder %v7996_v36, 1  ;;  %vm3876_vm15 = vcmp.lt.s32.totalorder %v7982_v49, 63  ;;  %v10108_v11 = vrot.slane %v8195_v5, 4 }
 0x368   : > { %v8387_v13 = vsel %vm2596_vm3, %v10321_v45, %v2572_v26  ;;  %v2540_v24 = vadd.f32 %v2508_v53, %v2279_v32  ;;  %v5426_v45 = vadd.f32 %v5394_v28, %v5230_v30  ;;  %v2770_v43 = vmul.f32 %v7094_v4, %v8394_v60 }
 0x369   : > { %v2733_v38 = vsel %vm2637_vm10, %v8387_v13, 0.0  ;;  %v5035_v56 = vadd.f32 %v5003_v55, %v4839_v12  ;;  %v10322_v26 = vrot.slane %v8003_v1, 4  ;;  %v3094_v44 = vrot.slane %v8214_v47, 5 }
 0x36a   : > { %v2769_v19 = vmul.f32 %v7094_v4, %v2733_v38  ;;  %v10107_v17 = vrot.slane %v8195_v5, 5  ;;  %vm4072_vm0 = vcmp.lt.s32.totalorder %v7982_v49, 62  ;;  %v5458_v28 = vadd.f32 %v5426_v45, %v7834_v34 }
 0x36b   : > { %v2881_v9 = vsel %vm2857_vm4, %v10322_v26, %v2833_v62  ;;  %v2802_v40 = vadd.f32 %v2770_v43, %v2541_v59  ;;  %v8417_v55 = vsel %vm2857_vm4, %v2833_v62, %v10108_v11  ;;  %vm4268_vm8 = vcmp.lt.s32.totalorder %v7982_v49, 61 }
 0x36c   : > { %v2801_v29 = vadd.f32 %v2769_v19, %v2540_v24  ;;  %v5231_v32 = vadd.f32 %v5199_v10, %v5035_v56  ;;  %v2994_v53 = vsel %vm2898_vm11, %v2881_v9, 0.0  ;;  %v3031_v30 = vmul.f32 %v7098_v14, %v8417_v55  ;;  %5490 = vst [vmem:[%s7541_s26 + $0xa8] sm:$0xff] %v5458_v28 }
 0x36d   : > { %v8428_v34 = vsel %vm3118_vm5, %v3094_v44, %v10107_v17  ;;  %v3030_v59 = vmul.f32 %v7098_v14, %v2994_v53  ;;  %v10323_v62 = vrot.slane %v8003_v1, 5  ;;  %v3322_v24 = vadd.f32 %v8135_v20, %v8218_v15 }
 0x36e   : > { %v3292_v12 = vmul.f32 %v7105_v7, %v8428_v34  ;;  %v5427_v38 = vadd.f32 %v8189_v39, %v5231_v32  ;;  %v3063_v45 = vadd.f32 %v3031_v30, %v2802_v40  ;;  %v3355_v43 = vrot.slane %v8214_v47, 6 }
 0x36f   : > { %v3142_v10 = vsel %vm3118_vm5, %v10323_v62, %v3094_v44  ;;  %v3062_v56 = vadd.f32 %v3030_v59, %v2801_v29  ;;  %v10106_v44 = vrot.slane %v8195_v5, 6  ;;  %v3583_v28 = vadd.f32 %v8221_v41, %v3322_v24 }
 0x370   : > { %v3255_v19 = vsel %vm3159_vm12, %v3142_v10, 0.0  ;;  %v5459_v53 = vadd.f32 %v5427_v38, %v8175_v33  ;;  %v3324_v62 = vadd.f32 %v3292_v12, %v3063_v45  ;;  %v10324_v20 = vrot.slane %v8003_v1, 6 }
 0x371   : > { %v3291_v26 = vmul.f32 %v7105_v7, %v3255_v19  ;;  %v3616_v15 = vrot.slane %v8214_v47, 7  ;;  %v3402_v29 = vsel %vm3379_vm6, %v3355_v43, %v10106_v44  ;;  %v10105_v41 = vrot.slane %v8195_v5, 7  ;;  %v8479_v19 = vpop.f32.mrb[14].mxu0 }
 0x372   : > { %v3403_v39 = vsel %vm3379_vm6, %v10324_v20, %v3355_v43  ;;  %v2294_v33 = vadd.f32 %v8232_v22, %v8229_v52  ;;  %5491 = vst [vmem:[%s7541_s26 + $0xb0] sm:$0xff] %v5459_v53  ;;  %v3553_v59 = vmul.f32 %v7120_v3, %v3402_v29  ;;  %v10325_v12 = vrot.slane %v8003_v1, 7 }
 0x373   : > { %v3323_v40 = vadd.f32 %v3291_v26, %v3062_v56  ;;  %v3516_v32 = vsel %vm3420_vm13, %v3403_v39, 0.0  ;;  %v3663_v38 = vsel %vm3640_vm7, %v3616_v15, %v10105_v41  ;;  %v3844_v52 = vadd.f32 %v8235_v50, %v3583_v28 }
 0x374   : > { %v3552_v30 = vmul.f32 %v7120_v3, %v3516_v32  ;;  %v3664_v24 = vsel %vm3640_vm7, %v10325_v12, %v3616_v15  ;;  %v3972_v22 = vsel %vm3876_vm15, %v8353_v27, 0.0  ;;  %v3585_v56 = vadd.f32 %v3553_v59, %v3324_v62 }
 0x375   : > { %v3777_v45 = vsel %vm3681_vm14, %v3664_v24, 0.0  ;;  %v3814_v53 = vmul.f32 %v7133_v2, %v3663_v38  ;;  %v2523_v20 = vmul.f32 %v7074_v8, %v8247_v16  ;;  %v4008_v36 = vmul.f32 %v7145_v51, %v3972_v22 }
 0x376   : > { %v3584_v43 = vadd.f32 %v3552_v30, %v3323_v40  ;;  %v3813_v26 = vmul.f32 %v7133_v2, %v3777_v45  ;;  %v4168_v50 = vsel %vm4072_vm0, %v8372_v31, 0.0  ;;  %vm4464_vm9 = vcmp.lt.s32.totalorder %v7982_v49, 60 }
 0x377   : > { %v8490_v28 = vadd.f32 %v3814_v53, %v3585_v56  ;;  %v4009_v62 = vmul.f32 %v7145_v51, %v8347_v46  ;;  %v4364_v15 = vsel %vm4268_vm8, %v8387_v13, 0.0  ;;  %v2555_v40 = vadd.f32 %v2523_v20, %v2294_v33  ;;  %v10327_v53 = vld [vmem:[#allocation47_spill] sm:$0xff] }
 0x378   : > { %v3845_v27 = vadd.f32 %v3813_v26, %v3584_v43  ;;  %v4040_v16 = vadd.f32 %v4008_v36, %v3844_v52  ;;  %v4204_v32 = vmul.f32 %v7159_v48, %v4168_v50  ;;  %vm4660_vm10 = vcmp.lt.s32.totalorder %v7982_v49, 59 }
 0x379   : > { %v4205_v31 = vmul.f32 %v7159_v48, %v8364_v42  ;;  %v4560_v59 = vsel %vm4464_vm9, %v2881_v9, 0.0  ;;  %6039 = vpow2.f32 %v8121_v63  ;;  %v2784_v46 = vmul.f32 %v7094_v4, %v8253_v35  ;;  %v10326_v63 = vld [vmem:[#allocation46_spill] sm:$0xff] }
 0x37a   : > { %v4041_v30 = vadd.f32 %v4009_v62, %v3845_v27  ;;  %v4236_v12 = vadd.f32 %v4204_v32, %v4040_v16  ;;  %v4400_v45 = vmul.f32 %v7162_v0, %v4364_v15  ;;  %vm4856_vm11 = vcmp.lt.s32.totalorder %v7982_v49, 58 }
 0x37b   : > { %v4401_v33 = vmul.f32 %v7162_v0, %v8394_v60  ;;  %v4756_v52 = vsel %vm4660_vm10, %v3142_v10, 0.0  ;;  %vm5052_vm12 = vcmp.lt.s32.totalorder %v7982_v49, 57  ;;  %v2816_v22 = vadd.f32 %v2784_v46, %v2555_v40 }
 0x37c   : > { %v4237_v13 = vadd.f32 %v4205_v31, %v4041_v30  ;;  %v4432_v42 = vadd.f32 %v4400_v45, %v4236_v12  ;;  %v4596_v9 = vmul.f32 %v7169_v25, %v4560_v59  ;;  %v1287_v43 = vadd.f32 1.0, %v10326_v63  ;;  %v10329_v12 = vld [vmem:[#allocation24_spill] sm:$0xff]  ;;  %v10330_v45 = vld [vmem:[#allocation45_spill] sm:$0xff] }
 0x37d   : > { %v4597_v35 = vmul.f32 %v7169_v25, %v8417_v55  ;;  %v4952_v26 = vsel %vm4856_vm11, %v3403_v39, 0.0  ;;  %v1286_v20 = vadd.f32 1.0, %v10327_v53  ;;  %v3045_v36 = vmul.f32 %v7098_v14, %v8263_v21  ;;  %v8522_v21 = vpop.f32.mrb[15].mxu0 }
 0x37e   : > { %v4433_v56 = vadd.f32 %v4401_v33, %v4237_v13  ;;  %v4628_v60 = vadd.f32 %v4596_v9, %v4432_v42  ;;  %v4792_v10 = vmul.f32 %v7172_v6, %v4756_v52  ;;  %6041 = vrcp.f32 %v1287_v43 }
 0x37f   : > { %v4793_v50 = vmul.f32 %v7172_v6, %v8428_v34  ;;  %v5148_v27 = vsel %vm5052_vm12, %v3664_v24, 0.0  ;;  %6043 = vrcp.f32 %v1286_v20  ;;  %v4988_v15 = vmul.f32 %v7217_v57, %v4952_v26  ;;  %v10332_v26 = vld [vmem:[#allocation27_spill] sm:$0xff] }
 0x380   : > { %v4629_v49 = vadd.f32 %v4597_v35, %v4433_v56  ;;  %v4824_v62 = vadd.f32 %v4792_v10, %v4628_v60  ;;  %v1418_v55 = vadd.s32 192, %v7009_v18  ;;  %v4989_v40 = vmul.f32 %v7217_v57, %v3402_v29 }
 0x381   : > { %v3077_v16 = vadd.f32 %v3045_v36, %v2816_v22  ;;  %v5184_v30 = vmul.f32 %v7243_v58, %v5148_v27  ;;  %v8526_v31 = vmul.f32 0.0, %v8185_v37  ;;  %v3306_v24 = vmul.f32 %v7105_v7, %v8279_v23 }
 0x382   : > { %v4825_v39 = vadd.f32 %v4793_v50, %v4629_v49  ;;  %v5020_v32 = vadd.f32 %v4988_v15, %v4824_v62  ;;  %v5185_v46 = vmul.f32 %v7243_v58, %v3663_v38  ;;  %v8533_v13 = vadd.f32 %v10330_v45, %v10329_v12  ;;  %v10331_v38 = vld [vmem:[#allocation41_spill] sm:$0xff]  ;;  %v10333_v50 = vld [vmem:[#allocation20_spill] sm:$0xff]  ;;  %v10334_v15 = vld [vmem:[#allocation30_spill] sm:$0xff] }
 0x383   : > { %10328 = vst [vmem:[#allocation46_spill] sm:$0xff] %v8526_v31  ;;  %v6040_v34 = vpop.eup %6039  ;;  %v1417_v33 = vadd.s32 184, %v7009_v18  ;;  %v8536_v52 = vand.u32 63, %v1418_v55  ;;  %v5381_v42 = vmul.f32 %v8185_v37, %v8195_v5  ;;  %v3338_v9 = vadd.f32 %v3306_v24, %v3077_v16 }
 0x384   : > { %v5021_v59 = vadd.f32 %v4989_v40, %v4825_v39  ;;  %v5216_v29 = vadd.f32 %v5184_v30, %v5020_v32  ;;  %v1273_v23 = vadd.f32 1.0, %v6040_v34  ;;  %v3567_v56 = vmul.f32 %v7120_v3, %v10331_v38  ;;  %v10336_v39 = vld [vmem:[#allocation37_spill] sm:$0xff]  ;;  %v10337_v40 = vld [vmem:[#allocation38_spill] sm:$0xff] }
 0x385   : > { %v5667_v35 = vmul.f32 -1.442695, %v8533_v13  ;;  %v8546_v53 = vadd.f32 %v10330_v45, %v10332_v26  ;;  %v8549_v60 = vand.u32 63, %v1417_v33  ;;  %vm2131_vm13 = vcmp.ge.s32.totalorder %v8536_v52, 7 }
 0x386   : > { %v5217_v22 = vadd.f32 %v5185_v46, %v5021_v59  ;;  %v5412_v63 = vadd.f32 %v8526_v31, %v5216_v29  ;;  %vm2392_vm14 = vcmp.ge.s32.totalorder %v8536_v52, 6  ;;  %v3599_v62 = vadd.f32 %v3567_v56, %v3338_v9  ;;  %v10342_v9 = vld [vmem:[#allocation43_spill] sm:$0xff]  ;;  %v10344_v56 = vld [vmem:[#allocation18_spill] sm:$0xff] }
 0x387   : > { %v8559_v55 = vadd.f32 %v10330_v45, %v10334_v15  ;;  %vm2653_vm15 = vcmp.ge.s32.totalorder %v8536_v52, 5  ;;  %6045 = vrcp.f32 %v1273_v23  ;;  %v8568_v16 = vadd.f32 %v10330_v45, %v10337_v40  ;;  %v10349_v40 = vld [vmem:[#allocation16_spill] sm:$0xff] }
 0x388   : > { %v5413_v43 = vadd.f32 %v5381_v42, %v5217_v22  ;;  %v6042_v20 = vpop.eup %6041  ;;  %v5444_v36 = vadd.f32 %v5412_v63, %v8003_v1  ;;  %vm2914_vm0 = vcmp.ge.s32.totalorder %v8536_v52, 4  ;;  %6047 = vpow2.f32 %v5667_v35  ;;  %v10340_v22 = vld [vmem:[#allocation26_spill] sm:$0xff] }
 0x389   : > { %v6044_v10 = vpop.eup %6043  ;;  %v8555_v27 = vmul.f32 %v6042_v20, %v10333_v50  ;;  %10335 = vst [vmem:[#allocation47_spill] sm:$0xff] %v8559_v55  ;;  %10338 = vst [vmem:[#allocation24_spill] sm:$0xff] %v8568_v16  ;;  %v5684_v30 = vmul.f32 -1.442695, %v8546_v53  ;;  %vm3175_vm8 = vcmp.ge.s32.totalorder %v8536_v52, 3  ;;  %v8587_v42 = vadd.f32 %v10330_v45, %v10340_v22  ;;  %v10346_v20 = vld [vmem:[#allocation13_spill] sm:$0xff] }
 0x38a   : > { %v5445_v49 = vadd.f32 %v5413_v43, %v8214_v47  ;;  %5476 = vst [vmem:[%s7541_s26 + $0x38] sm:$0xff] %v5444_v36  ;;  %v8563_v1 = vmul.f32 %v6044_v10, %v10336_v39  ;;  %v10339_v47 = vld [vmem:[#allocation35_spill] sm:$0xff]  ;;  %v5683_v33 = vmul.f32 -1.442695, %v8559_v55  ;;  %v10343_v63 = vrot.slane %v10342_v9, 1 }
 0x38b   : > { %v3828_v32 = vmul.f32 %v7133_v2, %v10339_v47  ;;  %v10104_v59 = vrot.slane %v8555_v27, 1  ;;  %10341 = vst [vmem:[#allocation45_spill] sm:$0xff] %v8587_v42  ;;  %vm3436_vm9 = vcmp.ge.s32.totalorder %v8536_v52, 2  ;;  %v5670_v38 = vmul.f32 -1.442695, %v8568_v16 }
 0x38c   : > { %5477 = vst [vmem:[%s7541_s26 + $0x40] sm:$0xff] %v5445_v49  ;;  %v1838_v34 = vmul.f32 %v10276_v61, %v8563_v1  ;;  %v2066_v24 = vrot.slane %v8563_v1, 1  ;;  %v2327_v46 = vrot.slane %v8563_v1, 2  ;;  %v10111_v12 = vrot.slane %v8563_v1, 3 }
 0x38d   : > { %v8582_v29 = vadd.f32 %v3828_v32, %v3599_v62  ;;  %v10110_v43 = vrot.slane %v8563_v1, 4  ;;  %v8600_v35 = vadd.f32 %v10330_v45, %v10344_v56  ;;  %v1839_v26 = vmul.f32 %v10276_v61, %v8555_v27  ;;  %v10348_v62 = vld [vmem:[#allocation44_spill] sm:$0xff] }
 0x38e   : > { %v8593_v23 = vsel %vm2074_vm1, %v10343_v63, %v2066_v24  ;;  %v2003_v36 = vmul.f32 %v10346_v20, %v8563_v1  ;;  %v10347_v49 = vrot.slane %v10342_v9, 2  ;;  %vm3697_vm10 = vcmp.ge.s32.totalorder %v8536_v52, 1 }
 0x38f   : > { %10345 = vst [vmem:[#allocation41_spill] sm:$0xff] %v8600_v35  ;;  %v2227_v10 = vsel %vm2131_vm13, %v8593_v23, 0.0  ;;  %v2034_v15 = vadd.f32 %v10348_v62, %v1838_v34  ;;  %v8621_v39 = vsel %vm2074_vm1, %v2066_v24, %v10104_v59  ;;  %vm3892_vm11 = vcmp.lt.s32.totalorder %v8549_v60, 63 }
 0x390   : > { %v8613_v50 = vsel %vm2335_vm2, %v10347_v49, %v2327_v46  ;;  %v2263_v47 = vmul.f32 %v10349_v40, %v2227_v10  ;;  %v10112_v22 = vrot.slane %v8555_v27, 2  ;;  %v10350_v34 = vrot.slane %v10342_v9, 3 }
 0x391   : > { %v2488_v32 = vsel %vm2392_vm14, %v8613_v50, 0.0  ;;  %vm4088_vm12 = vcmp.lt.s32.totalorder %v8549_v60, 62  ;;  %6049 = vpow2.f32 %v5684_v30  ;;  %v5669_v24 = vmul.f32 -1.442695, %v8587_v42  ;;  %v8655_v44 = vpop.eup %6045 }
 0x392   : > { %v2604_v63 = vsel %vm2596_vm3, %v10350_v34, %v10111_v12  ;;  %v2295_v56 = vadd.f32 %v2263_v47, %v2034_v15  ;;  %v2524_v10 = vmul.f32 %v7074_v8, %v2488_v32  ;;  %v10351_v59 = vrot.slane %v10342_v9, 4  ;;  %v10352_v47 = vld [vmem:[#allocation48_spill] sm:$0xff] }
 0x393   : > { %v2749_v49 = vsel %vm2653_vm15, %v2604_v63, 0.0  ;;  %vm4284_vm13 = vcmp.lt.s32.totalorder %v8549_v60, 61  ;;  %v2035_v34 = vadd.f32 %v2003_v36, %v1839_v26  ;;  %v2264_v30 = vmul.f32 %v10349_v40, %v8621_v39  ;;  %v8660_v26 = vpop.eup %6047 }
 0x394   : > { %v2865_v41 = vsel %vm2857_vm4, %v10351_v59, %v10110_v43  ;;  %v8653_v32 = vadd.f32 %v10330_v45, %v10352_v47  ;;  %v2556_v17 = vadd.f32 %v2524_v10, %v2295_v56  ;;  %v2785_v11 = vmul.f32 %v7094_v4, %v2749_v49 }
 0x395   : > { %v3010_v15 = vsel %vm2914_vm0, %v2865_v41, 0.0  ;;  %v3110_v59 = vrot.slane %v8563_v1, 5  ;;  %vm4480_vm14 = vcmp.lt.s32.totalorder %v8549_v60, 60  ;;  %6051 = vpow2.f32 %v5683_v33 }
 0x396   : > { %10353 = vst [vmem:[#allocation27_spill] sm:$0xff] %v8653_v32  ;;  %v5686_v47 = vmul.f32 -1.442695, %v8600_v35  ;;  %v2342_v56 = vsel %vm2335_vm2, %v2327_v46, %v10112_v22  ;;  %v2817_v10 = vadd.f32 %v2785_v11, %v2556_v17  ;;  %v3046_v49 = vmul.f32 %v7098_v14, %v3010_v15 }
 0x397   : > { %v10354_v33 = vrot.slane %v10342_v9, 5  ;;  %vm4676_vm15 = vcmp.lt.s32.totalorder %v8549_v60, 59  ;;  %v2296_v36 = vadd.f32 %v2264_v30, %v2035_v34  ;;  %6053 = vpow2.f32 %v5670_v38 }
 0x398   : > { %v8680_v54 = vadd.f32 %v10330_v45, %v8479_v19  ;;  %v3078_v46 = vadd.f32 %v3046_v49, %v2817_v10  ;;  %v10356_v17 = vrot.slane %v8563_v1, 6  ;;  %v10357_v15 = vrot.slane %v10342_v9, 6 }
 0x399   : > { %v3126_v12 = vsel %vm3118_vm5, %v10354_v33, %v3110_v59  ;;  %vm4872_vm0 = vcmp.lt.s32.totalorder %v8549_v60, 58  ;;  %v5685_v34 = vmul.f32 -1.442695, %v8653_v32  ;;  %v2525_v38 = vmul.f32 %v7074_v8, %v2342_v56 }
 0x39a   : > { %v3271_v43 = vsel %vm3175_vm8, %v3126_v12, 0.0  ;;  %10355 = vst [vmem:[#allocation20_spill] sm:$0xff] %v8680_v54  ;;  %v3387_v33 = vsel %vm3379_vm6, %v10357_v15, %v10356_v17  ;;  %v10359_v10 = vrot.slane %v10342_v9, 7  ;;  %v10360_v17 = vrot.slane %v8555_v27, 3 }
 0x39b   : > { %v3307_v11 = vmul.f32 %v7105_v7, %v3271_v43  ;;  %v3532_v19 = vsel %vm3436_vm9, %v3387_v33, 0.0  ;;  %v10358_v43 = vrot.slane %v8563_v1, 7  ;;  %v10361_v15 = vrot.slane %v8563_v1, 3  ;;  %v8711_v42 = vpop.eup %6049 }
 0x39c   : > { %v3568_v30 = vmul.f32 %v7120_v3, %v3532_v19  ;;  %vm5068_vm8 = vcmp.lt.s32.totalorder %v8549_v60, 57  ;;  %v2557_v16 = vadd.f32 %v2525_v38, %v2296_v36  ;;  %6055 = vpow2.f32 %v5669_v24 }
 0x39d   : > { %v3648_v49 = vsel %vm3640_vm7, %v10359_v10, %v10358_v43  ;;  %v2603_v22 = vsel %vm2596_vm3, %v10361_v15, %v10360_v17  ;;  %v3339_v32 = vadd.f32 %v3307_v11, %v3078_v46  ;;  %v3988_v43 = vsel %vm3892_vm11, %v8593_v23, 0.0 }
 0x39e   : > { %v3793_v35 = vsel %vm3697_vm10, %v3648_v49, 0.0  ;;  %v5672_v10 = vmul.f32 -1.442695, %v8680_v54  ;;  %v4024_v11 = vmul.f32 %v7145_v51, %v3988_v43  ;;  %v4184_v52 = vsel %vm4088_vm12, %v8613_v50, 0.0 }
 0x39f   : > { %v3600_v55 = vadd.f32 %v3568_v30, %v3339_v32  ;;  %v3829_v46 = vmul.f32 %v7133_v2, %v3793_v35  ;;  %v2786_v19 = vmul.f32 %v7094_v4, %v2603_v22  ;;  %v10362_v36 = vrot.slane %v8555_v27, 4  ;;  %v8732_v32 = vpop.eup %6051 }
 0x3a0   : > { %v10363_v38 = vrot.slane %v8563_v1, 4  ;;  %v4380_v35 = vsel %vm4284_vm13, %v2604_v63, 0.0  ;;  %v4025_v50 = vmul.f32 %v7145_v51, %v8621_v39  ;;  %v4056_v17 = vadd.f32 %v4024_v11, %v8582_v29 }
 0x3a1   : > { %v3861_v30 = vadd.f32 %v3829_v46, %v3600_v55  ;;  %v4220_v15 = vmul.f32 %v7159_v48, %v4184_v52  ;;  %v2818_v43 = vadd.f32 %v2786_v19, %v2557_v16  ;;  %v10120_v54 = vrot.slane %v8555_v27, 6  ;;  %v6054_v46 = vpop.eup %6053 }
 0x3a2   : > { %v2864_v23 = vsel %vm2857_vm4, %v10363_v38, %v10362_v36  ;;  %v4576_v36 = vsel %vm4480_vm14, %v2865_v41, 0.0  ;;  %6057 = vpow2.f32 %v5686_v47  ;;  %v4221_v63 = vmul.f32 %v7159_v48, %v2342_v56 }
 0x3a3   : > { %v4057_v38 = vadd.f32 %v4025_v50, %v3861_v30  ;;  %v4252_v24 = vadd.f32 %v4220_v15, %v4056_v17  ;;  %v4416_v55 = vmul.f32 %v7162_v0, %v4380_v35  ;;  %v3047_v39 = vmul.f32 %v7098_v14, %v2864_v23 }
 0x3a4   : > { %v10364_v29 = vrot.slane %v8555_v27, 5  ;;  %v10119_v11 = vrot.slane %v8555_v27, 7  ;;  %v4772_v41 = vsel %vm4676_vm15, %v3126_v12, 0.0  ;;  %v4417_v52 = vmul.f32 %v7162_v0, %v2603_v22 }
 0x3a5   : > { %v4253_v47 = vadd.f32 %v4221_v63, %v4057_v38  ;;  %v4448_v56 = vadd.f32 %v4416_v55, %v4252_v24  ;;  %v4612_v19 = vmul.f32 %v7169_v25, %v4576_v36  ;;  %v3079_v35 = vadd.f32 %v3047_v39, %v2818_v43  ;;  %v8767_v63 = vpop.f32.mrb[14].mxu1 }
 0x3a6   : > { %v3125_v16 = vsel %vm3118_vm5, %v3110_v59, %v10364_v29  ;;  %v10365_v30 = vrot.slane %v8563_v1, 6  ;;  %v4613_v59 = vmul.f32 %v7169_v25, %v2864_v23  ;;  %v4968_v17 = vsel %vm4872_vm0, %v3387_v33, 0.0  ;;  %v6056_v36 = vpop.eup %6055 }
 0x3a7   : > { %v4449_v12 = vadd.f32 %v4417_v52, %v4253_v47  ;;  %v4644_v15 = vadd.f32 %v4612_v19, %v4448_v56  ;;  %v4808_v22 = vmul.f32 %v7172_v6, %v4772_v41  ;;  %v1272_v24 = vadd.f32 1.0, %v8660_v26  ;;  %v10367_v52 = vld [vmem:[#allocation23_spill] sm:$0xff] }
 0x3a8   : > { %v3386_v50 = vsel %vm3379_vm6, %v10365_v30, %v10120_v54  ;;  %v3308_v43 = vmul.f32 %v7105_v7, %v3125_v16  ;;  %v5164_v38 = vsel %vm5068_vm8, %v3648_v49, 0.0  ;;  %6059 = vpow2.f32 %v5685_v34 }
 0x3a9   : > { %v4645_v55 = vadd.f32 %v4613_v59, %v4449_v12  ;;  %v4809_v23 = vmul.f32 %v7172_v6, %v3125_v16  ;;  %v4840_v39 = vadd.f32 %v4808_v22, %v4644_v15  ;;  %v5004_v33 = vmul.f32 %v7217_v57, %v4968_v17  ;;  %v10369_v12 = vld [vmem:[#allocation12_spill] sm:$0xff] }
 0x3aa   : > { %v3340_v29 = vadd.f32 %v3308_v43, %v3079_v35  ;;  %v10366_v26 = vrot.slane %v8563_v1, 7  ;;  %v5005_v60 = vmul.f32 %v7217_v57, %v3386_v50  ;;  %6061 = vpow2.f32 %v5672_v10 }
 0x3ab   : > { %v4841_v34 = vadd.f32 %v4809_v23, %v4645_v55  ;;  %v5036_v49 = vadd.f32 %v5004_v33, %v4840_v39  ;;  %v5200_v47 = vmul.f32 %v7243_v58, %v5164_v38  ;;  %6063 = vrcp.f32 %v1272_v24 }
 0x3ac   : > { %v3647_v41 = vsel %vm3640_vm7, %v10366_v26, %v10119_v11  ;;  %v6058_v16 = vpop.eup %6057  ;;  %v1830_v56 = vmul.f32 %v10276_v61, %v10367_v52  ;;  %v3569_v19 = vmul.f32 %v7120_v3, %v3386_v50  ;;  %v8784_v35 = vadd.f32 %v10330_v45, %v8522_v21 }
 0x3ad   : > { %v5037_v30 = vadd.f32 %v5005_v60, %v4841_v34  ;;  %v5201_v59 = vmul.f32 %v7243_v58, %v3647_v41  ;;  %v5232_v17 = vadd.f32 %v5200_v47, %v5036_v49  ;;  %v8789_v15 = vmul.f32 %v8655_v44, %v10369_v12 }
 0x3ae   : > { %10368 = vst [vmem:[#allocation30_spill] sm:$0xff] %v8784_v35  ;;  %v3601_v10 = vadd.f32 %v3569_v19, %v3340_v29  ;;  %v5397_v24 = vmul.f32 %v8185_v37, %v8555_v27  ;;  %v1289_v50 = vadd.f32 1.0, %v8711_v42  ;;  %v8796_v21 = vadd.f32 %v10348_v62, %v1830_v56 }
 0x3af   : > { %v5233_v22 = vadd.f32 %v5201_v59, %v5037_v30  ;;  %v5428_v43 = vadd.f32 %v8526_v31, %v5232_v17  ;;  %v1988_v45 = vmul.f32 %v10346_v20, %v8195_v5  ;;  %v3830_v38 = vmul.f32 %v7133_v2, %v3647_v41 }
 0x3b0   : > { %10370 = vst [vmem:[#allocation37_spill] sm:$0xff] %v8796_v21  ;;  %v8802_v44 = vmul.f32 -1.442695, %v8784_v35  ;;  %v8806_v55 = vmul.f32 %v10346_v20, %v8555_v27  ;;  %v1288_v42 = vadd.f32 1.0, %v8732_v32  ;;  %v1825_v26 = vmul.f32 %v10276_v61, %v8789_v15 }
 0x3b1   : > { %v5429_v23 = vadd.f32 %v5397_v24, %v5233_v22  ;;  %v5460_v39 = vadd.f32 %v5428_v43, %v10342_v9  ;;  %v8810_v29 = vadd.f32 %v3830_v38, %v3601_v10  ;;  %v1275_v41 = vadd.f32 1.0, %v6054_v46  ;;  %v8839_v43 = vld [vmem:[%s10007_s4] ss:$0 sm:$0xff] }
 0x3b2   : > { %v6060_v33 = vpop.eup %6059  ;;  %v1274_v60 = vadd.f32 1.0, %v6056_v36  ;;  %v8818_v49 = vmul.f32 %v10346_v20, %v8789_v15  ;;  %v10121_v9 = vrot.slane %v8789_v15, 1  ;;  %6065 = vrcp.f32 %v1289_v50  ;;  %10371 = vst [vmem:[#allocation38_spill] sm:$0xff] %v8839_v43 }
 0x3b3   : > { %v5461_v34 = vadd.f32 %v5429_v23, %v8563_v1  ;;  %5492 = vst [vmem:[%s7541_s26 + $0xb8] sm:$0xff] %v5460_v39  ;;  %v10122_v47 = vrot.slane %v8789_v15, 2  ;;  %v10123_v56 = vrot.slane %v8789_v15, 3  ;;  %v10126_v19 = vrot.slane %v8789_v15, 4  ;;  %v8851_v23 = vpop.f32.mrb[15].mxu1 }
 0x3b4   : > { %v6062_v32 = vpop.eup %6061  ;;  %6067 = vrcp.f32 %v1288_v42  ;;  %v1410_v59 = vadd.s32 128, %v7009_v18  ;;  %v8831_v17 = vmul.f32 %v8185_v37, %v8789_v15  ;;  %v1291_v12 = vadd.f32 1.0, %v6058_v16  ;;  %10373 = vst [vmem:[#allocation26_spill] sm:$0xff] %v8851_v23 }
 0x3b5   : > { %v6064_v36 = vpop.eup %6063  ;;  %5493 = vst [vmem:[%s7541_s26 + $0xc0] sm:$0xff] %v5461_v34  ;;  %6069 = vrcp.f32 %v1275_v41  ;;  %v1290_v22 = vadd.f32 1.0, %v6060_v33  ;;  %v1277_v24 = vadd.f32 1.0, %v6062_v32  ;;  %v8843_v50 = vadd.f32 %v8839_v43, %v8767_v63 }
 0x3b6   : > { %v8834_v10 = vmul.f32 %v6064_v36, %v8533_v13  ;;  %6071 = vrcp.f32 %v1274_v60  ;;  %v8856_v63 = vand.u32 63, %v1410_v59  ;;  %v10374_v32 = vrot.slane %v8195_v5, 1 }
 0x3b7   : > { %10372 = vst [vmem:[#allocation35_spill] sm:$0xff] %v8843_v50  ;;  %6073 = vrcp.f32 %v1291_v12  ;;  %v10377_v46 = vrot.slane %v8195_v5, 4  ;;  %v10383_v23 = vrot.slane %v8195_v5, 7 }
 0x3b8   : > { %v1824_v37 = vmul.f32 %v10276_v61, %v8834_v10  ;;  %v1989_v13 = vmul.f32 %v10346_v20, %v8834_v10  ;;  %v2052_v16 = vrot.slane %v8834_v10, 1  ;;  %v2313_v38 = vrot.slane %v8834_v10, 2 }
 0x3b9   : > { %v2574_v39 = vrot.slane %v8834_v10, 3  ;;  %v2835_v42 = vrot.slane %v8834_v10, 4  ;;  %v3096_v33 = vrot.slane %v8834_v10, 5  ;;  %6075 = vrcp.f32 %v1290_v22 }
 0x3ba   : > { %v2020_v41 = vadd.f32 %v1988_v45, %v1824_v37  ;;  %v2021_v60 = vadd.f32 %v1989_v13, %v1825_v26  ;;  %v2095_v34 = vsel %vm2074_vm1, %v2052_v16, %v10121_v9  ;;  %v2096_v36 = vsel %vm2074_vm1, %v10374_v32, %v2052_v16 }
 0x3bb   : > { %v2249_v11 = vmul.f32 %v10349_v40, %v2096_v36  ;;  %v2250_v54 = vmul.f32 %v10349_v40, %v2095_v34  ;;  %v2356_v45 = vsel %vm2335_vm2, %v2313_v38, %v10122_v47  ;;  %v10375_v26 = vrot.slane %v8195_v5, 2 }
 0x3bc   : > { %v2617_v37 = vsel %vm2596_vm3, %v2574_v39, %v10123_v56  ;;  %v10376_v13 = vrot.slane %v8195_v5, 3  ;;  %v3357_v32 = vrot.slane %v8834_v10, 6  ;;  %v6066_v9 = vpop.eup %6065  ;;  %v2878_v56 = vsel %vm2857_vm4, %v2835_v42, %v10126_v19 }
 0x3bd   : > { %v2357_v59 = vsel %vm2335_vm2, %v10375_v26, %v2313_v38  ;;  %v2281_v47 = vadd.f32 %v2249_v11, %v2020_v41  ;;  %v2282_v30 = vadd.f32 %v2250_v54, %v2021_v60  ;;  %v2511_v38 = vmul.f32 %v7074_v8, %v2356_v45 }
 0x3be   : > { %v2618_v16 = vsel %vm2596_vm3, %v10376_v13, %v2574_v39  ;;  %v2510_v1 = vmul.f32 %v7074_v8, %v2357_v59  ;;  %v2879_v39 = vsel %vm2857_vm4, %v10377_v46, %v2835_v42  ;;  %v8896_v12 = vpop.eup %6067  ;;  %v2772_v41 = vmul.f32 %v7094_v4, %v2617_v37 }
 0x3bf   : > { %v2771_v26 = vmul.f32 %v7094_v4, %v2618_v16  ;;  %v2543_v11 = vadd.f32 %v2511_v38, %v2282_v30  ;;  %v10378_v60 = vrot.slane %v8195_v5, 5  ;;  %v8903_v31 = vpop.eup %6069  ;;  %v10379_v19 = vrot.slane %v8789_v15, 5 }
 0x3c0   : > { %v2542_v54 = vadd.f32 %v2510_v1, %v2281_v47  ;;  %v10380_v46 = vrot.slane %v8195_v5, 6  ;;  %v8914_v1 = vmul.f32 %v6066_v9, %v8546_v53  ;;  %6077 = vrcp.f32 %v1277_v24  ;;  %v8916_v30 = vpop.eup %6071 }
 0x3c1   : > { %v3140_v13 = vsel %vm3118_vm5, %v10378_v60, %v3096_v33  ;;  %v3139_v35 = vsel %vm3118_vm5, %v3096_v33, %v10379_v19  ;;  %v2804_v42 = vadd.f32 %v2772_v41, %v2543_v11  ;;  %v3032_v38 = vmul.f32 %v7098_v14, %v2879_v39  ;;  %v8941_v62 = vpop.eup %6073 }
 0x3c2   : > { %v3401_v47 = vsel %vm3379_vm6, %v10380_v46, %v3357_v32  ;;  %v2803_v22 = vadd.f32 %v2771_v26, %v2542_v54  ;;  %v3033_v60 = vmul.f32 %v7098_v14, %v2878_v56  ;;  %v3293_v43 = vmul.f32 %v7105_v7, %v3140_v13 }
 0x3c3   : > { %v10381_v19 = vrot.slane %v8789_v15, 6  ;;  %v3618_v46 = vrot.slane %v8834_v10, 7  ;;  %v4010_v53 = vmul.f32 %v7145_v51, %v2096_v36  ;;  %v3294_v26 = vmul.f32 %v7105_v7, %v3139_v35 }
 0x3c4   : > { %v3064_v9 = vadd.f32 %v3032_v38, %v2803_v22  ;;  %v3065_v24 = vadd.f32 %v3033_v60, %v2804_v42  ;;  %v3554_v54 = vmul.f32 %v7120_v3, %v3401_v47  ;;  %v10382_v11 = vrot.slane %v8789_v15, 7 }
 0x3c5   : > { %v3400_v33 = vsel %vm3379_vm6, %v3357_v32, %v10381_v19  ;;  %v3662_v32 = vsel %vm3640_vm7, %v10383_v23, %v3618_v46  ;;  %v4042_v19 = vadd.f32 %v4010_v53, %v8490_v28  ;;  %v4206_v36 = vmul.f32 %v7159_v48, %v2357_v59  ;;  %v8948_v59 = vpop.eup %6075 }
 0x3c6   : > { %v3661_v41 = vsel %vm3640_vm7, %v3618_v46, %v10382_v11  ;;  %v3325_v22 = vadd.f32 %v3293_v43, %v3064_v9  ;;  %v3326_v42 = vadd.f32 %v3294_v26, %v3065_v24  ;;  %v3555_v38 = vmul.f32 %v7120_v3, %v3400_v33 }
 0x3c7   : > { %v4011_v60 = vmul.f32 %v7145_v51, %v2095_v34  ;;  %v4207_v21 = vmul.f32 %v7159_v48, %v2356_v45  ;;  %v4238_v11 = vadd.f32 %v4206_v36, %v4042_v19  ;;  %v4402_v52 = vmul.f32 %v7162_v0, %v2618_v16 }
 0x3c8   : > { %v4403_v50 = vmul.f32 %v7162_v0, %v2617_v37  ;;  %v3586_v23 = vadd.f32 %v3554_v54, %v3325_v22  ;;  %v3587_v46 = vadd.f32 %v3555_v38, %v3326_v42  ;;  %v3815_v28 = vmul.f32 %v7133_v2, %v3662_v32 }
 0x3c9   : > { %v3816_v43 = vmul.f32 %v7133_v2, %v3661_v41  ;;  %v4434_v53 = vadd.f32 %v4402_v52, %v4238_v11  ;;  %v4598_v34 = vmul.f32 %v7169_v25, %v2879_v39  ;;  %v4599_v9 = vmul.f32 %v7169_v25, %v2878_v56  ;;  %v8962_v56 = vld [vmem:[#allocation7 + $0x10] ss:$0 sm:$0xff] }
 0x3ca   : > { %v4794_v45 = vmul.f32 %v7172_v6, %v3140_v13  ;;  %v3847_v24 = vadd.f32 %v3815_v28, %v3586_v23  ;;  %v4795_v16 = vmul.f32 %v7172_v6, %v3139_v35  ;;  %v4990_v37 = vmul.f32 %v7217_v57, %v3401_v47  ;;  %v8956_v54 = vpop.eup %6077  ;;  %v10384_v23 = vld [vmem:[#allocation47_spill] sm:$0xff] }
 0x3cb   : > { %v4991_v26 = vmul.f32 %v7217_v57, %v3400_v33  ;;  %v8958_v19 = vadd.f32 %v3816_v43, %v3587_v46  ;;  %v4630_v36 = vadd.f32 %v4598_v34, %v4434_v53  ;;  %v5186_v52 = vmul.f32 %v7243_v58, %v3662_v32 }
 0x3cc   : > { %v5187_v39 = vmul.f32 %v7243_v58, %v3661_v41  ;;  %v4043_v22 = vadd.f32 %v4011_v60, %v3847_v24  ;;  %v5382_v13 = vmul.f32 %v8962_v56, %v8834_v10  ;;  %v1841_v35 = vmul.f32 %v10276_v61, %v8914_v1 }
 0x3cd   : > { %v8970_v47 = vmul.f32 %v10346_v20, %v8914_v1  ;;  %v4826_v33 = vadd.f32 %v4794_v45, %v4630_v36  ;;  %v10132_v42 = vrot.slane %v8914_v1, 1  ;;  %v10131_v32 = vrot.slane %v8914_v1, 2 }
 0x3ce   : > { %v10134_v41 = vrot.slane %v8914_v1, 3  ;;  %v4239_v38 = vadd.f32 %v4207_v21, %v4043_v22  ;;  %v10133_v60 = vrot.slane %v8914_v1, 4  ;;  %v8979_v46 = vmul.f32 %v8896_v12, %v10384_v23 }
 0x3cf   : > { %v5022_v28 = vadd.f32 %v4990_v37, %v4826_v33  ;;  %v8985_v34 = vmul.f32 %v8962_v56, %v8914_v1  ;;  %v10385_v11 = vrot.slane %v8555_v27, 1  ;;  %vm2123_vm9 = vcmp.ge.s32.totalorder %v8856_v63, 7 }
 0x3d0   : > { %v4435_v45 = vadd.f32 %v4403_v50, %v4239_v38  ;;  %v1840_v21 = vmul.f32 %v10276_v61, %v8979_v46  ;;  %v2005_v24 = vmul.f32 %v10346_v20, %v8979_v46  ;;  %v2068_v36 = vrot.slane %v8979_v46, 1 }
 0x3d1   : > { %v5218_v12 = vadd.f32 %v5186_v52, %v5022_v28  ;;  %v2329_v37 = vrot.slane %v8979_v46, 2  ;;  %v2590_v22 = vrot.slane %v8979_v46, 3  ;;  %v2851_v33 = vrot.slane %v8979_v46, 4 }
 0x3d2   : > { %v4631_v23 = vadd.f32 %v4599_v9, %v4435_v45  ;;  %v2036_v53 = vadd.f32 %v8806_v55, %v1840_v21  ;;  %v2037_v43 = vadd.f32 %v2005_v24, %v1841_v35  ;;  %v2079_v50 = vsel %vm2074_vm1, %v2068_v36, %v10132_v42  ;;  %v10387_v21 = vld [vmem:[#allocation24_spill] sm:$0xff] }
 0x3d3   : > { %v5414_v38 = vadd.f32 %v5382_v13, %v5218_v12  ;;  %v2080_v52 = vsel %vm2074_vm1, %v10385_v11, %v2068_v36  ;;  %v2266_v28 = vmul.f32 %v10349_v40, %v2079_v50  ;;  %v2340_v55 = vsel %vm2335_vm2, %v2329_v37, %v10131_v32 }
 0x3d4   : > { %v4827_v9 = vadd.f32 %v4795_v16, %v4631_v23  ;;  %v2265_v35 = vmul.f32 %v10349_v40, %v2080_v52  ;;  %v10386_v45 = vrot.slane %v8555_v27, 2  ;;  %v9016_v24 = vmul.f32 %v8903_v31, %v10387_v21 }
 0x3d5   : > { %v5446_v11 = vadd.f32 %v5414_v38, %v8195_v5  ;;  %v2298_v36 = vadd.f32 %v2266_v28, %v2037_v43  ;;  %v2527_v12 = vmul.f32 %v7074_v8, %v2340_v55  ;;  %v2601_v16 = vsel %vm2596_vm3, %v2590_v22, %v10134_v41 }
 0x3d6   : > { %v2341_v13 = vsel %vm2335_vm2, %v10386_v45, %v2329_v37  ;;  %v5023_v23 = vadd.f32 %v4991_v26, %v4827_v9  ;;  %v2297_v32 = vadd.f32 %v2265_v35, %v2036_v53  ;;  %v10388_v37 = vrot.slane %v8555_v27, 3 }
 0x3d7   : > { %v2526_v42 = vmul.f32 %v7074_v8, %v2341_v13  ;;  %5478 = vst [vmem:[%s7541_s26 + $0x48] sm:$0xff] %v5446_v11  ;;  %v2559_v45 = vadd.f32 %v2527_v12, %v2298_v36  ;;  %v2788_v5 = vmul.f32 %v7094_v4, %v2601_v16  ;;  %v2862_v43 = vsel %vm2857_vm4, %v2851_v33, %v10133_v60 }
 0x3d8   : > { %v2602_v31 = vsel %vm2596_vm3, %v10388_v37, %v2590_v22  ;;  %v10389_v38 = vrot.slane %v8555_v27, 4  ;;  %v5219_v53 = vadd.f32 %v5187_v39, %v5023_v23  ;;  %v3049_v22 = vmul.f32 %v7098_v14, %v2862_v43 }
 0x3d9   : > { %v2558_v28 = vadd.f32 %v2526_v42, %v2297_v32  ;;  %v2787_v9 = vmul.f32 %v7094_v4, %v2602_v31  ;;  %v2820_v35 = vadd.f32 %v2788_v5, %v2559_v45  ;;  %v3112_v21 = vrot.slane %v8979_v46, 5 }
 0x3da   : > { %v2863_v26 = vsel %vm2857_vm4, %v10389_v38, %v2851_v33  ;;  %v3373_v11 = vrot.slane %v8979_v46, 6  ;;  %v3634_v36 = vrot.slane %v8979_v46, 7  ;;  %v5415_v12 = vadd.f32 %v8831_v17, %v5219_v53  ;;  %v10390_v33 = vld [vmem:[#allocation45_spill] sm:$0xff] }
 0x3db   : > { %v2819_v37 = vadd.f32 %v2787_v9, %v2558_v28  ;;  %v3048_v60 = vmul.f32 %v7098_v14, %v2863_v26  ;;  %v9048_v39 = vmul.f32 %v8916_v30, %v10390_v33  ;;  %v3081_v42 = vadd.f32 %v3049_v22, %v2820_v35  ;;  %v10393_v17 = vld [vmem:[#allocation41_spill] sm:$0xff] }
 0x3dc   : > { %v10391_v32 = vrot.slane %v8914_v1, 5  ;;  %v10392_v45 = vrot.slane %v8555_v27, 5  ;;  %v9060_v38 = vmul.f32 %v8941_v62, %v10393_v17  ;;  %v5447_v53 = vadd.f32 %v5415_v12, %v8834_v10  ;;  %v10398_v17 = vld [vmem:[#allocation27_spill] sm:$0xff] }
 0x3dd   : > { %v3080_v28 = vadd.f32 %v3048_v60, %v2819_v37  ;;  %v10394_v9 = vrot.slane %v8914_v1, 6  ;;  %v10395_v35 = vrot.slane %v8555_v27, 6  ;;  %v10397_v10 = vrot.slane %v8555_v27, 7 }
 0x3de   : > { %v3123_v23 = vsel %vm3118_vm5, %v3112_v21, %v10391_v32  ;;  %v3124_v5 = vsel %vm3118_vm5, %v10392_v45, %v3112_v21  ;;  %v10396_v21 = vrot.slane %v8914_v1, 7  ;;  %v4026_v12 = vmul.f32 %v7145_v51, %v2080_v52  ;;  %5479 = vst [vmem:[%s7541_s26 + $0x50] sm:$0xff] %v5447_v53 }
 0x3df   : > { %v3309_v30 = vmul.f32 %v7105_v7, %v3124_v5  ;;  %v3384_v22 = vsel %vm3379_vm6, %v3373_v11, %v10394_v9  ;;  %v3385_v33 = vsel %vm3379_vm6, %v10395_v35, %v3373_v11  ;;  %v3646_v60 = vsel %vm3640_vm7, %v10397_v10, %v3634_v36 }
 0x3e0   : > { %v3645_v62 = vsel %vm3640_vm7, %v3634_v36, %v10396_v21  ;;  %v3310_v37 = vmul.f32 %v7105_v7, %v3123_v23  ;;  %v3570_v45 = vmul.f32 %v7120_v3, %v3385_v33  ;;  %v9086_v11 = vmul.f32 %v8948_v59, %v10398_v17 }
 0x3e1   : > { %v3341_v32 = vadd.f32 %v3309_v30, %v3080_v28  ;;  %v9089_v9 = vmul.f32 %v7120_v3, %v3384_v22  ;;  %v4027_v35 = vmul.f32 %v7145_v51, %v2079_v50  ;;  %v4058_v21 = vadd.f32 %v4026_v12, %v8810_v29 }
 0x3e2   : > { %v4222_v36 = vmul.f32 %v7159_v48, %v2341_v13  ;;  %v9094_v52 = vadd.f32 %v3310_v37, %v3081_v42  ;;  %v3831_v28 = vmul.f32 %v7133_v2, %v3646_v60  ;;  %v9098_v30 = vmul.f32 %v7133_v2, %v3645_v62 }
 0x3e3   : > { %v3602_v53 = vadd.f32 %v3570_v45, %v3341_v32  ;;  %v4223_v59 = vmul.f32 %v7159_v48, %v2340_v55  ;;  %v4418_v17 = vmul.f32 %v7162_v0, %v2602_v31  ;;  %v4419_v41 = vmul.f32 %v7162_v0, %v2601_v16 }
 0x3e4   : > { %v4254_v10 = vadd.f32 %v4222_v36, %v4058_v21  ;;  %v4614_v29 = vmul.f32 %v7169_v25, %v2863_v26  ;;  %v4615_v13 = vmul.f32 %v7169_v25, %v2862_v43  ;;  %v4810_v42 = vmul.f32 %v7172_v6, %v3124_v5 }
 0x3e5   : > { %v3863_v50 = vadd.f32 %v3831_v28, %v3602_v53  ;;  %v4811_v37 = vmul.f32 %v7172_v6, %v3123_v23  ;;  %v5006_v32 = vmul.f32 %v7217_v57, %v3385_v33  ;;  %v5007_v45 = vmul.f32 %v7217_v57, %v3384_v22 }
 0x3e6   : > { %v4450_v12 = vadd.f32 %v4418_v17, %v4254_v10  ;;  %v5202_v21 = vmul.f32 %v7243_v58, %v3646_v60  ;;  %v5203_v31 = vmul.f32 %v7243_v58, %v3645_v62  ;;  %v5398_v16 = vmul.f32 %v8962_v56, %v8979_v46 }
 0x3e7   : > { %v4059_v55 = vadd.f32 %v4027_v35, %v3863_v50  ;;  %v1827_v43 = vmul.f32 %v10276_v61, %v9016_v24  ;;  %v2055_v5 = vrot.slane %v9016_v24, 1  ;;  %v10135_v23 = vrot.slane %v9016_v24, 2 }
 0x3e8   : > { %v4646_v26 = vadd.f32 %v4614_v29, %v4450_v12  ;;  %v10136_v33 = vrot.slane %v9016_v24, 3  ;;  %v10137_v22 = vrot.slane %v9016_v24, 4  ;;  %v1826_v28 = vmul.f32 %v10276_v61, %v9048_v39 }
 0x3e9   : > { %v4255_v36 = vadd.f32 %v4223_v59, %v4059_v55  ;;  %v1991_v17 = vmul.f32 %v10346_v20, %v9048_v39  ;;  %v2054_v59 = vrot.slane %v9048_v39, 1  ;;  %v2315_v50 = vrot.slane %v9048_v39, 2 }
 0x3ea   : > { %v4842_v35 = vadd.f32 %v4810_v42, %v4646_v26  ;;  %v2022_v12 = vadd.f32 %v8818_v49, %v1826_v28  ;;  %v2576_v42 = vrot.slane %v9048_v39, 3  ;;  %v2837_v55 = vrot.slane %v9048_v39, 4 }
 0x3eb   : > { %v4451_v10 = vadd.f32 %v4419_v41, %v4255_v36  ;;  %v2023_v53 = vadd.f32 %v1991_v17, %v1827_v43  ;;  %v2093_v41 = vsel %vm2074_vm1, %v2054_v59, %v2055_v5  ;;  %v10399_v36 = vrot.slane %v8789_v15, 1 }
 0x3ec   : > { %v5038_v29 = vadd.f32 %v5006_v32, %v4842_v35  ;;  %v2252_v49 = vmul.f32 %v10349_v40, %v2093_v41  ;;  %v10400_v35 = vrot.slane %v8789_v15, 2  ;;  %vm2384_vm10 = vcmp.ge.s32.totalorder %v8856_v63, 6 }
 0x3ed   : > { %v4647_v26 = vadd.f32 %v4615_v13, %v4451_v10  ;;  %v2094_v62 = vsel %vm2074_vm1, %v10399_v36, %v2054_v59  ;;  %v2354_v13 = vsel %vm2335_vm2, %v2315_v50, %v10135_v23  ;;  %vm2645_vm11 = vcmp.ge.s32.totalorder %v8856_v63, 5 }
 0x3ee   : > { %v5234_v60 = vadd.f32 %v5202_v21, %v5038_v29  ;;  %v2251_v32 = vmul.f32 %v10349_v40, %v2094_v62  ;;  %v2355_v28 = vsel %vm2335_vm2, %v10400_v35, %v2315_v50  ;;  %v2513_v10 = vmul.f32 %v7074_v8, %v2354_v13 }
 0x3ef   : > { %v4843_v43 = vadd.f32 %v4811_v37, %v4647_v26  ;;  %v2615_v21 = vsel %vm2596_vm3, %v2576_v42, %v10136_v33  ;;  %v2284_v29 = vadd.f32 %v2252_v49, %v2023_v53  ;;  %v2512_v36 = vmul.f32 %v7074_v8, %v2355_v28 }
 0x3f0   : > { %v5430_v17 = vadd.f32 %v5398_v16, %v5234_v60  ;;  %v2283_v59 = vadd.f32 %v2251_v32, %v2022_v12  ;;  %v10401_v37 = vrot.slane %v8789_v15, 3  ;;  %v2774_v50 = vmul.f32 %v7094_v4, %v2615_v21 }
 0x3f1   : > { %v5039_v23 = vadd.f32 %v5007_v45, %v4843_v43  ;;  %v2876_v35 = vsel %vm2857_vm4, %v2837_v55, %v10137_v22  ;;  %v2545_v12 = vadd.f32 %v2513_v10, %v2284_v29  ;;  %v10402_v45 = vrot.slane %v8789_v15, 4 }
 0x3f2   : > { %v2616_v26 = vsel %vm2596_vm3, %v10401_v37, %v2576_v42  ;;  %v5462_v16 = vadd.f32 %v5430_v17, %v8555_v27  ;;  %v2544_v60 = vadd.f32 %v2512_v36, %v2283_v59  ;;  %v3035_v42 = vmul.f32 %v7098_v14, %v2876_v35 }
 0x3f3   : > { %v2773_v53 = vmul.f32 %v7094_v4, %v2616_v26  ;;  %v5235_v32 = vadd.f32 %v5203_v31, %v5039_v23  ;;  %v2877_v49 = vsel %vm2857_vm4, %v10402_v45, %v2837_v55  ;;  %v3098_v43 = vrot.slane %v9048_v39, 5 }
 0x3f4   : > { %5494 = vst [vmem:[%s7541_s26 + $0xc8] sm:$0xff] %v5462_v16  ;;  %v2806_v33 = vadd.f32 %v2774_v50, %v2545_v12  ;;  %v3034_v22 = vmul.f32 %v7098_v14, %v2877_v49  ;;  %v3359_v27 = vrot.slane %v9048_v39, 6  ;;  %v10403_v31 = vrot.slane %v9016_v24, 5 }
 0x3f5   : > { %v2805_v37 = vadd.f32 %v2773_v53, %v2544_v60  ;;  %v5431_v10 = vadd.f32 %v8985_v34, %v5235_v32  ;;  %v10404_v55 = vrot.slane %v8789_v15, 5  ;;  %v3620_v59 = vrot.slane %v9048_v39, 7 }
 0x3f6   : > { %v3137_v23 = vsel %vm3118_vm5, %v3098_v43, %v10403_v31  ;;  %v3067_v36 = vadd.f32 %v3035_v42, %v2806_v33  ;;  %v10405_v60 = vrot.slane %v9016_v24, 6  ;;  %v10406_v53 = vrot.slane %v8789_v15, 6 }
 0x3f7   : > { %v3138_v17 = vsel %vm3118_vm5, %v10404_v55, %v3098_v43  ;;  %v3066_v29 = vadd.f32 %v3034_v22, %v2805_v37  ;;  %v3296_v16 = vmul.f32 %v7105_v7, %v3137_v23  ;;  %v5463_v34 = vadd.f32 %v5431_v10, %v8979_v46 }
 0x3f8   : > { %v3295_v50 = vmul.f32 %v7105_v7, %v3138_v17  ;;  %v3398_v12 = vsel %vm3379_vm6, %v3359_v27, %v10405_v60  ;;  %v3399_v32 = vsel %vm3379_vm6, %v10406_v53, %v3359_v27  ;;  %v10407_v45 = vrot.slane %v9016_v24, 7 }
 0x3f9   : > { %v3328_v42 = vadd.f32 %v3296_v16, %v3067_v36  ;;  %v3556_v43 = vmul.f32 %v7120_v3, %v3399_v32  ;;  %v3557_v46 = vmul.f32 %v7120_v3, %v3398_v12  ;;  %v9204_v37 = vadd.f32 %v9089_v9, %v9094_v52  ;;  %5495 = vst [vmem:[%s7541_s26 + $0xd0] sm:$0xff] %v5463_v34 }
 0x3fa   : > { %v3659_v33 = vsel %vm3640_vm7, %v3620_v59, %v10407_v45  ;;  %v3327_v22 = vadd.f32 %v3295_v50, %v3066_v29  ;;  %v9209_v10 = vmul.f32 %v8962_v56, %v9016_v24  ;;  %v10408_v27 = vrot.slane %v8789_v15, 7 }
 0x3fb   : > { %v4012_v55 = vmul.f32 %v7145_v51, %v2094_v62  ;;  %v3589_v36 = vadd.f32 %v3557_v46, %v3328_v42  ;;  %v3818_v16 = vmul.f32 %v7133_v2, %v3659_v33  ;;  %v4013_v9 = vmul.f32 %v7145_v51, %v2093_v41 }
 0x3fc   : > { %v3660_v31 = vsel %vm3640_vm7, %v10408_v27, %v3620_v59  ;;  %v3588_v29 = vadd.f32 %v3556_v43, %v3327_v22  ;;  %v4208_v34 = vmul.f32 %v7159_v48, %v2355_v28  ;;  %v4209_v60 = vmul.f32 %v7159_v48, %v2354_v13 }
 0x3fd   : > { %v3817_v50 = vmul.f32 %v7133_v2, %v3660_v31  ;;  %v4044_v52 = vadd.f32 %v4012_v55, %v8958_v19  ;;  %v9222_v45 = vadd.f32 %v3818_v16, %v3589_v36  ;;  %v4404_v59 = vmul.f32 %v7162_v0, %v2616_v26 }
 0x3fe   : > { %v4405_v62 = vmul.f32 %v7162_v0, %v2615_v21  ;;  %v4600_v42 = vmul.f32 %v7169_v25, %v2877_v49  ;;  %v4601_v43 = vmul.f32 %v7169_v25, %v2876_v35  ;;  %v4796_v41 = vmul.f32 %v7172_v6, %v3138_v17 }
 0x3ff   : > { %v3849_v53 = vadd.f32 %v3817_v50, %v3588_v29  ;;  %v4240_v22 = vadd.f32 %v4208_v34, %v4044_v52  ;;  %v4797_v19 = vmul.f32 %v7172_v6, %v3137_v23  ;;  %v4992_v28 = vmul.f32 %v7217_v57, %v3399_v32 }
 0x400   : > { %v4993_v13 = vmul.f32 %v7217_v57, %v3398_v12  ;;  %v5188_v55 = vmul.f32 %v7243_v58, %v3660_v31  ;;  %v5189_v26 = vmul.f32 %v7243_v58, %v3659_v33  ;;  %v5384_v21 = vmul.f32 %v8962_v56, %v9048_v39 }
 0x401   : > { %v4045_v46 = vadd.f32 %v4013_v9, %v3849_v53  ;;  %v4436_v27 = vadd.f32 %v4404_v59, %v4240_v22  ;;  %v1843_v35 = vmul.f32 %v10276_v61, %v9060_v38  ;;  %v10144_v17 = vrot.slane %v9060_v38, 1 }
 0x402   : > { %v10138_v23 = vrot.slane %v9060_v38, 2  ;;  %v10139_v32 = vrot.slane %v9060_v38, 3  ;;  %v10140_v12 = vrot.slane %v9060_v38, 4  ;;  %v10143_v31 = vrot.slane %v9060_v38, 5 }
 0x403   : > { %v4241_v49 = vadd.f32 %v4209_v60, %v4045_v46  ;;  %v4632_v29 = vadd.f32 %v4600_v42, %v4436_v27  ;;  %v10142_v33 = vrot.slane %v9060_v38, 6  ;;  %v10141_v50 = vrot.slane %v9060_v38, 7 }
 0x404   : > { %v1842_v16 = vmul.f32 %v10276_v61, %v9086_v11  ;;  %v2007_v52 = vmul.f32 %v10346_v20, %v9086_v11  ;;  %v2070_v34 = vrot.slane %v9086_v11, 1  ;;  %v2331_v60 = vrot.slane %v9086_v11, 2 }
 0x405   : > { %v4437_v36 = vadd.f32 %v4405_v62, %v4241_v49  ;;  %v4828_v9 = vadd.f32 %v4796_v41, %v4632_v29  ;;  %v2592_v62 = vrot.slane %v9086_v11, 3  ;;  %v2853_v22 = vrot.slane %v9086_v11, 4 }
 0x406   : > { %v2038_v59 = vadd.f32 %v8970_v47, %v1842_v16  ;;  %v2039_v46 = vadd.f32 %v2007_v52, %v1843_v35  ;;  %v9258_v41 = vsel %vm2074_vm1, %v2070_v34, %v10144_v17  ;;  %v10409_v27 = vrot.slane %v8914_v1, 1 }
 0x407   : > { %v4633_v53 = vadd.f32 %v4601_v43, %v4437_v36  ;;  %v5024_v42 = vadd.f32 %v4992_v28, %v4828_v9  ;;  %v2268_v29 = vmul.f32 %v10349_v40, %v9258_v41  ;;  %v2338_v28 = vsel %vm2335_vm2, %v2331_v60, %v10138_v23 }
 0x408   : > { %v2078_v49 = vsel %vm2074_vm1, %v10409_v27, %v2070_v34  ;;  %v10410_v36 = vrot.slane %v8914_v1, 2  ;;  %v2529_v9 = vmul.f32 %v7074_v8, %v2338_v28  ;;  %vm2906_vm12 = vcmp.ge.s32.totalorder %v8856_v63, 4 }
 0x409   : > { %v4829_v43 = vadd.f32 %v4797_v19, %v4633_v53  ;;  %v2267_v47 = vmul.f32 %v10349_v40, %v2078_v49  ;;  %v5220_v35 = vadd.f32 %v5188_v55, %v5024_v42  ;;  %v9280_v19 = vsel %vm2596_vm3, %v2592_v62, %v10139_v32 }
 0x40a   : > { %v2339_v16 = vsel %vm2335_vm2, %v10410_v36, %v2331_v60  ;;  %v2300_v53 = vadd.f32 %v2268_v29, %v2039_v46  ;;  %v10411_v55 = vrot.slane %v8914_v1, 3  ;;  %v2790_v42 = vmul.f32 %v7094_v4, %v9280_v19 }
 0x40b   : > { %v5025_v52 = vadd.f32 %v4993_v13, %v4829_v43  ;;  %v2299_v34 = vadd.f32 %v2267_v47, %v2038_v59  ;;  %v2528_v27 = vmul.f32 %v7074_v8, %v2339_v16  ;;  %v5416_v23 = vadd.f32 %v5384_v21, %v5220_v35 }
 0x40c   : > { %v2600_v60 = vsel %vm2596_vm3, %v10411_v55, %v2592_v62  ;;  %v2860_v36 = vsel %vm2857_vm4, %v2853_v22, %v10140_v12  ;;  %v2561_v46 = vadd.f32 %v2529_v9, %v2300_v53  ;;  %v10412_v47 = vrot.slane %v8914_v1, 4 }
 0x40d   : > { %v5221_v13 = vadd.f32 %v5189_v26, %v5025_v52  ;;  %v2560_v59 = vadd.f32 %v2528_v27, %v2299_v34  ;;  %v2789_v43 = vmul.f32 %v7094_v4, %v2600_v60  ;;  %v5448_v21 = vadd.f32 %v5416_v23, %v8789_v15 }
 0x40e   : > { %v2861_v62 = vsel %vm2857_vm4, %v10412_v47, %v2853_v22  ;;  %v3051_v29 = vmul.f32 %v7098_v14, %v2860_v36  ;;  %v3114_v35 = vrot.slane %v9086_v11, 5  ;;  %v2822_v12 = vadd.f32 %v2790_v42, %v2561_v46 }
 0x40f   : > { %v5417_v55 = vadd.f32 %v9209_v10, %v5221_v13  ;;  %v2821_v32 = vadd.f32 %v2789_v43, %v2560_v59  ;;  %v3050_v26 = vmul.f32 %v7098_v14, %v2861_v62  ;;  %5480 = vst [vmem:[%s7541_s26 + $0x58] sm:$0xff] %v5448_v21  ;;  %v10413_v23 = vrot.slane %v8914_v1, 5 }
 0x410   : > { %v3121_v15 = vsel %vm3118_vm5, %v3114_v35, %v10143_v31  ;;  %v3375_v9 = vrot.slane %v9086_v11, 6  ;;  %v3636_v10 = vrot.slane %v9086_v11, 7  ;;  %v3083_v53 = vadd.f32 %v3051_v29, %v2822_v12 }
 0x411   : > { %v3122_v22 = vsel %vm3118_vm5, %v10413_v23, %v3114_v35  ;;  %v5449_v52 = vadd.f32 %v5417_v55, %v9048_v39  ;;  %v3082_v34 = vadd.f32 %v3050_v26, %v2821_v32  ;;  %v3864_v42 = vadd.f32 %v9098_v30, %v9204_v37  ;;  %v10416_v26 = vld [vmem:[#allocation20_spill] sm:$0xff] }
 0x412   : > { %v3311_v27 = vmul.f32 %v7105_v7, %v3122_v22  ;;  %v3312_v13 = vmul.f32 %v7105_v7, %v3121_v15  ;;  %v9323_v59 = vsel %vm3379_vm6, %v3375_v9, %v10142_v33  ;;  %v10414_v46 = vrot.slane %v8914_v1, 6 }
 0x413   : > { %5481 = vst [vmem:[%s7541_s26 + $0x60] sm:$0xff] %v5449_v52  ;;  %v9336_v30 = vsel %vm3640_vm7, %v3636_v10, %v10141_v50  ;;  %v10415_v37 = vrot.slane %v8914_v1, 7  ;;  %v3573_v47 = vmul.f32 %v7120_v3, %v9323_v59  ;;  %v4028_v29 = vmul.f32 %v7145_v51, %v2078_v49 }
 0x414   : > { %v3383_v39 = vsel %vm3379_vm6, %v10414_v46, %v3375_v9  ;;  %v3343_v32 = vadd.f32 %v3311_v27, %v3082_v34  ;;  %v3344_v21 = vadd.f32 %v3312_v13, %v3083_v53  ;;  %v9349_v23 = vmul.f32 %v8956_v54, %v10416_v26  ;;  %v10417_v27 = vld [vmem:[#allocation35_spill] sm:$0xff] }
 0x415   : > { %v3572_v12 = vmul.f32 %v7120_v3, %v3383_v39  ;;  %v3644_v43 = vsel %vm3640_vm7, %v10415_v37, %v3636_v10  ;;  %v3834_v10 = vmul.f32 %v7133_v2, %v9336_v30  ;;  %v4060_v52 = vadd.f32 %v4028_v29, %v3864_v42 }
 0x416   : > { %v3833_v55 = vmul.f32 %v7133_v2, %v3644_v43  ;;  %v3605_v9 = vadd.f32 %v3573_v47, %v3344_v21  ;;  %v4224_v34 = vmul.f32 %v7159_v48, %v2339_v16  ;;  %v4029_v53 = vmul.f32 %v7145_v51, %v9258_v41 }
 0x417   : > { %v3604_v35 = vadd.f32 %v3572_v12, %v3343_v32  ;;  %6079 = vpow2.f32 %v8802_v44  ;;  %v9360_v54 = vmul.f32 -1.442695, %v10417_v27  ;;  %v4225_v46 = vmul.f32 %v7159_v48, %v2338_v28 }
 0x418   : > { %v9362_v13 = vadd.f32 %v3834_v10, %v3605_v9  ;;  %v4256_v32 = vadd.f32 %v4224_v34, %v4060_v52  ;;  %v4420_v42 = vmul.f32 %v7162_v0, %v2600_v60  ;;  %vm3167_vm13 = vcmp.ge.s32.totalorder %v8856_v63, 3 }
 0x419   : > { %v3865_v49 = vadd.f32 %v3833_v55, %v3604_v35  ;;  %v4421_v12 = vmul.f32 %v7162_v0, %v9280_v19  ;;  %v4616_v41 = vmul.f32 %v7169_v25, %v2861_v62  ;;  %v4617_v44 = vmul.f32 %v7169_v25, %v2860_v36  ;;  %v10419_v36 = vld [vmem:[#allocation23_spill] sm:$0xff] }
 0x41a   : > { %10418 = vst [vmem:[#allocation43_spill] sm:$0xff] %v9362_v13  ;;  %v4452_v37 = vadd.f32 %v4420_v42, %v4256_v32  ;;  %v4812_v21 = vmul.f32 %v7172_v6, %v3122_v22  ;;  %v4813_v47 = vmul.f32 %v7172_v6, %v3121_v15  ;;  %v2057_v28 = vrot.slane %v9349_v23, 1 }
 0x41b   : > { %v4061_v16 = vadd.f32 %v4029_v53, %v3865_v49  ;;  %vm3428_vm14 = vcmp.ge.s32.totalorder %v8856_v63, 2  ;;  %v2318_v29 = vrot.slane %v9349_v23, 2  ;;  %v2579_v35 = vrot.slane %v9349_v23, 3 }
 0x41c   : > { %v2840_v19 = vrot.slane %v9349_v23, 4  ;;  %v4648_v55 = vadd.f32 %v4616_v41, %v4452_v37  ;;  %v5008_v62 = vmul.f32 %v7217_v57, %v3383_v39  ;;  %v10420_v26 = vrot.slane %v10419_v36, 1 }
 0x41d   : > { %v4257_v60 = vadd.f32 %v4225_v46, %v4061_v16  ;;  %v3101_v22 = vrot.slane %v9349_v23, 5  ;;  %v10421_v52 = vrot.slane %v10419_v36, 2  ;;  %v10422_v34 = vrot.slane %v10419_v36, 3 }
 0x41e   : > { %v9385_v15 = vsel %vm2074_vm1, %v2057_v28, %v10420_v26  ;;  %v4844_v53 = vadd.f32 %v4812_v21, %v4648_v55  ;;  %v3362_v42 = vrot.slane %v9349_v23, 6  ;;  %v10423_v37 = vrot.slane %v10419_v36, 4  ;;  %v10424_v55 = vld [vmem:[#allocation37_spill] sm:$0xff] }
 0x41f   : > { %v4453_v9 = vadd.f32 %v4421_v12, %v4257_v60  ;;  %v2219_v10 = vsel %vm2123_vm9, %v9385_v15, 0.0  ;;  %v9397_v39 = vsel %vm2335_vm2, %v2318_v29, %v10421_v52  ;;  %v9405_v49 = vsel %vm2596_vm3, %v2579_v35, %v10422_v34 }
 0x420   : > { %v2255_v46 = vmul.f32 %v10349_v40, %v2219_v10  ;;  %v2480_v32 = vsel %vm2384_vm10, %v9397_v39, 0.0  ;;  %v5204_v12 = vmul.f32 %v7243_v58, %v3644_v43  ;;  %v2741_v41 = vsel %vm2645_vm11, %v9405_v49, 0.0 }
 0x421   : > { %v4649_v16 = vadd.f32 %v4617_v44, %v4453_v9  ;;  %v9422_v21 = vsel %vm2857_vm4, %v2840_v19, %v10423_v37  ;;  %v5040_v60 = vadd.f32 %v5008_v62, %v4844_v53  ;;  %v2516_v10 = vmul.f32 %v7074_v8, %v2480_v32  ;;  %v6080_v9 = vpop.eup %6079 }
 0x422   : > { %v2287_v26 = vadd.f32 %v2255_v46, %v10424_v55  ;;  %v10425_v44 = vrot.slane %v10419_v36, 5  ;;  %v5009_v34 = vmul.f32 %v7217_v57, %v9323_v59  ;;  %v5400_v62 = vmul.f32 %v8962_v56, %v9086_v11 }
 0x423   : > { %v4845_v52 = vadd.f32 %v4813_v47, %v4649_v16  ;;  %v3002_v53 = vsel %vm2906_vm12, %v9422_v21, 0.0  ;;  %v5236_v46 = vadd.f32 %v5204_v12, %v5040_v60  ;;  %v2777_v37 = vmul.f32 %v7094_v4, %v2741_v41 }
 0x424   : > { %v9432_v43 = vsel %vm3118_vm5, %v3101_v22, %v10425_v44  ;;  %v2548_v32 = vadd.f32 %v2516_v10, %v2287_v26  ;;  %v10426_v55 = vrot.slane %v10419_v36, 6  ;;  %v5205_v59 = vmul.f32 %v7243_v58, %v9336_v30 }
 0x425   : > { %v5041_v16 = vadd.f32 %v5009_v34, %v4845_v52  ;;  %v3263_v44 = vsel %vm3167_vm13, %v9432_v43, 0.0  ;;  %v3623_v12 = vrot.slane %v9349_v23, 7  ;;  %v5432_v60 = vadd.f32 %v5400_v62, %v5236_v46 }
 0x426   : > { %v3395_v47 = vsel %vm3379_vm6, %v3362_v42, %v10426_v55  ;;  %v2809_v41 = vadd.f32 %v2777_v37, %v2548_v32  ;;  %v3038_v26 = vmul.f32 %v7098_v14, %v3002_v53  ;;  %vm3689_vm15 = vcmp.ge.s32.totalorder %v8856_v63, 1 }
 0x427   : > { %v5401_v10 = vmul.f32 %v8962_v56, %v9060_v38  ;;  %v5237_v52 = vadd.f32 %v5205_v59, %v5041_v16  ;;  %v3524_v30 = vsel %vm3428_vm14, %v3395_v47, 0.0  ;;  %v10427_v34 = vrot.slane %v10419_v36, 7 }
 0x428   : > { %v5464_v62 = vadd.f32 %v5432_v60, %v8914_v1  ;;  %v3070_v53 = vadd.f32 %v3038_v26, %v2809_v41  ;;  %v3299_v46 = vmul.f32 %v7105_v7, %v3263_v44  ;;  %v1409_v37 = vadd.s32 120, %v7009_v18  ;;  %v10428_v1 = vld [vmem:[#allocation15_spill] sm:$0xff]  ;;  %v10429_v41 = vld [vmem:[#allocation29_spill] sm:$0xff] }
 0x429   : > { %v3656_v55 = vsel %vm3640_vm7, %v3623_v12, %v10427_v34  ;;  %v5433_v32 = vadd.f32 %v5401_v10, %v5237_v52  ;;  %6081 = vpow2.f32 %v9360_v54  ;;  %v3560_v59 = vmul.f32 %v7120_v3, %v3524_v30  ;;  %v10430_v54 = vld [vmem:[#allocation33_spill] sm:$0xff] }
 0x42a   : > { %v3785_v16 = vsel %vm3689_vm15, %v3656_v55, 0.0  ;;  %5496 = vst [vmem:[%s7541_s26 + $0xd8] sm:$0xff] %v5464_v62  ;;  %v3331_v63 = vadd.f32 %v3299_v46, %v3070_v53  ;;  %v1276_v31 = vadd.f32 1.0, %v6080_v9  ;;  %v1814_v60 = vmul.f32 %v10276_v61, %v10428_v1  ;;  %v10431_v62 = vld [vmem:[#allocation44_spill] sm:$0xff]  ;;  %v10432_v53 = vld [vmem:[#allocation34_spill] sm:$0xff] }
 0x42b   : > { %v5465_v50 = vadd.f32 %v5433_v32, %v9086_v11  ;;  %v3821_v34 = vmul.f32 %v7133_v2, %v3785_v16  ;;  %v1535_v44 = vand.u32 63, %v1409_v37  ;;  %v4017_v26 = vmul.f32 %v7145_v51, %v10429_v41  ;;  %v10433_v32 = vld [vmem:[#allocation22_spill] sm:$0xff]  ;;  %v10435_v16 = vld [vmem:[#allocation39_spill] sm:$0xff] }
 0x42c   : > { %v3592_v33 = vadd.f32 %v3560_v59, %v3331_v63  ;;  %6083 = vrcp.f32 %v1276_v31  ;;  %v4213_v52 = vmul.f32 %v7159_v48, %v10430_v54  ;;  %v9482_v11 = vadd.f32 %v10431_v62, %v1814_v60  ;;  %v10436_v59 = vld [vmem:[#allocation40_spill] sm:$0xff] }
 0x42d   : > { %5497 = vst [vmem:[%s7541_s26 + $0xe0] sm:$0xff] %v5465_v50  ;;  %v4409_v9 = vmul.f32 %v7162_v0, %v10432_v53  ;;  %vm3884_vm0 = vcmp.lt.s32.totalorder %v1535_v44, 63  ;;  %vm4080_vm8 = vcmp.lt.s32.totalorder %v1535_v44, 62  ;;  %vm4276_vm9 = vcmp.lt.s32.totalorder %v1535_v44, 61  ;;  %v10437_v53 = vld [vmem:[#allocation26_spill] sm:$0xff] }
 0x42e   : > { %v3853_v10 = vadd.f32 %v3821_v34, %v3592_v33  ;;  %vm4472_vm10 = vcmp.lt.s32.totalorder %v1535_v44, 60  ;;  %vm4668_vm11 = vcmp.lt.s32.totalorder %v1535_v44, 59  ;;  %v5389_v31 = vmul.f32 %v8962_v56, %v10433_v32  ;;  %v10434_v33 = vld [vmem:[#allocation36_spill] sm:$0xff]  ;;  %v10438_v32 = vld [vmem:[#allocation38_spill] sm:$0xff] }
 0x42f   : > { %v4605_v37 = vmul.f32 %v7169_v25, %v10434_v33  ;;  %v4801_v63 = vmul.f32 %v7172_v6, %v10435_v16  ;;  %vm4864_vm12 = vcmp.lt.s32.totalorder %v1535_v44, 58  ;;  %v4997_v34 = vmul.f32 %v7217_v57, %v10436_v59  ;;  %v10439_v16 = vld [vmem:[#allocation42_spill] sm:$0xff] }
 0x430   : > { %v4049_v30 = vadd.f32 %v4017_v26, %v3853_v10  ;;  %v3980_v60 = vsel %vm3884_vm0, %v9385_v15, 0.0  ;;  %vm5060_vm13 = vcmp.lt.s32.totalorder %v1535_v44, 57  ;;  %v4176_v26 = vsel %vm4080_vm8, %v9397_v39, 0.0 }
 0x431   : > { %v4372_v10 = vsel %vm4276_vm9, %v9405_v49, 0.0  ;;  %v4568_v56 = vsel %vm4472_vm10, %v9422_v21, 0.0  ;;  %v4764_v54 = vsel %vm4668_vm11, %v9432_v43, 0.0  ;;  %v9501_v33 = vadd.f32 %v10438_v32, %v10437_v53 }
 0x432   : > { %v4245_v46 = vadd.f32 %v4213_v52, %v4049_v30  ;;  %v4960_v30 = vsel %vm4864_vm12, %v3395_v47, 0.0  ;;  %v5193_v15 = vmul.f32 %v7243_v58, %v10439_v16  ;;  %v1992_v44 = vmul.f32 %v10346_v20, %v9016_v24 }
 0x433   : > { %v6082_v50 = vpop.eup %6081  ;;  %v1829_v39 = vmul.f32 %v10276_v61, %v9349_v23  ;;  %v5156_v49 = vsel %vm5060_vm13, %v3656_v55, 0.0  ;;  %v9510_v43 = vmul.f32 %v7145_v51, %v3980_v60  ;;  %v9513_v47 = vmul.f32 %v7159_v48, %v4176_v26  ;;  %v10440_v55 = vld [vmem:[#allocation30_spill] sm:$0xff] }
 0x434   : > { %v4441_v41 = vadd.f32 %v4409_v9, %v4245_v46  ;;  %v1293_v62 = vadd.f32 1.0, %v6082_v50  ;;  %v9516_v9 = vmul.f32 %v7162_v0, %v4372_v10  ;;  %v9519_v50 = vmul.f32 %v7169_v25, %v4568_v56 }
 0x435   : > { %v9525_v59 = vmul.f32 %v7217_v57, %v4960_v30  ;;  %v9531_v26 = vmul.f32 %v7243_v58, %v5156_v49  ;;  %v5687_v10 = vmul.f32 -1.442695, %v9501_v33  ;;  %v9581_v17 = vand.u32 63, %v7009_v18 }
 0x436   : > { %v4637_v52 = vadd.f32 %v4605_v37, %v4441_v41  ;;  %v6084_v21 = vpop.eup %6083  ;;  %v9522_v37 = vmul.f32 %v7172_v6, %v4764_v54  ;;  %6085 = vrcp.f32 %v1293_v62 }
 0x437   : > { %v9528_v41 = vmul.f32 %v6084_v21, %v10440_v55  ;;  %6087 = vpow2.f32 %v5687_v10  ;;  %vm2107_vm14 = vcmp.ge.s32.totalorder %v9581_v17, 7  ;;  %vm2368_vm15 = vcmp.ge.s32.totalorder %v9581_v17, 6 }
 0x438   : > { %v4833_v46 = vadd.f32 %v4801_v63, %v4637_v52  ;;  %vm2629_vm0 = vcmp.ge.s32.totalorder %v9581_v17, 5  ;;  %vm2890_vm8 = vcmp.ge.s32.totalorder %v9581_v17, 4  ;;  %vm3151_vm9 = vcmp.ge.s32.totalorder %v9581_v17, 3 }
 0x439   : > { %v1828_v63 = vmul.f32 %v10276_v61, %v9528_v41  ;;  %v1993_v56 = vmul.f32 %v10346_v20, %v9528_v41  ;;  %v2056_v54 = vrot.slane %v9528_v41, 1  ;;  %v2317_v52 = vrot.slane %v9528_v41, 2 }
 0x43a   : > { %v5029_v60 = vadd.f32 %v4997_v34, %v4833_v46  ;;  %v2578_v53 = vrot.slane %v9528_v41, 3  ;;  %v2839_v34 = vrot.slane %v9528_v41, 4  ;;  %v3100_v32 = vrot.slane %v9528_v41, 5 }
 0x43b   : > { %v2024_v62 = vadd.f32 %v1992_v44, %v1828_v63  ;;  %v2025_v16 = vadd.f32 %v1993_v56, %v1829_v39  ;;  %v2091_v49 = vsel %vm2074_vm1, %v2056_v54, %v2057_v28  ;;  %v2092_v21 = vsel %vm2074_vm1, %v2055_v5, %v2056_v54 }
 0x43c   : > { %v5225_v30 = vadd.f32 %v5193_v15, %v5029_v60  ;;  %v2253_v15 = vmul.f32 %v10349_v40, %v2092_v21  ;;  %v2254_v55 = vmul.f32 %v10349_v40, %v2091_v49  ;;  %v2352_v44 = vsel %vm2335_vm2, %v2317_v52, %v2318_v29 }
 0x43d   : > { %v10441_v39 = vrot.slane %v9016_v24, 2  ;;  %v2515_v60 = vmul.f32 %v7074_v8, %v2352_v44  ;;  %v2613_v5 = vsel %vm2596_vm3, %v2578_v53, %v2579_v35  ;;  %v3622_v10 = vrot.slane %v9528_v41, 7 }
 0x43e   : > { %v5421_v46 = vadd.f32 %v5389_v31, %v5225_v30  ;;  %v10442_v31 = vrot.slane %v9016_v24, 3  ;;  %v2285_v29 = vadd.f32 %v2253_v15, %v2024_v62  ;;  %v2286_v54 = vadd.f32 %v2254_v55, %v2025_v16 }
 0x43f   : > { %v2353_v28 = vsel %vm2335_vm2, %v10441_v39, %v2317_v52  ;;  %v2874_v52 = vsel %vm2857_vm4, %v2839_v34, %v2840_v19  ;;  %v10443_v39 = vrot.slane %v9016_v24, 4  ;;  %v2776_v16 = vmul.f32 %v7094_v4, %v2613_v5 }
 0x440   : > { %v2614_v63 = vsel %vm2596_vm3, %v10442_v31, %v2578_v53  ;;  %v5453_v56 = vadd.f32 %v5421_v46, %v10419_v36  ;;  %v2514_v30 = vmul.f32 %v7074_v8, %v2353_v28  ;;  %v2547_v53 = vadd.f32 %v2515_v60, %v2286_v54  ;;  %v6086_v55 = vpop.eup %6085 }
 0x441   : > { %v2875_v35 = vsel %vm2857_vm4, %v10443_v39, %v2839_v34  ;;  %v2775_v62 = vmul.f32 %v7094_v4, %v2614_v63  ;;  %v3135_v19 = vsel %vm3118_vm5, %v3100_v32, %v3101_v22  ;;  %v10444_v46 = vrot.slane %v9016_v24, 5 }
 0x442   : > { %5485 = vst [vmem:[%s7541_s26 + $0x80] sm:$0xff] %v5453_v56  ;;  %v2546_v36 = vadd.f32 %v2514_v30, %v2285_v29  ;;  %v3361_v15 = vrot.slane %v9528_v41, 6  ;;  %v2808_v31 = vadd.f32 %v2776_v16, %v2547_v53  ;;  %v3036_v56 = vmul.f32 %v7098_v14, %v2875_v35 }
 0x443   : > { %v3136_v34 = vsel %vm3118_vm5, %v10444_v46, %v3100_v32  ;;  %v3037_v29 = vmul.f32 %v7098_v14, %v2874_v52  ;;  %v10445_v54 = vrot.slane %v9016_v24, 6  ;;  %v9610_v30 = vsel %vm3640_vm7, %v3622_v10, %v3623_v12 }
 0x444   : > { %v2807_v60 = vadd.f32 %v2775_v62, %v2546_v36  ;;  %v3396_v22 = vsel %vm3379_vm6, %v3361_v15, %v3362_v42  ;;  %v10446_v39 = vrot.slane %v9016_v24, 7  ;;  %v3297_v62 = vmul.f32 %v7105_v7, %v3136_v34 }
 0x445   : > { %v3397_v32 = vsel %vm3379_vm6, %v10445_v54, %v3361_v15  ;;  %v3069_v42 = vadd.f32 %v3037_v29, %v2808_v31  ;;  %v3298_v16 = vmul.f32 %v7105_v7, %v3135_v19  ;;  %v3559_v12 = vmul.f32 %v7120_v3, %v3396_v22 }
 0x446   : > { %v3658_v36 = vsel %vm3640_vm7, %v10446_v39, %v3622_v10  ;;  %v3068_v53 = vadd.f32 %v3036_v56, %v2807_v60  ;;  %v3558_v46 = vmul.f32 %v7120_v3, %v3397_v32  ;;  %v4014_v15 = vmul.f32 %v7145_v51, %v2092_v21 }
 0x447   : > { %v9624_v54 = vmul.f32 %v6086_v55, %v10417_v27  ;;  %v3330_v60 = vadd.f32 %v3298_v16, %v3069_v42  ;;  %v3819_v31 = vmul.f32 %v7133_v2, %v3658_v36  ;;  %v3820_v56 = vmul.f32 %v7133_v2, %v9610_v30 }
 0x448   : > { %v3329_v10 = vadd.f32 %v3297_v62, %v3068_v53  ;;  %v4015_v29 = vmul.f32 %v7145_v51, %v2091_v49  ;;  %v4046_v39 = vadd.f32 %v4014_v15, %v9222_v45  ;;  %v4210_v13 = vmul.f32 %v7159_v48, %v2353_v28  ;;  %v9638_v62 = vpop.eup %6087 }
 0x449   : > { %v4211_v21 = vmul.f32 %v7159_v48, %v2352_v44  ;;  %v3591_v55 = vadd.f32 %v3559_v12, %v3330_v60  ;;  %v4406_v53 = vmul.f32 %v7162_v0, %v2614_v63  ;;  %v4407_v42 = vmul.f32 %v7162_v0, %v2613_v5 }
 0x44a   : > { %v3590_v27 = vadd.f32 %v3558_v46, %v3329_v10  ;;  %v4242_v16 = vadd.f32 %v4210_v13, %v4046_v39  ;;  %v4602_v49 = vmul.f32 %v7169_v25, %v2875_v35  ;;  %v4603_v45 = vmul.f32 %v7169_v25, %v2874_v52 }
 0x44b   : > { %v4798_v28 = vmul.f32 %v7172_v6, %v3136_v34  ;;  %v3852_v15 = vadd.f32 %v3820_v56, %v3591_v55  ;;  %v4799_v46 = vmul.f32 %v7172_v6, %v3135_v19  ;;  %v4994_v12 = vmul.f32 %v7217_v57, %v3397_v32 }
 0x44c   : > { %v3851_v44 = vadd.f32 %v3819_v31, %v3590_v27  ;;  %v4438_v63 = vadd.f32 %v4406_v53, %v4242_v16  ;;  %v4995_v5 = vmul.f32 %v7217_v57, %v3396_v22  ;;  %v5190_v10 = vmul.f32 %v7243_v58, %v3658_v36 }
 0x44d   : > { %v2073_v60 = vrot.slane %v9624_v54, 1  ;;  %v4048_v35 = vadd.f32 %v9510_v43, %v3852_v15  ;;  %v2334_v52 = vrot.slane %v9624_v54, 2  ;;  %v2595_v34 = vrot.slane %v9624_v54, 3  ;;  %v9688_v15 = vld [vmem:[#allocation7 + $0x10] ss:$0 sm:$0xff] }
 0x44e   : > { %v4047_v13 = vadd.f32 %v4015_v29, %v3851_v44  ;;  %vm3412_vm10 = vcmp.ge.s32.totalorder %v9581_v17, 2  ;;  %v4634_v31 = vadd.f32 %v4602_v49, %v4438_v63  ;;  %v10447_v19 = vrot.slane %v10428_v1, 1 }
 0x44f   : > { %v2856_v32 = vrot.slane %v9624_v54, 4  ;;  %v3117_v36 = vrot.slane %v9624_v54, 5  ;;  %vm3673_vm11 = vcmp.ge.s32.totalorder %v9581_v17, 1  ;;  %v4244_v56 = vadd.f32 %v9513_v47, %v4048_v35 }
 0x450   : > { %v9658_v22 = vsel %vm2074_vm1, %v2073_v60, %v10447_v19  ;;  %v4243_v43 = vadd.f32 %v4211_v21, %v4047_v13  ;;  %v10448_v39 = vrot.slane %v10428_v1, 2  ;;  %v4830_v55 = vadd.f32 %v4798_v28, %v4634_v31 }
 0x451   : > { %v2203_v29 = vsel %vm2107_vm14, %v9658_v22, 0.0  ;;  %v10449_v47 = vrot.slane %v10428_v1, 3  ;;  %v4440_v44 = vadd.f32 %v9516_v9, %v4244_v56  ;;  %v5386_v28 = vmul.f32 %v9688_v15, %v9528_v41 }
 0x452   : > { %v9673_v27 = vsel %vm2335_vm2, %v2334_v52, %v10448_v39  ;;  %v2239_v53 = vmul.f32 %v10349_v40, %v2203_v29  ;;  %v4439_v49 = vadd.f32 %v4407_v42, %v4243_v43  ;;  %v5026_v13 = vadd.f32 %v4994_v12, %v4830_v55 }
 0x453   : > { %v2464_v21 = vsel %vm2368_vm15, %v9673_v27, 0.0  ;;  %v9685_v16 = vsel %vm2596_vm3, %v2595_v34, %v10449_v47  ;;  %v10450_v19 = vrot.slane %v10428_v1, 4  ;;  %v4636_v43 = vadd.f32 %v9519_v50, %v4440_v44 }
 0x454   : > { %v2725_v63 = vsel %vm2629_vm0, %v9685_v16, 0.0  ;;  %v2271_v35 = vadd.f32 %v2239_v53, %v9482_v11  ;;  %v2500_v31 = vmul.f32 %v7074_v8, %v2464_v21  ;;  %v4635_v42 = vadd.f32 %v4603_v45, %v4439_v49 }
 0x455   : > { %v9703_v9 = vsel %vm2857_vm4, %v2856_v32, %v10450_v19  ;;  %v10451_v12 = vrot.slane %v10428_v1, 5  ;;  %v5222_v29 = vadd.f32 %v5190_v10, %v5026_v13  ;;  %v2761_v55 = vmul.f32 %v7094_v4, %v2725_v63 }
 0x456   : > { %v2986_v56 = vsel %vm2890_vm8, %v9703_v9, 0.0  ;;  %v2532_v39 = vadd.f32 %v2500_v31, %v2271_v35  ;;  %v4831_v45 = vadd.f32 %v4799_v46, %v4635_v42  ;;  %v4832_v53 = vadd.f32 %v9522_v37, %v4636_v43 }
 0x457   : > { %v9715_v11 = vsel %vm3118_vm5, %v3117_v36, %v10451_v12  ;;  %v5191_v21 = vmul.f32 %v7243_v58, %v9610_v30  ;;  %v3378_v47 = vrot.slane %v9624_v54, 6  ;;  %v5418_v49 = vadd.f32 %v5386_v28, %v5222_v29 }
 0x458   : > { %v3247_v50 = vsel %vm3151_vm9, %v9715_v11, 0.0  ;;  %v2793_v44 = vadd.f32 %v2761_v55, %v2532_v39  ;;  %v3022_v10 = vmul.f32 %v7098_v14, %v2986_v56  ;;  %v3639_v13 = vrot.slane %v9624_v54, 7  ;;  %v10454_v55 = vld [vmem:[#allocation46_spill] sm:$0xff] }
 0x459   : > { %v5027_v63 = vadd.f32 %v4995_v5, %v4831_v45  ;;  %v5028_v35 = vadd.f32 %v9525_v59, %v4832_v53  ;;  %v3283_v31 = vmul.f32 %v7105_v7, %v3247_v50  ;;  %v10452_v46 = vrot.slane %v10428_v1, 6 }
 0x45a   : > { %v5450_v30 = vadd.f32 %v5418_v49, %v9016_v24  ;;  %v3054_v28 = vadd.f32 %v3022_v10, %v2793_v44  ;;  %v10453_v5 = vrot.slane %v10428_v1, 7  ;;  %v5387_v42 = vmul.f32 %v9688_v15, %v9349_v23  ;;  %v10455_v44 = vld [vmem:[#allocation17_spill] sm:$0xff] }
 0x45b   : > { %v9735_v37 = vsel %vm3379_vm6, %v3378_v47, %v10452_v46  ;;  %v5223_v43 = vadd.f32 %v5191_v21, %v5027_v63  ;;  %v5224_v24 = vadd.f32 %v9531_v26, %v5028_v35  ;;  %v4001_v26 = vmul.f32 %v7145_v51, %v10455_v44  ;;  %v10456_v63 = vld [vmem:[#allocation19_spill] sm:$0xff]  ;;  %v10457_v46 = vld [vmem:[#allocation21_spill] sm:$0xff] }
 0x45c   : > { %v3508_v19 = vsel %vm3412_vm10, %v9735_v37, 0.0  ;;  %v9747_v59 = vsel %vm3640_vm7, %v3639_v13, %v10453_v5  ;;  %5482 = vst [vmem:[%s7541_s26 + $0x68] sm:$0xff] %v5450_v30  ;;  %v3315_v12 = vadd.f32 %v3283_v31, %v3054_v28  ;;  %v1292_v17 = vadd.f32 1.0, %v9638_v62  ;;  %v10459_v5 = vld [vmem:[#allocation28_spill] sm:$0xff] }
 0x45d   : > { %v3769_v56 = vsel %vm3673_vm11, %v9747_v59, 0.0  ;;  %v3544_v29 = vmul.f32 %v7120_v3, %v3508_v19  ;;  %v5419_v39 = vadd.f32 %v5387_v42, %v5223_v43  ;;  %v5420_v50 = vadd.f32 %v10454_v55, %v5224_v24  ;;  %v10460_v24 = vld [vmem:[#allocation31_spill] sm:$0xff] }
 0x45e   : > { %v3805_v53 = vmul.f32 %v7133_v2, %v3769_v56  ;;  %v4197_v35 = vmul.f32 %v7159_v48, %v10456_v63  ;;  %6089 = vrcp.f32 %v1292_v17  ;;  %v4393_v30 = vmul.f32 %v7162_v0, %v10457_v46 }
 0x45f   : > { %v3576_v45 = vadd.f32 %v3544_v29, %v3315_v12  ;;  %v5451_v49 = vadd.f32 %v5419_v39, %v9528_v41  ;;  %v5452_v21 = vadd.f32 %v5420_v50, %v9349_v23  ;;  %v10458_v41 = vld [vmem:[#allocation25_spill] sm:$0xff]  ;;  %v4785_v42 = vmul.f32 %v7172_v6, %v10459_v5  ;;  %v10461_v12 = vld [vmem:[#allocation32_spill] sm:$0xff] }
 0x460   : > { %v4589_v23 = vmul.f32 %v7169_v25, %v10458_v41  ;;  %v4981_v62 = vmul.f32 %v7217_v57, %v10460_v24  ;;  %v5177_v29 = vmul.f32 %v7243_v58, %v10461_v12 }
 0x461   : > { %v3837_v10 = vadd.f32 %v3805_v53, %v3576_v45  ;;  %5483 = vst [vmem:[%s7541_s26 + $0x70] sm:$0xff] %v5451_v49  ;;  %5484 = vst [vmem:[%s7541_s26 + $0x78] sm:$0xff] %v5452_v21  ;;  %v1425_v45 = vadd.s32 248, %v7009_v18  ;;  %v10462_v53 = vld [vmem:[#allocation14_spill] sm:$0xff]  ;;  %v1845_v21 = vmul.f32 %v10276_v61, %v9624_v54 }
 0x462   : > { %v5373_v49 = vmul.f32 %v9688_v15, %v10462_v53 }
 0x463   : > { %v4033_v31 = vadd.f32 %v4001_v26, %v3837_v10  ;;  %v2008_v10 = vmul.f32 %v10346_v20, %v9060_v38  ;;  %v9793_v46 = vand.u32 63, %v1425_v45 }
 0x465   : > { %v4229_v28 = vadd.f32 %v4197_v35, %v4033_v31 }
 0x467   : > { %v4425_v19 = vadd.f32 %v4393_v30, %v4229_v28 }
 0x468   : > { %v6090_v50 = vpop.eup %6089 }
 0x469   : > { %v4621_v43 = vadd.f32 %v4589_v23, %v4425_v19  ;;  %v9784_v26 = vmul.f32 %v6090_v50, %v9501_v33 }
 0x46b   : > { %v4817_v56 = vadd.f32 %v4785_v42, %v4621_v43  ;;  %v1844_v63 = vmul.f32 %v10276_v61, %v9784_v26  ;;  %v2009_v35 = vmul.f32 %v10346_v20, %v9784_v26  ;;  %v2072_v31 = vrot.slane %v9784_v26, 1 }
 0x46c   : > { %v2333_v30 = vrot.slane %v9784_v26, 2  ;;  %v2594_v33 = vrot.slane %v9784_v26, 3  ;;  %v2855_v28 = vrot.slane %v9784_v26, 4  ;;  %v10463_v20 = vrot.slane %v9060_v38, 1 }
 0x46d   : > { %v5013_v39 = vadd.f32 %v4981_v62, %v4817_v56  ;;  %v2040_v23 = vadd.f32 %v2008_v10, %v1844_v63  ;;  %v2041_v19 = vadd.f32 %v2009_v35, %v1845_v21  ;;  %v2075_v61 = vsel %vm2074_vm1, %v2072_v31, %v2073_v60 }
 0x46e   : > { %v2076_v5 = vsel %vm2074_vm1, %v10463_v20, %v2072_v31  ;;  %v2270_v42 = vmul.f32 %v10349_v40, %v2075_v61  ;;  %v9812_v43 = vsel %vm2335_vm2, %v2333_v30, %v2334_v52  ;;  %v9824_v62 = vsel %vm2596_vm3, %v2594_v33, %v2595_v34 }
 0x46f   : > { %v5209_v44 = vadd.f32 %v5177_v29, %v5013_v39  ;;  %v2269_v60 = vmul.f32 %v10349_v40, %v2076_v5  ;;  %v3116_v56 = vrot.slane %v9784_v26, 5  ;;  %vm3900_vm1 = vcmp.lt.s32.totalorder %v9793_v46, 63 }
 0x470   : > { %v2302_v52 = vadd.f32 %v2270_v42, %v2041_v19  ;;  %v2531_v12 = vmul.f32 %v7074_v8, %v9812_v43  ;;  %v10465_v29 = vrot.slane %v9060_v38, 3  ;;  %v9840_v34 = vsel %vm2857_vm4, %v2855_v28, %v2856_v32 }
 0x471   : > { %v5405_v17 = vadd.f32 %v5373_v49, %v5209_v44  ;;  %v2301_v40 = vadd.f32 %v2269_v60, %v2040_v23  ;;  %v2792_v49 = vmul.f32 %v7094_v4, %v9824_v62  ;;  %v10466_v21 = vrot.slane %v9060_v38, 4 }
 0x472   : > { %v2598_v39 = vsel %vm2596_vm3, %v10465_v29, %v2594_v33  ;;  %v2563_v45 = vadd.f32 %v2531_v12, %v2302_v52  ;;  %v10467_v32 = vrot.slane %v9060_v38, 5  ;;  %v3377_v63 = vrot.slane %v9784_v26, 6 }
 0x473   : > { %v5437_v41 = vadd.f32 %v5405_v17, %v10428_v1  ;;  %v10464_v1 = vrot.slane %v9060_v38, 2  ;;  %v2791_v53 = vmul.f32 %v7094_v4, %v2598_v39  ;;  %v2859_v44 = vsel %vm2857_vm4, %v10466_v21, %v2855_v28 }
 0x474   : > { %v3120_v17 = vsel %vm3118_vm5, %v10467_v32, %v3116_v56  ;;  %vm4292_vm3 = vcmp.lt.s32.totalorder %v9793_v46, 61  ;;  %v2824_v4 = vadd.f32 %v2792_v49, %v2563_v45  ;;  %v3053_v35 = vmul.f32 %v7098_v14, %v9840_v34 }
 0x475   : > { %v2337_v24 = vsel %vm2335_vm2, %v10464_v1, %v2333_v30  ;;  %5469 = vst [vmem:[%s7541_s26] sm:$0xff] %v5437_v41  ;;  %vm4096_vm2 = vcmp.lt.s32.totalorder %v9793_v46, 62  ;;  %v3638_v31 = vrot.slane %v9784_v26, 7  ;;  %v3052_v33 = vmul.f32 %v7098_v14, %v2859_v44  ;;  %v10469_v1 = vld [vmem:[#allocation43_spill] sm:$0xff] }
 0x476   : > { %v2530_v50 = vmul.f32 %v7074_v8, %v2337_v24  ;;  %v9853_v8 = vsel %vm3118_vm5, %v3116_v56, %v3117_v36  ;;  %v9869_v36 = vsel %vm3379_vm6, %v3377_v63, %v3378_v47  ;;  %v4030_v28 = vmul.f32 %v7145_v51, %v2076_v5 }
 0x477   : > { %v3085_v41 = vadd.f32 %v3053_v35, %v2824_v4  ;;  %v3313_v23 = vmul.f32 %v7105_v7, %v3120_v17  ;;  %v3314_v19 = vmul.f32 %v7105_v7, %v9853_v8  ;;  %v10468_v20 = vrot.slane %v9060_v38, 6 }
 0x478   : > { %v2562_v10 = vadd.f32 %v2530_v50, %v2301_v40  ;;  %v9883_v47 = vsel %vm3640_vm7, %v3638_v31, %v3639_v13  ;;  %v4062_v5 = vadd.f32 %v4030_v28, %v10469_v1  ;;  %v4226_v60 = vmul.f32 %v7159_v48, %v2337_v24 }
 0x479   : > { %v3381_v42 = vsel %vm3379_vm6, %v10468_v20, %v3377_v63  ;;  %v3996_v7 = vsel %vm3900_vm1, %v9658_v22, 0.0  ;;  %v3346_v56 = vadd.f32 %v3314_v19, %v3085_v41  ;;  %v3575_v52 = vmul.f32 %v7120_v3, %v9869_v36 }
 0x47a   : > { %v2823_v30 = vadd.f32 %v2791_v53, %v2562_v10  ;;  %v10470_v12 = vrot.slane %v9060_v38, 7  ;;  %v3574_v13 = vmul.f32 %v7120_v3, %v3381_v42  ;;  %v4258_v50 = vadd.f32 %v4226_v60, %v4062_v5 }
 0x47b   : > { %v4422_v45 = vmul.f32 %v7162_v0, %v2598_v39  ;;  %v4192_v24 = vsel %vm4096_vm2, %v9673_v27, 0.0  ;;  %vm4488_vm4 = vcmp.lt.s32.totalorder %v9793_v46, 60  ;;  %v3607_v22 = vadd.f32 %v3575_v52, %v3346_v56 }
 0x47c   : > { %v3084_v14 = vadd.f32 %v3052_v33, %v2823_v30  ;;  %v3642_v29 = vsel %vm3640_vm7, %v10470_v12, %v3638_v31  ;;  %v3836_v53 = vmul.f32 %v7133_v2, %v9883_v47  ;;  %v4618_v10 = vmul.f32 %v7169_v25, %v2859_v44 }
 0x47d   : > { %v3835_v18 = vmul.f32 %v7133_v2, %v3642_v29  ;;  %v4454_v21 = vadd.f32 %v4422_v45, %v4258_v50  ;;  %v4032_v3 = vmul.f32 %v7145_v51, %v3996_v7  ;;  %v4388_v39 = vsel %vm4292_vm3, %v9685_v16, 0.0 }
 0x47e   : > { %v3345_v40 = vadd.f32 %v3313_v23, %v3084_v14  ;;  %vm4684_vm5 = vcmp.lt.s32.totalorder %v9793_v46, 59  ;;  %v3868_v27 = vadd.f32 %v3836_v53, %v3607_v22  ;;  %v4031_v63 = vmul.f32 %v7145_v51, %v2075_v61 }
 0x47f   : > { %v4650_v4 = vadd.f32 %v4618_v10, %v4454_v21  ;;  %v4814_v35 = vmul.f32 %v7172_v6, %v3120_v17  ;;  %v4228_v2 = vmul.f32 %v7159_v48, %v4192_v24  ;;  %v4584_v44 = vsel %vm4488_vm4, %v9703_v9, 0.0 }
 0x480   : > { %v3606_v49 = vadd.f32 %v3574_v13, %v3345_v40  ;;  %vm4880_vm6 = vcmp.lt.s32.totalorder %v9793_v46, 58  ;;  %v4064_v31 = vadd.f32 %v4032_v3, %v3868_v27  ;;  %v4227_v16 = vmul.f32 %v7159_v48, %v9812_v43 }
 0x481   : > { %v4846_v33 = vadd.f32 %v4814_v35, %v4650_v4  ;;  %v5010_v28 = vmul.f32 %v7217_v57, %v3381_v42  ;;  %v4424_v51 = vmul.f32 %v7162_v0, %v4388_v39  ;;  %v4780_v61 = vsel %vm4684_vm5, %v9715_v11, 0.0 }
 0x482   : > { %v3867_v32 = vadd.f32 %v3835_v18, %v3606_v49  ;;  %v4260_v17 = vadd.f32 %v4228_v2, %v4064_v31  ;;  %v4423_v23 = vmul.f32 %v7162_v0, %v9824_v62  ;;  %v5206_v19 = vmul.f32 %v7243_v58, %v3642_v29 }
 0x483   : > { %v5042_v9 = vadd.f32 %v5010_v28, %v4846_v33  ;;  %v4620_v20 = vmul.f32 %v7169_v25, %v4584_v44  ;;  %v4976_v14 = vsel %vm4880_vm6, %v9735_v37, 0.0  ;;  %vm5076_vm7 = vcmp.lt.s32.totalorder %v9793_v46, 57 }
 0x484   : > { %v4063_v30 = vadd.f32 %v4031_v63, %v3867_v32  ;;  %v4456_v48 = vadd.f32 %v4424_v51, %v4260_v17  ;;  %v4619_v42 = vmul.f32 %v7169_v25, %v9840_v34  ;;  %v5402_v1 = vmul.f32 %v9688_v15, %v9784_v26 }
 0x485   : > { %v5238_v11 = vadd.f32 %v5206_v19, %v5042_v9  ;;  %v4816_v0 = vmul.f32 %v7172_v6, %v4780_v61  ;;  %v5172_v5 = vsel %vm5076_vm7, %v9747_v59, 0.0  ;;  %v4815_v37 = vmul.f32 %v7172_v6, %v9853_v8 }
 0x486   : > { %v4259_v41 = vadd.f32 %v4227_v16, %v4063_v30  ;;  %v4652_v62 = vadd.f32 %v4620_v20, %v4456_v48  ;;  %v5012_v7 = vmul.f32 %v7217_v57, %v4976_v14  ;;  %v5011_v56 = vmul.f32 %v7217_v57, %v9869_v36 }
 0x487   : > { %v5434_v46 = vadd.f32 %v5402_v1, %v5238_v11  ;;  %v5208_v12 = vmul.f32 %v7243_v58, %v5172_v5  ;;  %v5207_v6 = vmul.f32 %v7243_v58, %v9883_v47  ;;  %v5403_v40 = vmul.f32 %v9688_v15, %v9624_v54 }
 0x488   : > { %v4455_v43 = vadd.f32 %v4423_v23, %v4259_v41  ;;  %v4848_v25 = vadd.f32 %v4816_v0, %v4652_v62 }
 0x489   : > { %v5466_v52 = vadd.f32 %v5434_v46, %v9060_v38 }
 0x48a   : > { %v4651_v60 = vadd.f32 %v4619_v42, %v4455_v43  ;;  %v5044_v59 = vadd.f32 %v5012_v7, %v4848_v25 }
 0x48b   : > { %5498 = vst [vmem:[%s7541_s26 + $0xe8] sm:$0xff] %v5466_v52 }
 0x48c   : > { %v4847_v34 = vadd.f32 %v4815_v37, %v4651_v60  ;;  %v5240_v8 = vadd.f32 %v5208_v12, %v5044_v59 }
 0x48e   : > { %v5043_v29 = vadd.f32 %v5011_v56, %v4847_v34  ;;  %v5436_v57 = vadd.f32 %v10454_v55, %v5240_v8 }
 0x490   : > { %v5239_v13 = vadd.f32 %v5207_v6, %v5043_v29  ;;  %v5468_v36 = vadd.f32 %v5436_v57, %v9624_v54 }
 0x492   : > { %v5435_v38 = vadd.f32 %v5403_v40, %v5239_v13  ;;  %5500 = vst [vmem:[%s7541_s26 + $0xf8] sm:$0xff] %v5468_v36 }
 0x494   : > { %v5467_v58 = vadd.f32 %v5435_v38, %v9784_v26 }
 0x496   : > { %5499 = vst [vmem:[%s7541_s26 + $0xf0] sm:$0xff] %v5467_v58 }
 0x497   : > { %6195 = shalt.err (!%p6192_p1)
}
 0x498   : > { %s6196_s26 = scalar_lea.hbm %s9954_s29, 4096  ;;  %s6200_s10 = scalar_lea.hbm %s10009_s6, 8192 }
 0x499   : > { %p6197_p13 = scmp.ne.s32.totalorder %s9954_s29, %s6196_s26  ;;  %p6201_p4 = scmp.lt.u32.totalorder %s9954_s29, %s10009_s6 }
 0x49a   : > { %p6202_p5 = scmp.lt.u32.totalorder %s6200_s10, %s6196_s26  ;;  %p6204_p11 = scmp.lt.u32.totalorder %s6196_s26, %s9954_s29 }
 0x49b   : > { %p6198_p6 = pnand %p6197_p13, %p10471_p0 }
 0x49c   : > { %p6203_p8 = por %p6202_p5, %p6201_p4 }
 0x49d   : > { %p6199_p10 = pneg %p6198_p6 }
 0x49e   : > { %p6205_p2 = por %p6204_p11, %p6203_p8 }
 0x4a0   : > { %p6206_p3 = pnand %p6205_p2, %p6199_p10 }
 0x4a2   : > { %6209 = shalt.err (!%p6206_p3)
}
 0x4a3   : > { %s6260_s18 = smov 128   ;;  %s6261_s27 = smov 8  }
 0x4a4   : > { %5838 = dma.vmem_to_hbm [thread:$0]  (%p10471_p0), %s9956_s7, 4096, %s9954_s29, %s5502_s25, %s6260_s18, %s6260_s18, %s6261_s27  }
 0x4a5 PF: > { %s5531_s19 = sand.u32 1, %s6240_s21   ;;  %p10472_p7 = scmp.ne.s32.totalorder %s10146_s28, 0 }
 0x4a6   : > { %p10473_p9 = scmp.ge.s32.totalorder %s6252_s24, 2  ;;  %s5532_s20 = scalar_lea.sflag [#allocation4], %s5531_s19 }
 0x4a8   : > { %p5852_p12 = pnand %p10473_p9, %p10472_p7 }
 0x4aa   : > { %6235 = dma.done.wait (!%p5852_p12), %s5532_s20, 4096  }
 0x4ab   : > { %6237 = vsyncadd (!%p5852_p12), %s5532_s20, 4294963200  ;;  %p20_p1 = scmp.ge.s32.totalorder %s6413_s8, 4   ;;  %s10474_s21 = smov %s6244_s22 }
 0x4ac   : > { %s10475_s22 = smov %s6248_s23  ;;  %s10476_s23 = smov %s6429_s11 }
 0x4ad   : > { %s10477_s24 = smov %s6413_s8  ;;  %22 = sbr.rel (!%p20_p1) target bundleno = 6 (0x6), region = 97 }
 0x4b4   :  { %5537 = vsyncpa [#allocation3], 1 }
 0x4b5   :  { %5539 = vsyncpa [#allocation3 + $0x1], 1 }
 0x4b6   :  { %5540 = vsyncpa [#allocation6], 1 }
 0x4b7   :  { %5541 = vsyncpa [#allocation4], 1 }
 0x4b8   :  { %5543 = vsyncpa [#allocation4 + $0x1], 1 }

</bundles_post_ra>
